<compile_context>
chip_gen: v7x
topology: tpu7x:2x2x1
jax: 0.10.0
libtpu: 0.0.40
codegen_flags: <defaults>
</compile_context>

<pallas_src>
import functools
import numpy as np
import jax
import jax.numpy as jnp
from jax.experimental import pallas as pl
from jax.experimental.pallas import tpu as pltpu


# ----------------------------------------------------------------------------
# In-kernel helpers
# ----------------------------------------------------------------------------
def _shift_rows(x2d, n_batch, H, direction):
    """Shift rows by one inside each batch's H-row block (zero fill at the edge).

    direction=+1: row h receives row h-1 (zero at h=0)   -> kernel tap kh=0
    direction=-1: row h receives row h+1 (zero at h=H-1) -> kernel tap kh=2
    Implemented with static slices + sublane concat only (no rolls, no masks).
    """
    wc = x2d.shape[-1]
    zero = jnp.zeros((1, wc), x2d.dtype)
    parts = []
    for b in range(n_batch):
        xb = x2d[b * H:(b + 1) * H, :]
        if direction > 0:
            parts += [zero, xb[:H - 1, :]]
        else:
            parts += [xb[1:, :], zero]
    return jnp.concatenate(parts, axis=0)


def _conv_stage(x2d, t_ref, c_ref, s_ref, n_batch, H):
    """conv3x3(pad=1) + folded BN + ReLU + maxpool(2,2) on row-major activations.

    x2d   : (n_batch*H, W*Cin) f32 value, lane = w*Cin + cin
    t_ref : (3, W*Cin, 2*G) bf16, G=(W//2)*Cout; per-kh block-Toeplitz conv
            weights with the BN scale folded in, columns ordered (dx, w_out, cout)
    c_ref : (1, 2*G) f32 folded BN bias, tiled over (dx, w_out)
    s_ref : (n_batch*H, G) f32 VMEM scratch (full-resolution, W-pooled rows)
    returns (n_batch*H//2, G) f32 value, lane = w_out*Cout + cout
    """
    M = x2d.shape[0]
    up = _shift_rows(x2d, n_batch, H, +1)          # row h-1  (kh = 0)
    dn = _shift_rows(x2d, n_batch, H, -1)          # row h+1  (kh = 2)
    y = c_ref[...]                                 # (1, 2G) broadcasts over M rows
    for kh, slab in enumerate((up, x2d, dn)):      # 3 MXU matmuls, f32 accumulate
        y = y + jnp.dot(slab.astype(jnp.bfloat16), t_ref[kh],
                        preferred_element_type=jnp.float32)
    G = y.shape[-1] // 2
    # maxpool over W: elementwise max of the two dx column groups (128-aligned).
    s_ref[...] = jnp.maximum(y[:, :G], y[:, G:])
    # maxpool over H: strided even/odd row reads from scratch, then max; ReLU last.
    ev = s_ref[pl.ds(0, M // 2, stride=2), :]
    od = s_ref[pl.ds(1, M // 2, stride=2), :]
    return jnp.maximum(jnp.maximum(ev, od), 0.0)


def _meow_kernel(x_ref, t1_ref, c1_ref, t2_ref, c2_ref, t3_ref, c3_ref,
                 w1_ref, d1_ref, w2_ref, d2_ref, o_ref, s1, s2, s3,
                 *, n_batch, h_dim):
    """Fully fused MeowCNN forward for `n_batch` batches (all activations in VMEM)."""
    a = x_ref[...].astype(jnp.float32)                           # (nb*128, t_dim)
    a = _conv_stage(a, t1_ref, c1_ref, s1, n_batch, h_dim)       # (nb*64, 128)
    a = _conv_stage(a, t2_ref, c2_ref, s2, n_batch, h_dim // 2)  # (nb*32, 128)
    a = _conv_stage(a, t3_ref, c3_ref, s3, n_batch, h_dim // 4)  # (nb*16, 128)

    hp3 = h_dim // 8
    # NHWC flatten (b, h, w, c) -> (b, h*W3*C3 + w*C3 + c) built from static row
    # slices + 128-aligned lane concat (fc1 weight rows are permuted to match).
    pieces = []
    for h in range(hp3):
        rows = [a[b * hp3 + h: b * hp3 + h + 1, :] for b in range(n_batch)]
        pieces.append(rows[0] if n_batch == 1 else jnp.concatenate(rows, axis=0))
    xflat = jnp.concatenate(pieces, axis=-1).astype(jnp.bfloat16)  # (nb, 2048)

    hid = jnp.dot(xflat, w1_ref[...], preferred_element_type=jnp.float32) + d1_ref[...]
    hid = jnp.maximum(hid, 0.0).astype(jnp.bfloat16)               # (nb, 64)
    # fc2 is padded to 128 output columns -> lane-dense store; sliced outside.
    out = jnp.dot(hid, w2_ref[...], preferred_element_type=jnp.float32) + d2_ref[...]
    o_ref[...] = out                                               # (nb, 128) f32


# ----------------------------------------------------------------------------
# pallas_call wrapper
# ----------------------------------------------------------------------------
def _tensorcores_per_chip():
    """v7x has 2 TensorCores/chip; v5e/v6e have 1. Conservative default: 1."""
    try:
        d = jax.devices()[0]
        if str(getattr(d, "platform", "")).lower() != "tpu":
            return 1
        kind = str(getattr(d, "device_kind", "")).lower()
        if "v7" in kind:
            return 2
        return max(1, int(getattr(d, "num_cores", 1) or 1))
    except Exception:
        return 1


def make_forward(B, t_dim, h_dim=128, num_tiles=1):
    assert h_dim == 128, "fc1 = 64*16*(t_dim//8) requires H = 128"
    assert t_dim % 8 == 0 and B % num_tiles == 0
    nb = B // num_tiles
    g1 = (t_dim // 2) * 16
    g2 = (t_dim // 4) * 32
    g3 = (t_dim // 8) * 64
    d_in = 64 * (h_dim // 8) * (t_dim // 8)

    kernel = functools.partial(_meow_kernel, n_batch=nb, h_dim=h_dim)

    @jax.jit
    def forward(x_nchw, p):
        # (B, 1, 128, t) NCHW -> (B*128, t) row layout (Cin = 1): pure reshape.
        x_rows = x_nchw.reshape(B * h_dim, t_dim).astype(jnp.float32)
        out = pl.pallas_call(
            kernel,
            out_shape=jax.ShapeDtypeStruct((num_tiles, nb, 128), jnp.float32),
            grid=(num_tiles,),
            in_specs=[
                pl.BlockSpec((nb * h_dim, t_dim), lambda i: (i, 0)),
                pl.BlockSpec((3, t_dim, 2 * g1), lambda i: (0, 0, 0)),
                pl.BlockSpec((1, 2 * g1), lambda i: (0, 0)),
                pl.BlockSpec((3, (t_dim // 2) * 16, 2 * g2), lambda i: (0, 0, 0)),
                pl.BlockSpec((1, 2 * g2), lambda i: (0, 0)),
                pl.BlockSpec((3, (t_dim // 4) * 32, 2 * g3), lambda i: (0, 0, 0)),
                pl.BlockSpec((1, 2 * g3), lambda i: (0, 0)),
                pl.BlockSpec((d_in, 64), lambda i: (0, 0)),
                pl.BlockSpec((1, 64), lambda i: (0, 0)),
                pl.BlockSpec((64, 128), lambda i: (0, 0)),
                pl.BlockSpec((1, 128), lambda i: (0, 0)),
            ],
            out_specs=pl.BlockSpec((None, nb, 128), lambda i: (i, 0, 0)),
            scratch_shapes=[
                pltpu.VMEM((nb * h_dim, g1), jnp.float32),
                pltpu.VMEM((nb * (h_dim // 2), g2), jnp.float32),
                pltpu.VMEM((nb * (h_dim // 4), g3), jnp.float32),
            ],
            compiler_params=pltpu.CompilerParams(
                dimension_semantics=("parallel",)),
        )(x_rows, p["t1"], p["c1"], p["t2"], p["c2"], p["t3"], p["c3"],
          p["fc1_w"], p["fc1_b"], p["fc2_w"], p["fc2_b"])
        return out.reshape(B, 128)[:, :2]

    return forward


# ----------------------------------------------------------------------------
# Parameter construction (deterministic, synthetic) + folded-weight building
# ----------------------------------------------------------------------------
def _build_stage_weight(w_kkio, scale, W):
    """(3,3,Cin,Cout) conv weight + folded BN scale -> (3, W*Cin, 2*G) bf16.

    Slice kh is a W-direction block-Toeplitz matrix: rows (w_in, cin), columns
    (dx, w_out, cout); entry = w[kh, kw]*scale with kw = w_in - 2*w_out + 1 - dx
    (zero if the kernel index falls outside [0, 2] -> 'SAME' padding)."""
    w = np.asarray(w_kkio, np.float32)
    s = np.asarray(scale, np.float32)
    cin, cout = w.shape[2], w.shape[3]
    wp = W // 2
    g = wp * cout
    T = np.zeros((3, W * cin, 2 * g), np.float32)
    for kh in range(3):
        for dx in range(2):
            for wo in range(wp):
                for kw in range(3):
                    wi = 2 * wo + dx + kw - 1
                    if 0 <= wi < W:
                        T[kh, wi * cin:(wi + 1) * cin,
                          dx * g + wo * cout: dx * g + (wo + 1) * cout] = \
                            w[kh, kw] * s[None, :]
    return jnp.asarray(T, jnp.bfloat16)


def make_conv_stage_params(key, cin, cout, W):
    k1, k2, k3, k4, k5, k6 = jax.random.split(key, 6)
    w = jax.random.normal(k1, (3, 3, cin, cout), jnp.float32) / np.sqrt(9.0 * cin)
    conv_b = 0.05 * jax.random.normal(k2, (cout,), jnp.float32)
    gamma = 1.0 + 0.1 * jax.random.normal(k3, (cout,), jnp.float32)
    beta = 0.05 * jax.random.normal(k4, (cout,), jnp.float32)
    run_mean = 0.05 * jax.random.normal(k5, (cout,), jnp.float32)
    run_var = jax.random.uniform(k6, (cout,), jnp.float32, 0.5, 1.5)
    eps = 1e-5
    scale = gamma / jnp.sqrt(run_var + eps)
    bias_eff = beta + (conv_b - run_mean) * scale
    t = _build_stage_weight(w, scale, W)
    crow = jnp.asarray(np.tile(np.asarray(bias_eff, np.float32), 2 * (W // 2))
                       .reshape(1, -1), jnp.float32)
    raw = dict(w=w, b=conv_b, gamma=gamma, beta=beta, mean=run_mean, var=run_var)
    return t, crow, raw


def make_params(key, t_dim, h_dim=128):
    ks = jax.random.split(key, 6)
    t1, c1, r1 = make_conv_stage_params(ks[0], 1, 16, t_dim)
    t2, c2, r2 = make_conv_stage_params(ks[1], 16, 32, t_dim // 2)
    t3, c3, r3 = make_conv_stage_params(ks[2], 32, 64, t_dim // 4)

    hp3, wp3, c3n = h_dim // 8, t_dim // 8, 64
    d_in = c3n * hp3 * wp3
    # fc1 weights generated in PyTorch's NCHW-flatten row order ...
    fc1_w_nchw = np.asarray(0.02 * jax.random.normal(ks[3], (d_in, 64), jnp.float32))
    # ... then permuted once to the NHWC flatten order (h*Wp3 + w)*C3 + c that
    # the fused kernel produces, so the forward needs no transpose before fc1.
    r = np.arange(d_in)
    hh = r // (wp3 * c3n)
    rem = r % (wp3 * c3n)
    ww = rem // c3n
    cc = rem % c3n
    fc1_w_nhwc = fc1_w_nchw[cc * (hp3 * wp3) + hh * wp3 + ww]      # (d_in, 64) f32
    fc1_b = 0.02 * jax.random.normal(ks[4], (1, 64), jnp.float32)
    kk1, kk2 = jax.random.split(ks[5])
    fc2_w = 0.1 * jax.random.normal(kk1, (64, 2), jnp.float32)
    fc2_b = 0.1 * jax.random.normal(kk2, (1, 2), jnp.float32)
    # fc2 padded to 128 columns -> lane-dense kernel output (sliced outside).
    fc2_w_pad = jnp.zeros((64, 128), jnp.float32).at[:, :2].set(fc2_w).astype(jnp.bfloat16)
    fc2_b_pad = jnp.zeros((1, 128), jnp.float32).at[:, :2].set(fc2_b)

    params = dict(t1=t1, c1=c1, t2=t2, c2=c2, t3=t3, c3=c3,
                  fc1_w=jnp.asarray(fc1_w_nhwc, jnp.bfloat16), fc1_b=fc1_b,
                  fc2_w=fc2_w_pad, fc2_b=fc2_b_pad)
    raw = dict(stages=[r1, r2, r3],
               fc1_w=jnp.asarray(fc1_w_nhwc, jnp.float32), fc1_b=fc1_b,
               fc2_w=fc2_w, fc2_b=fc2_b)
    return params, raw


# ----------------------------------------------------------------------------
# Pure-JAX reference (f32, original op-by-op semantics) for validation
# ----------------------------------------------------------------------------
def reference_forward(x_nchw, raw):
    hi = jax.lax.Precision.HIGHEST
    x = jnp.transpose(x_nchw, (0, 2, 3, 1)).astype(jnp.float32)     # NHWC
    for st in raw["stages"]:
        y = jax.lax.conv_general_dilated(
            x, st["w"], window_strides=(1, 1), padding="SAME",
            dimension_numbers=("NHWC", "HWIO", "NHWC"), precision=hi)
        y = y + st["b"]
        scale = st["gamma"] / jnp.sqrt(st["var"] + 1e-5)
        y = (y - st["mean"]) * scale + st["beta"]
        y = jnp.maximum(y, 0.0)
        x = jax.lax.reduce_window(y, -jnp.inf, jax.lax.max,
                                  (1, 2, 2, 1), (1, 2, 2, 1), "VALID")
    xf = x.reshape(x.shape[0], -1)                                   # NHWC flatten
    h = jnp.maximum(jnp.dot(xf, raw["fc1_w"], precision=hi) + raw["fc1_b"], 0.0)
    return jnp.dot(h, raw["fc2_w"], precision=hi) + raw["fc2_b"]


# ----------------------------------------------------------------------------
if __name__ == "__main__":
    B, t_dim, h_dim = 2, 16, 128          # input (B, 1, 128, t_dim); H=128 required by fc1
    key = jax.random.PRNGKey(0)
    kx, kp = jax.random.split(key)
    x = jax.random.normal(kx, (B, 1, h_dim, t_dim), jnp.float32)
    params, raw = make_params(kp, t_dim, h_dim)

    # 2-way batch-parallel grid only on chips with 2 TensorCores (v7x).
    num_tiles = 2 if (_tensorcores_per_chip() >= 2 and B % 2 == 0) else 1
    forward = make_forward(B=B, t_dim=t_dim, h_dim=h_dim, num_tiles=num_tiles)

    out = jax.block_until_ready(forward(x, params))
    assert out.shape == (B, 2) and bool(jnp.all(jnp.isfinite(out)))

    ref = reference_forward(x, raw)
    np.testing.assert_allclose(np.asarray(out), np.asarray(ref), rtol=0.1, atol=0.08)
    print("KERNEL_OK")
</pallas_src>

<mosaic_0001>
module attributes {stable_mosaic.version = 11 : i64} {
  func.func @_meow_kernel(%arg0: i32, %arg1: memref<256x16xf32, #tpu.memory_space<vmem>>, %arg2: memref<3x16x256xbf16, #tpu.memory_space<vmem>>, %arg3: memref<1x256xf32, #tpu.memory_space<vmem>>, %arg4: memref<3x128x256xbf16, #tpu.memory_space<vmem>>, %arg5: memref<1x256xf32, #tpu.memory_space<vmem>>, %arg6: memref<3x128x256xbf16, #tpu.memory_space<vmem>>, %arg7: memref<1x256xf32, #tpu.memory_space<vmem>>, %arg8: memref<2048x64xbf16, #tpu.memory_space<vmem>>, %arg9: memref<1x64xf32, #tpu.memory_space<vmem>>, %arg10: memref<64x128xbf16, #tpu.memory_space<vmem>>, %arg11: memref<1x128xf32, #tpu.memory_space<vmem>>, %arg12: memref<1x2x128xf32, #tpu.memory_space<vmem>>, %arg13: memref<256x128xf32, #tpu.memory_space<vmem>>, %arg14: memref<128x128xf32, #tpu.memory_space<vmem>>, %arg15: memref<64x128xf32, #tpu.memory_space<vmem>>) attributes {dimension_semantics = [#tpu.dimension_semantics<parallel>], iteration_bounds = array<i64: 1>, scalar_prefetch = 0 : i64, scratch_operands = 3 : i64, tpu.core_type = #tpu.core_type<tc>, window_params = [{transform_indices = @transform_0, window_bounds = array<i64: 256, 16>}, {pipeline_mode = #tpu.pipeline_mode<synchronous>, transform_indices = @transform_1, window_bounds = array<i64: 3, 16, 256>}, {pipeline_mode = #tpu.pipeline_mode<synchronous>, transform_indices = @transform_2, window_bounds = array<i64: 1, 256>}, {pipeline_mode = #tpu.pipeline_mode<synchronous>, transform_indices = @transform_3, window_bounds = array<i64: 3, 128, 256>}, {pipeline_mode = #tpu.pipeline_mode<synchronous>, transform_indices = @transform_4, window_bounds = array<i64: 1, 256>}, {pipeline_mode = #tpu.pipeline_mode<synchronous>, transform_indices = @transform_5, window_bounds = array<i64: 3, 128, 256>}, {pipeline_mode = #tpu.pipeline_mode<synchronous>, transform_indices = @transform_6, window_bounds = array<i64: 1, 256>}, {pipeline_mode = #tpu.pipeline_mode<synchronous>, transform_indices = @transform_7, window_bounds = array<i64: 2048, 64>}, {pipeline_mode = #tpu.pipeline_mode<synchronous>, transform_indices = @transform_8, window_bounds = array<i64: 1, 64>}, {pipeline_mode = #tpu.pipeline_mode<synchronous>, transform_indices = @transform_9, window_bounds = array<i64: 64, 128>}, {pipeline_mode = #tpu.pipeline_mode<synchronous>, transform_indices = @transform_10, window_bounds = array<i64: 1, 128>}, {transform_indices = @transform_11, window_bounds = array<i64: 1, 2, 128>}]} {
    %c0 = arith.constant 0 : index
    %c0_0 = arith.constant 0 : index
    %0 = vector.load %arg1[%c0, %c0_0] : memref<256x16xf32, #tpu.memory_space<vmem>>, vector<256x16xf32>
    %cst = arith.constant 0.000000e+00 : f32
    %1 = vector.broadcast %cst : f32 to vector<1x16xf32>
    %2 = vector.extract_strided_slice %0 {offsets = [0, 0], sizes = [128, 16], strides = [1, 1]} : vector<256x16xf32> to vector<128x16xf32>
    %3 = vector.extract_strided_slice %2 {offsets = [0, 0], sizes = [127, 16], strides = [1, 1]} : vector<128x16xf32> to vector<127x16xf32>
    %4 = vector.extract_strided_slice %0 {offsets = [128, 0], sizes = [128, 16], strides = [1, 1]} : vector<256x16xf32> to vector<128x16xf32>
    %5 = vector.extract_strided_slice %4 {offsets = [0, 0], sizes = [127, 16], strides = [1, 1]} : vector<128x16xf32> to vector<127x16xf32>
    %6 = tpu.concatenate %1, %3, %1, %5 in 0 : vector<1x16xf32>, vector<127x16xf32>, vector<1x16xf32>, vector<127x16xf32> -> vector<256x16xf32>
    %cst_1 = arith.constant 0.000000e+00 : f32
    %7 = vector.broadcast %cst_1 : f32 to vector<1x16xf32>
    %8 = vector.extract_strided_slice %0 {offsets = [0, 0], sizes = [128, 16], strides = [1, 1]} : vector<256x16xf32> to vector<128x16xf32>
    %9 = vector.extract_strided_slice %8 {offsets = [1, 0], sizes = [127, 16], strides = [1, 1]} : vector<128x16xf32> to vector<127x16xf32>
    %10 = vector.extract_strided_slice %0 {offsets = [128, 0], sizes = [128, 16], strides = [1, 1]} : vector<256x16xf32> to vector<128x16xf32>
    %11 = vector.extract_strided_slice %10 {offsets = [1, 0], sizes = [127, 16], strides = [1, 1]} : vector<128x16xf32> to vector<127x16xf32>
    %12 = tpu.concatenate %9, %7, %11, %7 in 0 : vector<127x16xf32>, vector<1x16xf32>, vector<127x16xf32>, vector<1x16xf32> -> vector<256x16xf32>
    %c0_2 = arith.constant 0 : index
    %c0_3 = arith.constant 0 : index
    %13 = vector.load %arg3[%c0_2, %c0_3] : memref<1x256xf32, #tpu.memory_space<vmem>>, vector<1x256xf32>
    %14 = arith.truncf %6 : vector<256x16xf32> to vector<256x16xbf16>
    %c0_4 = arith.constant 0 : index
    %c0_5 = arith.constant 0 : index
    %c0_6 = arith.constant 0 : index
    %15 = vector.load %arg2[%c0_4, %c0_5, %c0_6] : memref<3x16x256xbf16, #tpu.memory_space<vmem>>, vector<1x16x256xbf16>
    %16 = vector.shape_cast %15 : vector<1x16x256xbf16> to vector<16x256xbf16>
    %cst_7 = arith.constant dense<0.000000e+00> : vector<256x256xf32>
    %17 = tpu.matmul %14, %16, %cst_7 {dimension_numbers = #tpu.dot_dimension_numbers<[1], [0], [0], [1], [0, 0, 1, 1], [], []>} : vector<256x16xbf16>, vector<16x256xbf16>, vector<256x256xf32> -> vector<256x256xf32>
    %18 = vector.broadcast %13 : vector<1x256xf32> to vector<256x256xf32>
    %19 = arith.addf %18, %17 : vector<256x256xf32>
    %20 = arith.truncf %0 : vector<256x16xf32> to vector<256x16xbf16>
    %c1 = arith.constant 1 : index
    %c0_8 = arith.constant 0 : index
    %c0_9 = arith.constant 0 : index
    %21 = vector.load %arg2[%c1, %c0_8, %c0_9] : memref<3x16x256xbf16, #tpu.memory_space<vmem>>, vector<1x16x256xbf16>
    %22 = vector.shape_cast %21 : vector<1x16x256xbf16> to vector<16x256xbf16>
    %cst_10 = arith.constant dense<0.000000e+00> : vector<256x256xf32>
    %23 = tpu.matmul %20, %22, %cst_10 {dimension_numbers = #tpu.dot_dimension_numbers<[1], [0], [0], [1], [0, 0, 1, 1], [], []>} : vector<256x16xbf16>, vector<16x256xbf16>, vector<256x256xf32> -> vector<256x256xf32>
    %24 = arith.addf %19, %23 : vector<256x256xf32>
    %25 = arith.truncf %12 : vector<256x16xf32> to vector<256x16xbf16>
    %c2 = arith.constant 2 : index
    %c0_11 = arith.constant 0 : index
    %c0_12 = arith.constant 0 : index
    %26 = vector.load %arg2[%c2, %c0_11, %c0_12] : memref<3x16x256xbf16, #tpu.memory_space<vmem>>, vector<1x16x256xbf16>
    %27 = vector.shape_cast %26 : vector<1x16x256xbf16> to vector<16x256xbf16>
    %cst_13 = arith.constant dense<0.000000e+00> : vector<256x256xf32>
    %28 = tpu.matmul %25, %27, %cst_13 {dimension_numbers = #tpu.dot_dimension_numbers<[1], [0], [0], [1], [0, 0, 1, 1], [], []>} : vector<256x16xbf16>, vector<16x256xbf16>, vector<256x256xf32> -> vector<256x256xf32>
    %29 = arith.addf %24, %28 : vector<256x256xf32>
    %30 = vector.extract_strided_slice %29 {offsets = [0, 0], sizes = [256, 128], strides = [1, 1]} : vector<256x256xf32> to vector<256x128xf32>
    %31 = vector.extract_strided_slice %29 {offsets = [0, 128], sizes = [256, 128], strides = [1, 1]} : vector<256x256xf32> to vector<256x128xf32>
    %32 = arith.maximumf %30, %31 : vector<256x128xf32>
    %c0_14 = arith.constant 0 : index
    %c0_15 = arith.constant 0 : index
    %33 = vector.load %arg13[%c0_14, %c0_15] : memref<256x128xf32, #tpu.memory_space<vmem>>, vector<256x128xf32>
    tpu.vector_store %arg13[%c0_14, %c0_15], %32 {strides = array<i32>} : memref<256x128xf32, #tpu.memory_space<vmem>>, vector<256x128xf32>,
    %c0_16 = arith.constant 0 : index
    %c0_17 = arith.constant 0 : index
    %34 = tpu.strided_load %arg13[%c0_16, %c0_17] {strides = array<i32: 2, 1>} : memref<256x128xf32, #tpu.memory_space<vmem>>, vector<128x128xf32>
    %c1_18 = arith.constant 1 : index
    %c0_19 = arith.constant 0 : index
    %35 = tpu.strided_load %arg13[%c1_18, %c0_19] {strides = array<i32: 2, 1>} : memref<256x128xf32, #tpu.memory_space<vmem>>, vector<128x128xf32>
    %36 = arith.maximumf %34, %35 : vector<128x128xf32>
    %cst_20 = arith.constant 0.000000e+00 : f32
    %37 = vector.broadcast %cst_20 : f32 to vector<128x128xf32>
    %38 = arith.maximumf %36, %37 : vector<128x128xf32>
    %cst_21 = arith.constant 0.000000e+00 : f32
    %39 = vector.broadcast %cst_21 : f32 to vector<1x128xf32>
    %40 = vector.extract_strided_slice %38 {offsets = [0, 0], sizes = [64, 128], strides = [1, 1]} : vector<128x128xf32> to vector<64x128xf32>
    %41 = vector.extract_strided_slice %40 {offsets = [0, 0], sizes = [63, 128], strides = [1, 1]} : vector<64x128xf32> to vector<63x128xf32>
    %42 = vector.extract_strided_slice %38 {offsets = [64, 0], sizes = [64, 128], strides = [1, 1]} : vector<128x128xf32> to vector<64x128xf32>
    %43 = vector.extract_strided_slice %42 {offsets = [0, 0], sizes = [63, 128], strides = [1, 1]} : vector<64x128xf32> to vector<63x128xf32>
    %44 = tpu.concatenate %39, %41, %39, %43 in 0 : vector<1x128xf32>, vector<63x128xf32>, vector<1x128xf32>, vector<63x128xf32> -> vector<128x128xf32>
    %cst_22 = arith.constant 0.000000e+00 : f32
    %45 = vector.broadcast %cst_22 : f32 to vector<1x128xf32>
    %46 = vector.extract_strided_slice %38 {offsets = [0, 0], sizes = [64, 128], strides = [1, 1]} : vector<128x128xf32> to vector<64x128xf32>
    %47 = vector.extract_strided_slice %46 {offsets = [1, 0], sizes = [63, 128], strides = [1, 1]} : vector<64x128xf32> to vector<63x128xf32>
    %48 = vector.extract_strided_slice %38 {offsets = [64, 0], sizes = [64, 128], strides = [1, 1]} : vector<128x128xf32> to vector<64x128xf32>
    %49 = vector.extract_strided_slice %48 {offsets = [1, 0], sizes = [63, 128], strides = [1, 1]} : vector<64x128xf32> to vector<63x128xf32>
    %50 = tpu.concatenate %47, %45, %49, %45 in 0 : vector<63x128xf32>, vector<1x128xf32>, vector<63x128xf32>, vector<1x128xf32> -> vector<128x128xf32>
    %c0_23 = arith.constant 0 : index
    %c0_24 = arith.constant 0 : index
    %51 = vector.load %arg5[%c0_23, %c0_24] : memref<1x256xf32, #tpu.memory_space<vmem>>, vector<1x256xf32>
    %52 = arith.truncf %44 : vector<128x128xf32> to vector<128x128xbf16>
    %c0_25 = arith.constant 0 : index
    %c0_26 = arith.constant 0 : index
    %c0_27 = arith.constant 0 : index
    %53 = vector.load %arg4[%c0_25, %c0_26, %c0_27] : memref<3x128x256xbf16, #tpu.memory_space<vmem>>, vector<1x128x256xbf16>
    %54 = vector.shape_cast %53 : vector<1x128x256xbf16> to vector<128x256xbf16>
    %cst_28 = arith.constant dense<0.000000e+00> : vector<128x256xf32>
    %55 = tpu.matmul %52, %54, %cst_28 {dimension_numbers = #tpu.dot_dimension_numbers<[1], [0], [0], [1], [0, 0, 1, 1], [], []>} : vector<128x128xbf16>, vector<128x256xbf16>, vector<128x256xf32> -> vector<128x256xf32>
    %56 = vector.broadcast %51 : vector<1x256xf32> to vector<128x256xf32>
    %57 = arith.addf %56, %55 : vector<128x256xf32>
    %58 = arith.truncf %38 : vector<128x128xf32> to vector<128x128xbf16>
    %c1_29 = arith.constant 1 : index
    %c0_30 = arith.constant 0 : index
    %c0_31 = arith.constant 0 : index
    %59 = vector.load %arg4[%c1_29, %c0_30, %c0_31] : memref<3x128x256xbf16, #tpu.memory_space<vmem>>, vector<1x128x256xbf16>
    %60 = vector.shape_cast %59 : vector<1x128x256xbf16> to vector<128x256xbf16>
    %cst_32 = arith.constant dense<0.000000e+00> : vector<128x256xf32>
    %61 = tpu.matmul %58, %60, %cst_32 {dimension_numbers = #tpu.dot_dimension_numbers<[1], [0], [0], [1], [0, 0, 1, 1], [], []>} : vector<128x128xbf16>, vector<128x256xbf16>, vector<128x256xf32> -> vector<128x256xf32>
    %62 = arith.addf %57, %61 : vector<128x256xf32>
    %63 = arith.truncf %50 : vector<128x128xf32> to vector<128x128xbf16>
    %c2_33 = arith.constant 2 : index
    %c0_34 = arith.constant 0 : index
    %c0_35 = arith.constant 0 : index
    %64 = vector.load %arg4[%c2_33, %c0_34, %c0_35] : memref<3x128x256xbf16, #tpu.memory_space<vmem>>, vector<1x128x256xbf16>
    %65 = vector.shape_cast %64 : vector<1x128x256xbf16> to vector<128x256xbf16>
    %cst_36 = arith.constant dense<0.000000e+00> : vector<128x256xf32>
    %66 = tpu.matmul %63, %65, %cst_36 {dimension_numbers = #tpu.dot_dimension_numbers<[1], [0], [0], [1], [0, 0, 1, 1], [], []>} : vector<128x128xbf16>, vector<128x256xbf16>, vector<128x256xf32> -> vector<128x256xf32>
    %67 = arith.addf %62, %66 : vector<128x256xf32>
    %68 = vector.extract_strided_slice %67 {offsets = [0, 0], sizes = [128, 128], strides = [1, 1]} : vector<128x256xf32> to vector<128x128xf32>
    %69 = vector.extract_strided_slice %67 {offsets = [0, 128], sizes = [128, 128], strides = [1, 1]} : vector<128x256xf32> to vector<128x128xf32>
    %70 = arith.maximumf %68, %69 : vector<128x128xf32>
    %c0_37 = arith.constant 0 : index
    %c0_38 = arith.constant 0 : index
    %71 = vector.load %arg14[%c0_37, %c0_38] : memref<128x128xf32, #tpu.memory_space<vmem>>, vector<128x128xf32>
    tpu.vector_store %arg14[%c0_37, %c0_38], %70 {strides = array<i32>} : memref<128x128xf32, #tpu.memory_space<vmem>>, vector<128x128xf32>,
    %c0_39 = arith.constant 0 : index
    %c0_40 = arith.constant 0 : index
    %72 = tpu.strided_load %arg14[%c0_39, %c0_40] {strides = array<i32: 2, 1>} : memref<128x128xf32, #tpu.memory_space<vmem>>, vector<64x128xf32>
    %c1_41 = arith.constant 1 : index
    %c0_42 = arith.constant 0 : index
    %73 = tpu.strided_load %arg14[%c1_41, %c0_42] {strides = array<i32: 2, 1>} : memref<128x128xf32, #tpu.memory_space<vmem>>, vector<64x128xf32>
    %74 = arith.maximumf %72, %73 : vector<64x128xf32>
    %cst_43 = arith.constant 0.000000e+00 : f32
    %75 = vector.broadcast %cst_43 : f32 to vector<64x128xf32>
    %76 = arith.maximumf %74, %75 : vector<64x128xf32>
    %cst_44 = arith.constant 0.000000e+00 : f32
    %77 = vector.broadcast %cst_44 : f32 to vector<1x128xf32>
    %78 = vector.extract_strided_slice %76 {offsets = [0, 0], sizes = [32, 128], strides = [1, 1]} : vector<64x128xf32> to vector<32x128xf32>
    %79 = vector.extract_strided_slice %78 {offsets = [0, 0], sizes = [31, 128], strides = [1, 1]} : vector<32x128xf32> to vector<31x128xf32>
    %80 = vector.extract_strided_slice %76 {offsets = [32, 0], sizes = [32, 128], strides = [1, 1]} : vector<64x128xf32> to vector<32x128xf32>
    %81 = vector.extract_strided_slice %80 {offsets = [0, 0], sizes = [31, 128], strides = [1, 1]} : vector<32x128xf32> to vector<31x128xf32>
    %82 = tpu.concatenate %77, %79, %77, %81 in 0 : vector<1x128xf32>, vector<31x128xf32>, vector<1x128xf32>, vector<31x128xf32> -> vector<64x128xf32>
    %cst_45 = arith.constant 0.000000e+00 : f32
    %83 = vector.broadcast %cst_45 : f32 to vector<1x128xf32>
    %84 = vector.extract_strided_slice %76 {offsets = [0, 0], sizes = [32, 128], strides = [1, 1]} : vector<64x128xf32> to vector<32x128xf32>
    %85 = vector.extract_strided_slice %84 {offsets = [1, 0], sizes = [31, 128], strides = [1, 1]} : vector<32x128xf32> to vector<31x128xf32>
    %86 = vector.extract_strided_slice %76 {offsets = [32, 0], sizes = [32, 128], strides = [1, 1]} : vector<64x128xf32> to vector<32x128xf32>
    %87 = vector.extract_strided_slice %86 {offsets = [1, 0], sizes = [31, 128], strides = [1, 1]} : vector<32x128xf32> to vector<31x128xf32>
    %88 = tpu.concatenate %85, %83, %87, %83 in 0 : vector<31x128xf32>, vector<1x128xf32>, vector<31x128xf32>, vector<1x128xf32> -> vector<64x128xf32>
    %c0_46 = arith.constant 0 : index
    %c0_47 = arith.constant 0 : index
    %89 = vector.load %arg7[%c0_46, %c0_47] : memref<1x256xf32, #tpu.memory_space<vmem>>, vector<1x256xf32>
    %90 = arith.truncf %82 : vector<64x128xf32> to vector<64x128xbf16>
    %c0_48 = arith.constant 0 : index
    %c0_49 = arith.constant 0 : index
    %c0_50 = arith.constant 0 : index
    %91 = vector.load %arg6[%c0_48, %c0_49, %c0_50] : memref<3x128x256xbf16, #tpu.memory_space<vmem>>, vector<1x128x256xbf16>
    %92 = vector.shape_cast %91 : vector<1x128x256xbf16> to vector<128x256xbf16>
    %cst_51 = arith.constant dense<0.000000e+00> : vector<64x256xf32>
    %93 = tpu.matmul %90, %92, %cst_51 {dimension_numbers = #tpu.dot_dimension_numbers<[1], [0], [0], [1], [0, 0, 1, 1], [], []>} : vector<64x128xbf16>, vector<128x256xbf16>, vector<64x256xf32> -> vector<64x256xf32>
    %94 = vector.broadcast %89 : vector<1x256xf32> to vector<64x256xf32>
    %95 = arith.addf %94, %93 : vector<64x256xf32>
    %96 = arith.truncf %76 : vector<64x128xf32> to vector<64x128xbf16>
    %c1_52 = arith.constant 1 : index
    %c0_53 = arith.constant 0 : index
    %c0_54 = arith.constant 0 : index
    %97 = vector.load %arg6[%c1_52, %c0_53, %c0_54] : memref<3x128x256xbf16, #tpu.memory_space<vmem>>, vector<1x128x256xbf16>
    %98 = vector.shape_cast %97 : vector<1x128x256xbf16> to vector<128x256xbf16>
    %cst_55 = arith.constant dense<0.000000e+00> : vector<64x256xf32>
    %99 = tpu.matmul %96, %98, %cst_55 {dimension_numbers = #tpu.dot_dimension_numbers<[1], [0], [0], [1], [0, 0, 1, 1], [], []>} : vector<64x128xbf16>, vector<128x256xbf16>, vector<64x256xf32> -> vector<64x256xf32>
    %100 = arith.addf %95, %99 : vector<64x256xf32>
    %101 = arith.truncf %88 : vector<64x128xf32> to vector<64x128xbf16>
    %c2_56 = arith.constant 2 : index
    %c0_57 = arith.constant 0 : index
    %c0_58 = arith.constant 0 : index
    %102 = vector.load %arg6[%c2_56, %c0_57, %c0_58] : memref<3x128x256xbf16, #tpu.memory_space<vmem>>, vector<1x128x256xbf16>
    %103 = vector.shape_cast %102 : vector<1x128x256xbf16> to vector<128x256xbf16>
    %cst_59 = arith.constant dense<0.000000e+00> : vector<64x256xf32>
    %104 = tpu.matmul %101, %103, %cst_59 {dimension_numbers = #tpu.dot_dimension_numbers<[1], [0], [0], [1], [0, 0, 1, 1], [], []>} : vector<64x128xbf16>, vector<128x256xbf16>, vector<64x256xf32> -> vector<64x256xf32>
    %105 = arith.addf %100, %104 : vector<64x256xf32>
    %106 = vector.extract_strided_slice %105 {offsets = [0, 0], sizes = [64, 128], strides = [1, 1]} : vector<64x256xf32> to vector<64x128xf32>
    %107 = vector.extract_strided_slice %105 {offsets = [0, 128], sizes = [64, 128], strides = [1, 1]} : vector<64x256xf32> to vector<64x128xf32>
    %108 = arith.maximumf %106, %107 : vector<64x128xf32>
    %c0_60 = arith.constant 0 : index
    %c0_61 = arith.constant 0 : index
    %109 = vector.load %arg15[%c0_60, %c0_61] : memref<64x128xf32, #tpu.memory_space<vmem>>, vector<64x128xf32>
    tpu.vector_store %arg15[%c0_60, %c0_61], %108 {strides = array<i32>} : memref<64x128xf32, #tpu.memory_space<vmem>>, vector<64x128xf32>,
    %c0_62 = arith.constant 0 : index
    %c0_63 = arith.constant 0 : index
    %110 = tpu.strided_load %arg15[%c0_62, %c0_63] {strides = array<i32: 2, 1>} : memref<64x128xf32, #tpu.memory_space<vmem>>, vector<32x128xf32>
    %c1_64 = arith.constant 1 : index
    %c0_65 = arith.constant 0 : index
    %111 = tpu.strided_load %arg15[%c1_64, %c0_65] {strides = array<i32: 2, 1>} : memref<64x128xf32, #tpu.memory_space<vmem>>, vector<32x128xf32>
    %112 = arith.maximumf %110, %111 : vector<32x128xf32>
    %cst_66 = arith.constant 0.000000e+00 : f32
    %113 = vector.broadcast %cst_66 : f32 to vector<32x128xf32>
    %114 = arith.maximumf %112, %113 : vector<32x128xf32>
    %115 = vector.extract_strided_slice %114 {offsets = [0, 0], sizes = [1, 128], strides = [1, 1]} : vector<32x128xf32> to vector<1x128xf32>
    %116 = vector.extract_strided_slice %114 {offsets = [16, 0], sizes = [1, 128], strides = [1, 1]} : vector<32x128xf32> to vector<1x128xf32>
    %117 = tpu.concatenate %115, %116 in 0 : vector<1x128xf32>, vector<1x128xf32> -> vector<2x128xf32>
    %118 = vector.extract_strided_slice %114 {offsets = [1, 0], sizes = [1, 128], strides = [1, 1]} : vector<32x128xf32> to vector<1x128xf32>
    %119 = vector.extract_strided_slice %114 {offsets = [17, 0], sizes = [1, 128], strides = [1, 1]} : vector<32x128xf32> to vector<1x128xf32>
    %120 = tpu.concatenate %118, %119 in 0 : vector<1x128xf32>, vector<1x128xf32> -> vector<2x128xf32>
    %121 = vector.extract_strided_slice %114 {offsets = [2, 0], sizes = [1, 128], strides = [1, 1]} : vector<32x128xf32> to vector<1x128xf32>
    %122 = vector.extract_strided_slice %114 {offsets = [18, 0], sizes = [1, 128], strides = [1, 1]} : vector<32x128xf32> to vector<1x128xf32>
    %123 = tpu.concatenate %121, %122 in 0 : vector<1x128xf32>, vector<1x128xf32> -> vector<2x128xf32>
    %124 = vector.extract_strided_slice %114 {offsets = [3, 0], sizes = [1, 128], strides = [1, 1]} : vector<32x128xf32> to vector<1x128xf32>
    %125 = vector.extract_strided_slice %114 {offsets = [19, 0], sizes = [1, 128], strides = [1, 1]} : vector<32x128xf32> to vector<1x128xf32>
    %126 = tpu.concatenate %124, %125 in 0 : vector<1x128xf32>, vector<1x128xf32> -> vector<2x128xf32>
    %127 = vector.extract_strided_slice %114 {offsets = [4, 0], sizes = [1, 128], strides = [1, 1]} : vector<32x128xf32> to vector<1x128xf32>
    %128 = vector.extract_strided_slice %114 {offsets = [20, 0], sizes = [1, 128], strides = [1, 1]} : vector<32x128xf32> to vector<1x128xf32>
    %129 = tpu.concatenate %127, %128 in 0 : vector<1x128xf32>, vector<1x128xf32> -> vector<2x128xf32>
    %130 = vector.extract_strided_slice %114 {offsets = [5, 0], sizes = [1, 128], strides = [1, 1]} : vector<32x128xf32> to vector<1x128xf32>
    %131 = vector.extract_strided_slice %114 {offsets = [21, 0], sizes = [1, 128], strides = [1, 1]} : vector<32x128xf32> to vector<1x128xf32>
    %132 = tpu.concatenate %130, %131 in 0 : vector<1x128xf32>, vector<1x128xf32> -> vector<2x128xf32>
    %133 = vector.extract_strided_slice %114 {offsets = [6, 0], sizes = [1, 128], strides = [1, 1]} : vector<32x128xf32> to vector<1x128xf32>
    %134 = vector.extract_strided_slice %114 {offsets = [22, 0], sizes = [1, 128], strides = [1, 1]} : vector<32x128xf32> to vector<1x128xf32>
    %135 = tpu.concatenate %133, %134 in 0 : vector<1x128xf32>, vector<1x128xf32> -> vector<2x128xf32>
    %136 = vector.extract_strided_slice %114 {offsets = [7, 0], sizes = [1, 128], strides = [1, 1]} : vector<32x128xf32> to vector<1x128xf32>
    %137 = vector.extract_strided_slice %114 {offsets = [23, 0], sizes = [1, 128], strides = [1, 1]} : vector<32x128xf32> to vector<1x128xf32>
    %138 = tpu.concatenate %136, %137 in 0 : vector<1x128xf32>, vector<1x128xf32> -> vector<2x128xf32>
    %139 = vector.extract_strided_slice %114 {offsets = [8, 0], sizes = [1, 128], strides = [1, 1]} : vector<32x128xf32> to vector<1x128xf32>
    %140 = vector.extract_strided_slice %114 {offsets = [24, 0], sizes = [1, 128], strides = [1, 1]} : vector<32x128xf32> to vector<1x128xf32>
    %141 = tpu.concatenate %139, %140 in 0 : vector<1x128xf32>, vector<1x128xf32> -> vector<2x128xf32>
    %142 = vector.extract_strided_slice %114 {offsets = [9, 0], sizes = [1, 128], strides = [1, 1]} : vector<32x128xf32> to vector<1x128xf32>
    %143 = vector.extract_strided_slice %114 {offsets = [25, 0], sizes = [1, 128], strides = [1, 1]} : vector<32x128xf32> to vector<1x128xf32>
    %144 = tpu.concatenate %142, %143 in 0 : vector<1x128xf32>, vector<1x128xf32> -> vector<2x128xf32>
    %145 = vector.extract_strided_slice %114 {offsets = [10, 0], sizes = [1, 128], strides = [1, 1]} : vector<32x128xf32> to vector<1x128xf32>
    %146 = vector.extract_strided_slice %114 {offsets = [26, 0], sizes = [1, 128], strides = [1, 1]} : vector<32x128xf32> to vector<1x128xf32>
    %147 = tpu.concatenate %145, %146 in 0 : vector<1x128xf32>, vector<1x128xf32> -> vector<2x128xf32>
    %148 = vector.extract_strided_slice %114 {offsets = [11, 0], sizes = [1, 128], strides = [1, 1]} : vector<32x128xf32> to vector<1x128xf32>
    %149 = vector.extract_strided_slice %114 {offsets = [27, 0], sizes = [1, 128], strides = [1, 1]} : vector<32x128xf32> to vector<1x128xf32>
    %150 = tpu.concatenate %148, %149 in 0 : vector<1x128xf32>, vector<1x128xf32> -> vector<2x128xf32>
    %151 = vector.extract_strided_slice %114 {offsets = [12, 0], sizes = [1, 128], strides = [1, 1]} : vector<32x128xf32> to vector<1x128xf32>
    %152 = vector.extract_strided_slice %114 {offsets = [28, 0], sizes = [1, 128], strides = [1, 1]} : vector<32x128xf32> to vector<1x128xf32>
    %153 = tpu.concatenate %151, %152 in 0 : vector<1x128xf32>, vector<1x128xf32> -> vector<2x128xf32>
    %154 = vector.extract_strided_slice %114 {offsets = [13, 0], sizes = [1, 128], strides = [1, 1]} : vector<32x128xf32> to vector<1x128xf32>
    %155 = vector.extract_strided_slice %114 {offsets = [29, 0], sizes = [1, 128], strides = [1, 1]} : vector<32x128xf32> to vector<1x128xf32>
    %156 = tpu.concatenate %154, %155 in 0 : vector<1x128xf32>, vector<1x128xf32> -> vector<2x128xf32>
    %157 = vector.extract_strided_slice %114 {offsets = [14, 0], sizes = [1, 128], strides = [1, 1]} : vector<32x128xf32> to vector<1x128xf32>
    %158 = vector.extract_strided_slice %114 {offsets = [30, 0], sizes = [1, 128], strides = [1, 1]} : vector<32x128xf32> to vector<1x128xf32>
    %159 = tpu.concatenate %157, %158 in 0 : vector<1x128xf32>, vector<1x128xf32> -> vector<2x128xf32>
    %160 = vector.extract_strided_slice %114 {offsets = [15, 0], sizes = [1, 128], strides = [1, 1]} : vector<32x128xf32> to vector<1x128xf32>
    %161 = vector.extract_strided_slice %114 {offsets = [31, 0], sizes = [1, 128], strides = [1, 1]} : vector<32x128xf32> to vector<1x128xf32>
    %162 = tpu.concatenate %160, %161 in 0 : vector<1x128xf32>, vector<1x128xf32> -> vector<2x128xf32>
    %163 = tpu.concatenate %117, %120, %123, %126, %129, %132, %135, %138, %141, %144, %147, %150, %153, %156, %159, %162 in 1 : vector<2x128xf32>, vector<2x128xf32>, vector<2x128xf32>, vector<2x128xf32>, vector<2x128xf32>, vector<2x128xf32>, vector<2x128xf32>, vector<2x128xf32>, vector<2x128xf32>, vector<2x128xf32>, vector<2x128xf32>, vector<2x128xf32>, vector<2x128xf32>, vector<2x128xf32>, vector<2x128xf32>, vector<2x128xf32> -> vector<2x2048xf32>
    %164 = arith.truncf %163 : vector<2x2048xf32> to vector<2x2048xbf16>
    %c0_67 = arith.constant 0 : index
    %c0_68 = arith.constant 0 : index
    %165 = vector.load %arg8[%c0_67, %c0_68] : memref<2048x64xbf16, #tpu.memory_space<vmem>>, vector<2048x64xbf16>
    %cst_69 = arith.constant dense<0.000000e+00> : vector<2x64xf32>
    %166 = tpu.matmul %164, %165, %cst_69 {dimension_numbers = #tpu.dot_dimension_numbers<[1], [0], [0], [1], [0, 0, 1, 1], [], []>} : vector<2x2048xbf16>, vector<2048x64xbf16>, vector<2x64xf32> -> vector<2x64xf32>
    %c0_70 = arith.constant 0 : index
    %c0_71 = arith.constant 0 : index
    %167 = vector.load %arg9[%c0_70, %c0_71] : memref<1x64xf32, #tpu.memory_space<vmem>>, vector<1x64xf32>
    %168 = vector.broadcast %167 : vector<1x64xf32> to vector<2x64xf32>
    %169 = arith.addf %166, %168 : vector<2x64xf32>
    %cst_72 = arith.constant 0.000000e+00 : f32
    %170 = vector.broadcast %cst_72 : f32 to vector<2x64xf32>
    %171 = arith.maximumf %169, %170 : vector<2x64xf32>
    %172 = arith.truncf %171 : vector<2x64xf32> to vector<2x64xbf16>
    %c0_73 = arith.constant 0 : index
    %c0_74 = arith.constant 0 : index
    %173 = vector.load %arg10[%c0_73, %c0_74] : memref<64x128xbf16, #tpu.memory_space<vmem>>, vector<64x128xbf16>
    %cst_75 = arith.constant dense<0.000000e+00> : vector<2x128xf32>
    %174 = tpu.matmul %172, %173, %cst_75 {dimension_numbers = #tpu.dot_dimension_numbers<[1], [0], [0], [1], [0, 0, 1, 1], [], []>} : vector<2x64xbf16>, vector<64x128xbf16>, vector<2x128xf32> -> vector<2x128xf32>
    %c0_76 = arith.constant 0 : index
    %c0_77 = arith.constant 0 : index
    %175 = vector.load %arg11[%c0_76, %c0_77] : memref<1x128xf32, #tpu.memory_space<vmem>>, vector<1x128xf32>
    %176 = vector.broadcast %175 : vector<1x128xf32> to vector<2x128xf32>
    %177 = arith.addf %174, %176 : vector<2x128xf32>
    %c0_78 = arith.constant 0 : index
    %c0_79 = arith.constant 0 : index
    %c0_80 = arith.constant 0 : index
    %178 = vector.load %arg12[%c0_78, %c0_79, %c0_80] : memref<1x2x128xf32, #tpu.memory_space<vmem>>, vector<1x2x128xf32>
    %179 = vector.shape_cast %178 : vector<1x2x128xf32> to vector<2x128xf32>
    %180 = vector.shape_cast %177 : vector<2x128xf32> to vector<1x2x128xf32>
    tpu.vector_store %arg12[%c0_78, %c0_79, %c0_80], %180 {strides = array<i32>} : memref<1x2x128xf32, #tpu.memory_space<vmem>>, vector<1x2x128xf32>,
    return
  }
  func.func @transform_0(%arg0: i32) -> (i32, i32) {
    %c0_i32 = arith.constant 0 : i32
    %c0_i32_0 = arith.constant 0 : i32
    return %arg0, %c0_i32 : i32, i32
  }
  func.func @transform_1(%arg0: i32) -> (i32, i32, i32) {
    %c0_i32 = arith.constant 0 : i32
    %c0_i32_0 = arith.constant 0 : i32
    %c0_i32_1 = arith.constant 0 : i32
    %c0_i32_2 = arith.constant 0 : i32
    return %c0_i32, %c0_i32_0, %c0_i32_1 : i32, i32, i32
  }
  func.func @transform_2(%arg0: i32) -> (i32, i32) {
    %c0_i32 = arith.constant 0 : i32
    %c0_i32_0 = arith.constant 0 : i32
    %c0_i32_1 = arith.constant 0 : i32
    return %c0_i32, %c0_i32_0 : i32, i32
  }
  func.func @transform_3(%arg0: i32) -> (i32, i32, i32) {
    %c0_i32 = arith.constant 0 : i32
    %c0_i32_0 = arith.constant 0 : i32
    %c0_i32_1 = arith.constant 0 : i32
    %c0_i32_2 = arith.constant 0 : i32
    return %c0_i32, %c0_i32_0, %c0_i32_1 : i32, i32, i32
  }
  func.func @transform_4(%arg0: i32) -> (i32, i32) {
    %c0_i32 = arith.constant 0 : i32
    %c0_i32_0 = arith.constant 0 : i32
    %c0_i32_1 = arith.constant 0 : i32
    return %c0_i32, %c0_i32_0 : i32, i32
  }
  func.func @transform_5(%arg0: i32) -> (i32, i32, i32) {
    %c0_i32 = arith.constant 0 : i32
    %c0_i32_0 = arith.constant 0 : i32
    %c0_i32_1 = arith.constant 0 : i32
    %c0_i32_2 = arith.constant 0 : i32
    return %c0_i32, %c0_i32_0, %c0_i32_1 : i32, i32, i32
  }
  func.func @transform_6(%arg0: i32) -> (i32, i32) {
    %c0_i32 = arith.constant 0 : i32
    %c0_i32_0 = arith.constant 0 : i32
    %c0_i32_1 = arith.constant 0 : i32
    return %c0_i32, %c0_i32_0 : i32, i32
  }
  func.func @transform_7(%arg0: i32) -> (i32, i32) {
    %c0_i32 = arith.constant 0 : i32
    %c0_i32_0 = arith.constant 0 : i32
    %c0_i32_1 = arith.constant 0 : i32
    return %c0_i32, %c0_i32_0 : i32, i32
  }
  func.func @transform_8(%arg0: i32) -> (i32, i32) {
    %c0_i32 = arith.constant 0 : i32
    %c0_i32_0 = arith.constant 0 : i32
    %c0_i32_1 = arith.constant 0 : i32
    return %c0_i32, %c0_i32_0 : i32, i32
  }
  func.func @transform_9(%arg0: i32) -> (i32, i32) {
    %c0_i32 = arith.constant 0 : i32
    %c0_i32_0 = arith.constant 0 : i32
    %c0_i32_1 = arith.constant 0 : i32
    return %c0_i32, %c0_i32_0 : i32, i32
  }
  func.func @transform_10(%arg0: i32) -> (i32, i32) {
    %c0_i32 = arith.constant 0 : i32
    %c0_i32_0 = arith.constant 0 : i32
    %c0_i32_1 = arith.constant 0 : i32
    return %c0_i32, %c0_i32_0 : i32, i32
  }
  func.func @transform_11(%arg0: i32) -> (i32, i32, i32) {
    %c0_i32 = arith.constant 0 : i32
    %c0_i32_0 = arith.constant 0 : i32
    %c0_i32_1 = arith.constant 0 : i32
    return %arg0, %c0_i32, %c0_i32_0 : i32, i32, i32
  }
}

</mosaic_0001>

<bundles_post_ra>
// kernel: forward.1
= control target key start
LH: loop header
LB: loop body
LE: loop exit
PB: predicated region body
PF: predicated region fallthrough
CT: control target
= control target key end

     0   :  { %v5878_v2 = vmov 0   ;;  %vm88_vm0 = vcmask 1040384   ;;  %vm327_vm1 = vcmask 130048   ;;  %vm201_vm2 = vcmask 1046528   ;;  %s7633_s0 = inlined_call_operand.vmem [shape: f32[256,16], index: 0, kind: input, shape index: {}]   ;;  %s7634_s1 = inlined_call_operand.vmem [shape: bf16[3,16,256], index: 1, kind: input, shape index: {}]   ;;  %s7635_s2 = inlined_call_operand.vmem [shape: f32[1,256], index: 2, kind: input, shape index: {}]   ;;  %s7636_s3 = inlined_call_operand.vmem [shape: bf16[3,128,256], index: 3, kind: input, shape index: {}]   ;;  %s7637_s4 = inlined_call_operand.vmem [shape: f32[1,256], index: 4, kind: input, shape index: {}]   ;;  %s7638_s5 = inlined_call_operand.vmem [shape: bf16[3,128,256], index: 5, kind: input, shape index: {}]   ;;  %s7639_s6 = inlined_call_operand.vmem [shape: f32[1,256], index: 6, kind: input, shape index: {}]   ;;  %s7640_s7 = inlined_call_operand.vmem [shape: bf16[2048,64], index: 7, kind: input, shape index: {}]   ;;  %s7641_s8 = inlined_call_operand.vmem [shape: f32[1,64], index: 8, kind: input, shape index: {}]   ;;  %s7642_s9 = inlined_call_operand.vmem [shape: bf16[64,128], index: 9, kind: input, shape index: {}]   ;;  %s7643_s10 = inlined_call_operand.vmem [shape: f32[1,128], index: 10, kind: input, shape index: {}]   ;;  %s7644_s11 = inlined_call_operand.hbm [shape: f32[1,2,128], index: 11, kind: output, shape index: {}]  }
   0x1   :  { %v5557_v0 = vld [vmem:[%s7634_s1 + $0x4] ss:$8 sps:$4 sm:$0xff]   ;;  %v5559_v1 = vld [vmem:[%s7634_s1] ss:$8 sps:$4 sm:$0xff]   ;;  %408 = vmatprep.mubr.bf16.mxu0 %v5878_v2  ;;  %1720 = vmatprep.mubr.bf16.mxu1 %v5878_v2  ;;  %v5562_v8 = vld [vmem:[%s7634_s1 + $0x14] ss:$8 sps:$4 sm:$0xff]  }
   0x2   :  { %v5953_v3 = vld [vmem:[%s7633_s0] sm:$0xff]  ;;  %v5958_v4 = vld [vmem:[%s7633_s0 + $0x8] sm:$0xff]  ;;  %376 = vmatprep.subr.bf16.mxu0 %v5557_v0  ;;  %v5971_v9 = vld [vmem:[%s7633_s0 + $0x10] sm:$0xff] }
   0x3   :  { %v89_v5 = vrot.slane %v5953_v3, 7  ;;  %v90_v6 = vrot.slane %v5958_v4, 7  ;;  %377 = vmatpush1.bf16.msra.mxu0 %v5559_v1  ;;  %v5560_v12 = vld [vmem:[%s7634_s1 + $0x10] ss:$8 sps:$4 sm:$0xff]   ;;  %v92_v14 = vrot.slane %v5971_v9, 7  ;;  %v5989_v19 = vld [vmem:[%s7633_s0 + $0x20] sm:$0xff] }
   0x4   :  { %v43_v13 = vld [vmem:[%s7633_s0 + $0x18] sm:$0xff]  ;;  %721 = vmatprep.subr.bf16.mxu0 %v5562_v8  ;;  %v5994_v20 = vld [vmem:[%s7633_s0 + $0x28] sm:$0xff]  ;;  %v96_v22 = vrot.slane %v5989_v19, 7  ;;  %v6005_v25 = vld [vmem:[%s7633_s0 + $0x30] sm:$0xff]  ;;  %v202_v57 = vrot.slane %v5953_v3, 1  ;;  %v203_v58 = vrot.slane %v5958_v4, 1 }
   0x5   :  { %v91_v10 = vsel %vm88_vm0, %v89_v5, %v90_v6  ;;  %v199_v11 = vsel %vm88_vm0, 0.0, %v89_v5  ;;  %v94_v16 = vrot.slane %v43_v13, 7  ;;  %v93_v17 = vsel %vm88_vm0, %v90_v6, %v92_v14  ;;  %v5565_v24 = vld [vmem:[%s7634_s1 + $0x24] ss:$8 sps:$4 sm:$0xff]   ;;  %v6013_v28 = vld [vmem:[%s7633_s0 + $0x38] sm:$0xff]  ;;  %v6037_v39 = vld [vmem:[%s7633_s0 + $0x50] sm:$0xff] }
   0x6   :  { %v299_v15 = vpack.c.bf16 %v91_v10, %v199_v11  ;;  %v98_v23 = vrot.slane %v5994_v20, 7  ;;  %v100_v30 = vrot.slane %v6005_v25, 7  ;;  %v102_v31 = vrot.slane %v6013_v28, 7  ;;  %v6021_v32 = vld [vmem:[%s7633_s0 + $0x40] sm:$0xff]  ;;  %v6026_v33 = vld [vmem:[%s7633_s0 + $0x48] sm:$0xff]  ;;  %v6042_v40 = vld [vmem:[%s7633_s0 + $0x58] sm:$0xff] }
   0x7   :  { %v95_v18 = vsel %vm88_vm0, %v92_v14, %v94_v16  ;;  %v97_v26 = vsel %vm88_vm0, %v94_v16, %v96_v22  ;;  %v104_v37 = vrot.slane %v6021_v32, 7  ;;  %v106_v38 = vrot.slane %v6026_v33, 7  ;;  %v6050_v43 = vld [vmem:[%s7633_s0 + $0x80] sm:$0xff]  ;;  %v6062_v48 = vld [vmem:[%s7633_s0 + $0x68] sm:$0xff]  ;;  %v6067_v49 = vld [vmem:[%s7633_s0 + $0x70] sm:$0xff] }
   0x8   :  { %4644 = vmatmul.mubr.msk.bf16.vlgmr.msra.gmra.mrb[0].mxu0 %vm327_vm1, %v299_v15  ;;  %v300_v21 = vpack.c.bf16 %v95_v18, %v93_v17  ;;  %v99_v27 = vsel %vm88_vm0, %v96_v22, %v98_v23  ;;  %v101_v34 = vsel %vm88_vm0, %v98_v23, %v100_v30  ;;  %v103_v35 = vsel %vm88_vm0, %v100_v30, %v102_v31  ;;  %v6055_v45 = vld [vmem:[%s7633_s0 + $0x60] sm:$0xff]  ;;  %v6072_v50 = vld [vmem:[%s7633_s0 + $0x78] sm:$0xff]  ;;  %v6077_v51 = vld [vmem:[%s7633_s0 + $0x88] sm:$0xff] }
   0x9   :  { %722 = vmatpush1.bf16.msra.mxu0 %v5560_v12  ;;  %418 = vmatprep.mubr.bf16.mxu0 %v5878_v2  ;;  %v301_v29 = vpack.c.bf16 %v99_v27, %v97_v26  ;;  %v302_v36 = vpack.c.bf16 %v103_v35, %v101_v34  ;;  %v105_v41 = vsel %vm88_vm0, %v102_v31, %v104_v37  ;;  %v108_v46 = vrot.slane %v6037_v39, 7  ;;  %v6082_v52 = vld [vmem:[%s7633_s0 + $0x90] sm:$0xff]  ;;  %v6088_v54 = vld [vmem:[%s7633_s0 + $0x98] sm:$0xff]  ;;  %v6093_v55 = vld [vmem:[%s7633_s0 + $0xa0] sm:$0xff] }
   0xa   :  { %1055 = vmatprep.subr.bf16.mxu0 %v5565_v24  ;;  %v107_v42 = vsel %vm88_vm0, %v104_v37, %v106_v38  ;;  %v110_v47 = vrot.slane %v6042_v40, 7  ;;  %v152_v53 = vrot.slane %v6050_v43, 7  ;;  %v6098_v56 = vld [vmem:[%s7633_s0 + $0xa8] sm:$0xff]  ;;  %v6106_v59 = vld [vmem:[%s7633_s0 + $0xb0] sm:$0xff]  ;;  %v6111_v60 = vld [vmem:[%s7633_s0 + $0xb8] sm:$0xff]  ;;  %v112_v1 = vrot.slane %v6055_v45, 7 }
   0xb   :  { %v303_v44 = vpack.c.bf16 %v107_v42, %v105_v41  ;;  %v6116_v61 = vld [vmem:[%s7633_s0 + $0xc0] sm:$0xff]  ;;  %v109_v63 = vsel %vm88_vm0, %v106_v38, %v108_v46  ;;  %v6126_v5 = vld [vmem:[%s7633_s0 + $0xc8] sm:$0xff]  ;;  %v6131_v6 = vld [vmem:[%s7633_s0 + $0xd0] sm:$0xff]  ;;  %v114_v10 = vrot.slane %v6062_v48, 7  ;;  %v116_v11 = vrot.slane %v6067_v49, 7 }
   0xc   :  { %v111_v0 = vsel %vm88_vm0, %v108_v46, %v110_v47  ;;  %v6136_v8 = vld [vmem:[%s7633_s0 + $0xd8] sm:$0xff]  ;;  %v118_v12 = vrot.slane %v6072_v50, 7  ;;  %v6144_v13 = vld [vmem:[%s7633_s0 + $0xe0] sm:$0xff]  ;;  %v6149_v14 = vld [vmem:[%s7633_s0 + $0xe8] sm:$0xff]  ;;  %v153_v16 = vrot.slane %v6077_v51, 7  ;;  %v200_v17 = vsel %vm88_vm0, 0.0, %v152_v53 }
   0xd   :  { %v6154_v15 = vld [vmem:[%s7633_s0 + $0xf0] sm:$0xff]  ;;  %v155_v18 = vrot.slane %v6082_v52, 7  ;;  %v304_v22 = vpack.c.bf16 %v111_v0, %v109_v63  ;;  %v157_v23 = vrot.slane %v6088_v54, 7  ;;  %v159_v24 = vrot.slane %v6093_v55, 7 }
   0xe   :  { %v161_v26 = vrot.slane %v6098_v56, 7  ;;  %v163_v27 = vrot.slane %v6106_v59, 7  ;;  %v167_v30 = vrot.slane %v6116_v61, 7  ;;  %v169_v31 = vrot.slane %v6126_v5, 7 }
   0xf   :  { %v171_v34 = vrot.slane %v6131_v6, 7  ;;  %v173_v35 = vrot.slane %v6136_v8, 7  ;;  %v177_v37 = vrot.slane %v6149_v14, 7  ;;  %v179_v38 = vrot.slane %v6154_v15, 7 }
  0x10   :  { %4645 = vmatmul.mubr.msk.bf16.gmra.mrb[4].mxu0 %vm327_vm1, %v300_v21  ;;  %v6162_v21 = vld [vmem:[%s7633_s0 + $0xf8] sm:$0xff]  ;;  %v113_v42 = vsel %vm88_vm0, %v110_v47, %v112_v1  ;;  %v117_v63 = vsel %vm88_vm0, %v114_v10, %v116_v11  ;;  %v119_v0 = vsel %vm88_vm0, %v116_v11, %v118_v12  ;;  %v156_v47 = vsel %vm88_vm0, %v153_v16, %v155_v18 }
  0x11   :  { %428 = vmatprep.mubr.bf16.mxu0 %v5878_v2  ;;  %v181_v41 = vrot.slane %v6162_v21, 7  ;;  %v306_v7 = vpack.c.bf16 %v119_v0, %v117_v63 }
  0x18   :  { %4646 = vmatmul.mubr.msk.bf16.gmra.mrb[8].mxu0 %vm327_vm1, %v301_v29  ;;  %v165_v29 = vrot.slane %v6111_v60, 7 }
  0x19   :  { %438 = vmatprep.mubr.bf16.mxu0 %v5878_v2 }
  0x20   :  { %4647 = vmatmul.mubr.msk.bf16.gmra.mrb[12].mxu0 %vm327_vm1, %v302_v36  ;;  %v175_v36 = vrot.slane %v6144_v13, 7 }
  0x21   :  { %448 = vmatprep.mubr.bf16.mxu0 %v5878_v2 }
  0x28   :  { %4648 = vmatmul.mubr.msk.bf16.gmra.mrb[16].mxu0 %vm327_vm1, %v303_v44  ;;  %v115_v44 = vsel %vm88_vm0, %v112_v1, %v114_v10  ;;  %v158_v1 = vsel %vm88_vm0, %v155_v18, %v157_v23  ;;  %v162_v10 = vsel %vm88_vm0, %v159_v24, %v161_v26 }
  0x29   :  { %458 = vmatprep.mubr.bf16.mxu0 %v5878_v2  ;;  %v305_v46 = vpack.c.bf16 %v115_v44, %v113_v42  ;;  %v308_v42 = vpack.c.bf16 %v158_v1, %v156_v47 }
  0x30   :  { %4649 = vmatmul.mubr.msk.bf16.gmra.mrb[20].mxu0 %vm327_vm1, %v304_v22  ;;  %v154_v22 = vsel %vm88_vm0, %v152_v53, %v153_v16  ;;  %v164_v53 = vsel %vm88_vm0, %v161_v26, %v163_v27  ;;  %v168_v16 = vsel %vm88_vm0, %v165_v29, %v167_v30 }
  0x31   :  { %468 = vmatprep.mubr.bf16.mxu0 %v5878_v2  ;;  %v307_v62 = vpack.c.bf16 %v154_v22, %v200_v17  ;;  %v170_v17 = vsel %vm88_vm0, %v167_v30, %v169_v31  ;;  %v180_v30 = vsel %vm88_vm0, %v177_v37, %v179_v38 }
  0x32   :  { %v311_v18 = vpack.c.bf16 %v170_v17, %v168_v16 }
  0x38   :  { %4650 = vmatmul.mubr.msk.bf16.gmra.mrb[24].mxu0 %vm327_vm1, %v305_v46 }
  0x39   :  { %478 = vmatprep.mubr.bf16.mxu0 %v5878_v2 }
  0x40   :  { %4651 = vmatmul.mubr.msk.bf16.gmra.mrb[28].mxu0 %vm327_vm1, %v306_v7  ;;  %v160_v7 = vsel %vm88_vm0, %v157_v23, %v159_v24  ;;  %v172_v23 = vsel %vm88_vm0, %v169_v31, %v171_v34  ;;  %v174_v24 = vsel %vm88_vm0, %v171_v34, %v173_v35  ;;  %v182_v31 = vsel %vm88_vm0, %v179_v38, %v181_v41 }
  0x41   :  { %488 = vmatprep.mubr.bf16.mxu0 %v5878_v2  ;;  %v309_v11 = vpack.c.bf16 %v162_v10, %v160_v7  ;;  %v312_v26 = vpack.c.bf16 %v174_v24, %v172_v23  ;;  %v314_v46 = vpack.c.bf16 %v182_v31, %v180_v30  ;;  %v204_v34 = vsel %vm201_vm2, %v202_v57, %v203_v58 }
  0x42   :  { %v7646_v41 = vpack.c.bf16 %v5958_v4, %v5953_v3 }
  0x48   :  { %4652 = vmatmul.mubr.msk.bf16.gmra.mrb[32].mxu0 %vm327_vm1, %v307_v62  ;;  %v166_v62 = vsel %vm88_vm0, %v163_v27, %v165_v29  ;;  %v176_v27 = vsel %vm88_vm0, %v173_v35, %v175_v36  ;;  %v178_v29 = vsel %vm88_vm0, %v175_v36, %v177_v37  ;;  %v7645_v35 = vrot.slane %v5971_v9, 1  ;;  %v5563_v37 = vld [vmem:[%s7634_s1 + $0x20] ss:$8 sps:$4 sm:$0xff]  }
  0x49   :  { %498 = vmatprep.mubr.bf16.mxu0 %v5878_v2  ;;  %v310_v12 = vpack.c.bf16 %v166_v62, %v164_v53  ;;  %v313_v44 = vpack.c.bf16 %v178_v29, %v176_v27 }
  0x4a   :  { %v206_v36 = vsel %vm201_vm2, %v203_v58, %v7645_v35 }
  0x4b   :  { %v978_v38 = vpack.c.bf16 %v206_v36, %v204_v34 }
  0x50   :  { %4653 = vmatmul.mubr.msk.bf16.gmra.mrb[36].mxu0 %vm327_vm1, %v308_v42 }
  0x51   :  { %508 = vmatprep.mubr.bf16.mxu0 %v5878_v2 }
  0x58   :  { %4654 = vmatmul.mubr.msk.bf16.gmra.mrb[40].mxu0 %vm327_vm1, %v309_v11 }
  0x59   :  { %518 = vmatprep.mubr.bf16.mxu0 %v5878_v2 }
  0x60   :  { %4655 = vmatmul.mubr.msk.bf16.gmra.mrb[44].mxu0 %vm327_vm1, %v310_v12 }
  0x61   :  { %528 = vmatprep.mubr.bf16.mxu0 %v5878_v2 }
  0x68   :  { %4656 = vmatmul.mubr.msk.bf16.gmra.mrb[48].mxu0 %vm327_vm1, %v311_v18 }
  0x69   :  { %538 = vmatprep.mubr.bf16.mxu0 %v5878_v2 }
  0x70   :  { %4657 = vmatmul.mubr.msk.bf16.gmra.mrb[52].mxu0 %vm327_vm1, %v312_v26 }
  0x71   :  { %548 = vmatprep.mubr.bf16.mxu0 %v5878_v2 }
  0x78   :  { %4658 = vmatmul.mubr.msk.bf16.gmra.mrb[56].mxu0 %vm327_vm1, %v313_v44 }
  0x79   :  { %558 = vmatprep.mubr.bf16.mxu0 %v5878_v2 }
  0x80   :  { %4659 = vmatmul.mubr.msk.bf16.gmra.mrb[60].mxu0 %vm327_vm1, %v314_v46 }
  0x81   :  { %753 = vmatprep.mubr.bf16.mxu0 %v5878_v2 }
  0x88   :  { %4664 = vmatmul.mubr.msk.bf16.vlgmr.msra.gmra.mrb[0].mxu0 %vm327_vm1, %v7646_v41 }
  0x89   :  { %16 = vsyncpa [#allocation6], 0  ;;  %1056 = vmatpush1.bf16.msra.mxu0 %v5563_v37  ;;  %763 = vmatprep.mubr.bf16.mxu0 %v5878_v2  ;;  %v5842_v57 = vld [vmem:[%s7633_s0 + $0x10] sm:$0xff]  ;;  %v5843_v58 = vld [vmem:[%s7633_s0 + $0x18] sm:$0xff]  ;;  %v646_v3 = vpack.c.bf16 %v5994_v20, %v5989_v19  ;;  %v647_v4 = vpack.c.bf16 %v6013_v28, %v6005_v25  ;;  %v648_v0 = vpack.c.bf16 %v6026_v33, %v6021_v32  ;;  %v223_v41 = vrot.slane %v6042_v40, 1  ;;  %s5882_s1 = smov [#allocation5]  }
  0x8a   :  { %v645_v63 = vpack.c.bf16 %v5843_v58, %v5842_v57  ;;  %v649_v19 = vpack.c.bf16 %v6042_v40, %v6037_v39  ;;  %v650_v20 = vpack.c.bf16 %v6062_v48, %v6055_v45  ;;  %v651_v25 = vpack.c.bf16 %v6072_v50, %v6067_v49  ;;  %v5844_v10 = vld [vmem:[%s7633_s0 + $0x20] sm:$0xff]  ;;  %v5845_v62 = vld [vmem:[%s7633_s0 + $0x28] sm:$0xff]  ;;  %v5846_v16 = vld [vmem:[%s7633_s0 + $0x30] sm:$0xff]  ;;  %s4634_s21 = sshll.u32 %s5882_s1, 4  ;;  %s4635_s21 = int_to_ptr.vmem [resolvable:$true] %s4634_s21 }
  0x8b   :  { %v652_v28 = vpack.c.bf16 %v6077_v51, %v6050_v43  ;;  %v653_v32 = vpack.c.bf16 %v6088_v54, %v6082_v52  ;;  %v654_v33 = vpack.c.bf16 %v6098_v56, %v6093_v55  ;;  %v655_v43 = vpack.c.bf16 %v6111_v60, %v6106_v59  ;;  %v5847_v24 = vld [vmem:[%s7633_s0 + $0x38] sm:$0xff]  ;;  %v5848_v27 = vld [vmem:[%s7633_s0 + $0x40] sm:$0xff]  ;;  %v5849_v46 = vld [vmem:[%s7633_s0 + $0x48] sm:$0xff]  ;;  %p5859_p1 = scmp.lt.s32.totalorder %s4635_s21, %s4635_s21 }
  0x8c   :  { %v656_v22 = vpack.c.bf16 %v6126_v5, %v6116_v61  ;;  %v657_v47 = vpack.c.bf16 %v6136_v8, %v6131_v6  ;;  %v658_v1 = vpack.c.bf16 %v6149_v14, %v6144_v13  ;;  %v659_v42 = vpack.c.bf16 %v6162_v21, %v6154_v15  ;;  %vm4716_vm3 = vmneg %vm88_vm0 }
  0x8d   :  { %v207_v7 = vrot.slane %v5843_v58, 1  ;;  %v209_v11 = vrot.slane %v5844_v10, 1  ;;  %v7647_v14 = vmov %v7645_v35  ;;  %v211_v12 = vrot.slane %v5845_v62, 1 }
  0x8e   :  { %v213_v17 = vrot.slane %v5846_v16, 1  ;;  %v215_v26 = vrot.slane %v5847_v24, 1  ;;  %v217_v29 = vrot.slane %v5848_v27, 1  ;;  %v219_v34 = vrot.slane %v5849_v46, 1  ;;  %v5571_v16 = vld [vmem:[%s7636_s3 + $0x10] ss:$8 sps:$4 sm:$0xff]  }
  0x8f   :  { %v208_v53 = vsel %vm201_vm2, %v7647_v14, %v207_v7  ;;  %v210_v15 = vsel %vm201_vm2, %v207_v7, %v209_v11  ;;  %v212_v9 = vsel %vm201_vm2, %v209_v11, %v211_v12  ;;  %v221_v35 = vrot.slane %v6037_v39, 1  ;;  %v5577_v27 = vld [vmem:[%s7636_s3 + $0x30] ss:$8 sps:$4 sm:$0xff]  }
  0x90   :  { %4665 = vmatmul.mubr.msk.bf16.gmra.mrb[4].mxu0 %vm327_vm1, %v645_v63  ;;  %v979_v21 = vpack.c.bf16 %v210_v15, %v208_v53  ;;  %v214_v18 = vsel %vm201_vm2, %v211_v12, %v213_v17  ;;  %v216_v44 = vsel %vm201_vm2, %v213_v17, %v215_v26  ;;  %v218_v30 = vsel %vm201_vm2, %v215_v26, %v217_v29  ;;  %v5566_v15 = vld [vmem:[%s7636_s3 + $0x4] ss:$8 sps:$4 sm:$0xff]   ;;  %v5569_v12 = vld [vmem:[%s7636_s3 + $0x14] ss:$8 sps:$4 sm:$0xff]  }
  0x91   :  { %773 = vmatprep.mubr.bf16.mxu0 %v5878_v2  ;;  %v980_v23 = vpack.c.bf16 %v214_v18, %v212_v9  ;;  %v981_v31 = vpack.c.bf16 %v218_v30, %v216_v44  ;;  %v220_v36 = vsel %vm201_vm2, %v217_v29, %v219_v34  ;;  %v222_v37 = vsel %vm201_vm2, %v219_v34, %v221_v35  ;;  %v5574_v9 = vld [vmem:[%s7636_s3 + $0x20] ss:$8 sps:$4 sm:$0xff]   ;;  %v5575_v26 = vld [vmem:[%s7636_s3 + $0x34] ss:$8 sps:$4 sm:$0xff]  }
  0x92   :  { %v225_v57 = vrot.slane %v6055_v45, 1  ;;  %v224_v58 = vsel %vm201_vm2, %v221_v35, %v223_v41  ;;  %v258_v7 = vrot.slane %v6098_v56, 1  ;;  %v260_v10 = vrot.slane %v6106_v59, 1  ;;  %1688 = vmatprep.subr.bf16.mxu1 %v5566_v15  ;;  %v5580_v44 = vld [vmem:[%s7636_s3 + $0x40] ss:$8 sps:$4 sm:$0xff]   ;;  %v5852_v34 = vld [vmem:[%s7633_s0 + $0xf0] sm:$0xff] }
  0x93   :  { %v262_v14 = vrot.slane %v6111_v60, 1  ;;  %v264_v53 = vrot.slane %v6116_v61, 1  ;;  %v266_v60 = vrot.slane %v6126_v5, 1  ;;  %v268_v61 = vrot.slane %v6131_v6, 1  ;;  %v5572_v6 = vld [vmem:[%s7636_s3 + $0x24] ss:$8 sps:$4 sm:$0xff]  }
  0x94   :  { %v226_v39 = vsel %vm201_vm2, %v223_v41, %v225_v57  ;;  %v272_v24 = vrot.slane %v6144_v13, 1  ;;  %v5578_v13 = vld [vmem:[%s7636_s3 + $0x44] ss:$8 sps:$4 sm:$0xff]   ;;  %v276_v35 = vrot.slane %v5852_v34, 1  ;;  %vm5879_vm4 = vmmov 1  }
  0x95   :  { %v983_v63 = vpack.c.bf16 %v226_v39, %v224_v58  ;;  %v263_v56 = vsel %vm201_vm2, %v260_v10, %v262_v14  ;;  %v265_v59 = vsel %vm201_vm2, %v262_v14, %v264_v53  ;;  %v267_v17 = vsel %vm201_vm2, %v264_v53, %v266_v60  ;;  %v5586_v58 = vld [vmem:[%s7636_s3 + $0x60] ss:$8 sps:$4 sm:$0xff]   ;;  %vm6506_vm5 = vmpackc.low %vm5879_vm4, %vm4716_vm3 }
  0x96   :  { %v989_v62 = vpack.c.bf16 %v265_v59, %v263_v56  ;;  %v269_v5 = vsel %vm201_vm2, %v266_v60, %v268_v61  ;;  %vm6850_vm6 = vmpackc.low %vm201_vm2, %vm5879_vm4  ;;  %vm5881_vm7 = vmmov 0   ;;  %vm4583_vm8 = vcmask 523264  }
  0x97   :  { %v990_v18 = vpack.c.bf16 %v269_v5, %v267_v17 }
  0x98   :  { %4666 = vmatmul.mubr.msk.bf16.gmra.mrb[8].mxu0 %vm327_vm1, %v646_v3  ;;  %v227_v3 = vrot.slane %v6062_v48, 1 }
  0x99   :  { %783 = vmatprep.mubr.bf16.mxu0 %v5878_v2 }
  0x9a   :  { %v228_v40 = vsel %vm201_vm2, %v225_v57, %v227_v3  ;;  %v5584_v57 = vld [vmem:[%s7636_s3 + $0x64] ss:$8 sps:$4 sm:$0xff]  }
  0xa0   :  { %4667 = vmatmul.mubr.msk.bf16.gmra.mrb[12].mxu0 %vm327_vm1, %v647_v4  ;;  %v229_v4 = vrot.slane %v6067_v49, 1 }
  0xa1   :  { %793 = vmatprep.mubr.bf16.mxu0 %v5878_v2 }
  0xa2   :  { %v230_v45 = vsel %vm201_vm2, %v227_v3, %v229_v4 }
  0xa8   :  { %4668 = vmatmul.mubr.msk.bf16.gmra.mrb[16].mxu0 %vm327_vm1, %v648_v0  ;;  %v984_v0 = vpack.c.bf16 %v230_v45, %v228_v40  ;;  %v5589_v40 = vld [vmem:[%s7636_s3 + $0x70] ss:$8 sps:$4 sm:$0xff]  }
  0xa9   :  { %803 = vmatprep.mubr.bf16.mxu0 %v5878_v2 }
  0xb0   :  { %4669 = vmatmul.mubr.msk.bf16.gmra.mrb[20].mxu0 %vm327_vm1, %v649_v19  ;;  %v231_v19 = vrot.slane %v6072_v50, 1 }
  0xb1   :  { %813 = vmatprep.mubr.bf16.mxu0 %v5878_v2 }
  0xb2   :  { %v296_v48 = vsel %vm201_vm2, %v231_v19, 0.0 }
  0xb8   :  { %4670 = vmatmul.mubr.msk.bf16.gmra.mrb[24].mxu0 %vm327_vm1, %v650_v20  ;;  %v232_v20 = vsel %vm201_vm2, %v229_v4, %v231_v19  ;;  %v5587_v4 = vld [vmem:[%s7636_s3 + $0x74] ss:$8 sps:$4 sm:$0xff]  }
  0xb9   :  { %823 = vmatprep.mubr.bf16.mxu0 %v5878_v2  ;;  %v985_v49 = vpack.c.bf16 %v296_v48, %v232_v20  ;;  %v5592_v20 = vld [vmem:[%s7636_s3 + $0x84] ss:$8 sps:$4 sm:$0xff]   ;;  %v570_v48 = vlaneseq }
  0xc0   :  { %4671 = vmatmul.mubr.msk.bf16.gmra.mrb[28].mxu0 %vm327_vm1, %v651_v25  ;;  %v5850_v25 = vld [vmem:[%s7633_s0 + $0x80] sm:$0xff] }
  0xc1   :  { %833 = vmatprep.mubr.bf16.mxu0 %v5878_v2 }
  0xc8   :  { %4672 = vmatmul.mubr.msk.bf16.gmra.mrb[32].mxu0 %vm327_vm1, %v652_v28  ;;  %v249_v28 = vrot.slane %v5850_v25, 1 }
  0xc9   :  { %843 = vmatprep.mubr.bf16.mxu0 %v5878_v2 }
  0xd0   :  { %4673 = vmatmul.mubr.msk.bf16.gmra.mrb[36].mxu0 %vm327_vm1, %v653_v32  ;;  %v250_v32 = vrot.slane %v6077_v51, 1 }
  0xd1   :  { %853 = vmatprep.mubr.bf16.mxu0 %v5878_v2 }
  0xd2   :  { %v251_v50 = vsel %vm201_vm2, %v249_v28, %v250_v32  ;;  %v298_v28 = vld [vmem:[%s7635_s2] sm:$0x3] }
  0xd8   :  { %4674 = vmatmul.mubr.msk.bf16.gmra.mrb[40].mxu0 %vm327_vm1, %v654_v33  ;;  %v252_v33 = vrot.slane %v6082_v52, 1 }
  0xd9   :  { %863 = vmatprep.mubr.bf16.mxu0 %v5878_v2 }
  0xe0   :  { %4675 = vmatmul.mubr.msk.bf16.gmra.mrb[44].mxu0 %vm327_vm1, %v655_v43  ;;  %v253_v43 = vsel %vm201_vm2, %v250_v32, %v252_v33 }
  0xe1   :  { %873 = vmatprep.mubr.bf16.mxu0 %v5878_v2 }
  0xe8   :  { %4676 = vmatmul.mubr.msk.bf16.gmra.mrb[48].mxu0 %vm327_vm1, %v656_v22  ;;  %v986_v22 = vpack.c.bf16 %v253_v43, %v251_v50 }
  0xe9   :  { %883 = vmatprep.mubr.bf16.mxu0 %v5878_v2 }
  0xf0   :  { %4677 = vmatmul.mubr.msk.bf16.gmra.mrb[52].mxu0 %vm327_vm1, %v657_v47  ;;  %v254_v47 = vrot.slane %v6088_v54, 1 }
  0xf1   :  { %893 = vmatprep.mubr.bf16.mxu0 %v5878_v2 }
  0xf2   :  { %v255_v51 = vsel %vm201_vm2, %v252_v33, %v254_v47 }
  0xf8   :  { %4678 = vmatmul.mubr.msk.bf16.gmra.mrb[56].mxu0 %vm327_vm1, %v658_v1  ;;  %v256_v1 = vrot.slane %v6093_v55, 1  ;;  %v261_v55 = vsel %vm201_vm2, %v258_v7, %v260_v10 }
  0xf9   :  { %903 = vmatprep.mubr.bf16.mxu0 %v5878_v2 }
  0xfa   :  { %v257_v52 = vsel %vm201_vm2, %v254_v47, %v256_v1  ;;  %v259_v54 = vsel %vm201_vm2, %v256_v1, %v258_v7 }
  0xfb   :  { %v988_v11 = vpack.c.bf16 %v261_v55, %v259_v54 }
 0x100   :  { %4679 = vmatmul.mubr.msk.bf16.gmra.mrb[60].mxu0 %vm327_vm1, %v659_v42  ;;  %v987_v42 = vpack.c.bf16 %v257_v52, %v255_v51 }
 0x101   :  { %1087 = vmatprep.mubr.bf16.mxu0 %v5878_v2 }
 0x108   :  { %4684 = vmatmul.mubr.msk.bf16.vlgmr.msra.gmra.mrb[0].mxu0 %vm327_vm1, %v978_v38  ;;  %v982_v38 = vpack.c.bf16 %v222_v37, %v220_v36  ;;  %v5581_v36 = vld [vmem:[%s7636_s3 + $0x54] ss:$8 sps:$4 sm:$0xff]   ;;  %v5583_v37 = vld [vmem:[%s7636_s3 + $0x50] ss:$8 sps:$4 sm:$0xff]  }
 0x109   :  { %1097 = vmatprep.mubr.bf16.mxu0 %v5878_v2 }
 0x110   :  { %4685 = vmatmul.mubr.msk.bf16.gmra.mrb[4].mxu0 %vm327_vm1, %v979_v21  ;;  %v5568_v21 = vld [vmem:[%s7636_s3] ss:$8 sps:$4 sm:$0xff]  }
 0x111   :  { %1107 = vmatprep.mubr.bf16.mxu0 %v5878_v2  ;;  %1689 = vmatpush1.bf16.msra.mxu1 %v5568_v21 }
 0x112   :  { %1690 = vmatprep.subr.bf16.mxu1 %v5569_v12 }
 0x115   :  { %1691 = vmatpush1.bf16.msra.mxu1 %v5571_v16 }
 0x116   :  { %1692 = vmatprep.subr.bf16.mxu1 %v5572_v6 }
 0x118   :  { %4686 = vmatmul.mubr.msk.bf16.gmra.mrb[8].mxu0 %vm327_vm1, %v980_v23  ;;  %v270_v23 = vrot.slane %v6136_v8, 1 }
 0x119   :  { %1117 = vmatprep.mubr.bf16.mxu0 %v5878_v2  ;;  %1693 = vmatpush1.bf16.msra.mxu1 %v5574_v9 }
 0x11a   :  { %1694 = vmatprep.subr.bf16.mxu1 %v5575_v26  ;;  %v271_v29 = vsel %vm201_vm2, %v268_v61, %v270_v23  ;;  %v273_v8 = vsel %vm201_vm2, %v270_v23, %v272_v24 }
 0x11b   :  { %v991_v30 = vpack.c.bf16 %v273_v8, %v271_v29 }
 0x11d   :  { %1695 = vmatpush1.bf16.msra.mxu1 %v5577_v27 }
 0x11e   :  { %1696 = vmatprep.subr.bf16.mxu1 %v5578_v13 }
 0x120   :  { %4687 = vmatmul.mubr.msk.bf16.gmra.mrb[12].mxu0 %vm327_vm1, %v981_v31  ;;  %v5851_v31 = vld [vmem:[%s7633_s0 + $0xe8] sm:$0xff] }
 0x121   :  { %1127 = vmatprep.mubr.bf16.mxu0 %v5878_v2  ;;  %v274_v46 = vrot.slane %v5851_v31, 1  ;;  %1697 = vmatpush1.bf16.msra.mxu1 %v5580_v44 }
 0x122   :  { %1698 = vmatprep.subr.bf16.mxu1 %v5581_v36 }
 0x123   :  { %v277_v41 = vsel %vm201_vm2, %v274_v46, %v276_v35 }
 0x125   :  { %1699 = vmatpush1.bf16.msra.mxu1 %v5583_v37 }
 0x126   :  { %1700 = vmatprep.subr.bf16.mxu1 %v5584_v57 }
 0x128   :  { %4688 = vmatmul.mubr.msk.bf16.gmra.mrb[16].mxu0 %vm327_vm1, %v982_v38  ;;  %v275_v38 = vsel %vm201_vm2, %v272_v24, %v274_v46 }
 0x129   :  { %1137 = vmatprep.mubr.bf16.mxu0 %v5878_v2  ;;  %v992_v39 = vpack.c.bf16 %v277_v41, %v275_v38  ;;  %1701 = vmatpush1.bf16.msra.mxu1 %v5586_v58 }
 0x12a   :  { %1702 = vmatprep.subr.bf16.mxu1 %v5587_v4 }
 0x12d   :  { %1703 = vmatpush1.bf16.msra.mxu1 %v5589_v40 }
 0x12e   :  { %1949 = vmatprep.subr.bf16.mxu1 %v5592_v20  ;;  %v5590_v20 = vld [vmem:[%s7636_s3 + $0x80] ss:$8 sps:$4 sm:$0xff]  }
 0x130   :  { %4689 = vmatmul.mubr.msk.bf16.gmra.mrb[20].mxu0 %vm327_vm1, %v983_v63  ;;  %v5853_v63 = vld [vmem:[%s7633_s0 + $0xf8] sm:$0xff] }
 0x131   :  { %1147 = vmatprep.mubr.bf16.mxu0 %v5878_v2  ;;  %v278_v3 = vrot.slane %v5853_v63, 1 }
 0x133   :  { %v279_v45 = vsel %vm201_vm2, %v276_v35, %v278_v3 }
 0x138   :  { %4690 = vmatmul.mubr.msk.bf16.gmra.mrb[24].mxu0 %vm327_vm1, %v984_v0  ;;  %v297_v0 = vsel %vm201_vm2, %v278_v3, 0.0 }
 0x139   :  { %1157 = vmatprep.mubr.bf16.mxu0 %v5878_v2  ;;  %v993_v19 = vpack.c.bf16 %v297_v0, %v279_v45 }
 0x140   :  { %4691 = vmatmul.mubr.msk.bf16.gmra.mrb[28].mxu0 %vm327_vm1, %v985_v49  ;;  %v571_v49 = vshrl.u32 %v570_v48, 7 }
 0x141   :  { %1167 = vmatprep.mubr.bf16.mxu0 %v5878_v2 }
 0x142   :  { %v6462_v25 = vsub.s32 0, %v571_v49  ;;  %v6467_v32 = vsub.s32 1, %v571_v49 }
 0x144   :  { %v6470_v33 = vrot.slane %v298_v28, %v6462_v25  ;;  %v6473_v50 = vrot.slane %v298_v28, %v6467_v32 }
 0x148   :  { %4692 = vmatmul.mubr.msk.bf16.gmra.mrb[32].mxu0 %vm327_vm1, %v986_v22 }
 0x149   :  { %1177 = vmatprep.mubr.bf16.mxu0 %v5878_v2 }
 0x150   :  { %4693 = vmatmul.mubr.msk.bf16.gmra.mrb[36].mxu0 %vm327_vm1, %v987_v42 }
 0x151   :  { %1187 = vmatprep.mubr.bf16.mxu0 %v5878_v2 }
 0x158   :  { %4694 = vmatmul.mubr.msk.bf16.gmra.mrb[40].mxu0 %vm327_vm1, %v988_v11 }
 0x159   :  { %1197 = vmatprep.mubr.bf16.mxu0 %v5878_v2 }
 0x160   :  { %4695 = vmatmul.mubr.msk.bf16.gmra.mrb[44].mxu0 %vm327_vm1, %v989_v62 }
 0x161   :  { %1207 = vmatprep.mubr.bf16.mxu0 %v5878_v2 }
 0x168   :  { %4696 = vmatmul.mubr.msk.bf16.gmra.mrb[48].mxu0 %vm327_vm1, %v990_v18 }
 0x169   :  { %1217 = vmatprep.mubr.bf16.mxu0 %v5878_v2 }
 0x170   :  { %4697 = vmatmul.mubr.msk.bf16.gmra.mrb[52].mxu0 %vm327_vm1, %v991_v30 }
 0x171   :  { %1227 = vmatprep.mubr.bf16.mxu0 %v5878_v2 }
 0x178   :  { %4698 = vmatmul.mubr.msk.bf16.gmra.mrb[56].mxu0 %vm327_vm1, %v992_v39 }
 0x179   :  { %1237 = vmatprep.mubr.bf16.mxu0 %v5878_v2 }
 0x180   :  { %4699 = vmatmul.mubr.msk.bf16.gmra.mrb[60].mxu0 %vm327_vm1, %v993_v19 }
 0x1db   :  { %v1089_v43 = vpop.f32.mrb[0].mxu0 }
 0x1dc   :  { %v5216_v22 = vadd.f32 %v1089_v43, %v6470_v33  ;;  %v1091_v47 = vpop.f32.mrb[1].mxu0  ;;  %v5595_v43 = vld [vmem:[%s7636_s3 + $0x94] ss:$8 sps:$4 sm:$0xff]  }
 0x1dd   :  { %v5217_v1 = vadd.f32 %v1091_v47, %v6473_v50  ;;  %v1093_v51 = vpop.f32.mrb[2].mxu0 }
 0x1de   :  { %v5218_v52 = vadd.f32 %v1093_v51, %v6470_v33  ;;  %v1095_v42 = vpop.f32.mrb[3].mxu0 }
 0x1df   :  { %v1312_v7 = vmax.f32 %v5216_v22, %v5217_v1  ;;  %v5219_v10 = vadd.f32 %v1095_v42, %v6473_v50 }
 0x1e1   :  { %1344 = vst [vmem:[#allocation2] sm:$0xff] %v1312_v7  ;;  %v1313_v54 = vmax.f32 %v5218_v52, %v5219_v10 }
 0x1e3   :  { %1345 = vst [vmem:[#allocation2 + $0x8] sm:$0xff] %v1313_v54  ;;  %v1099_v55 = vpop.f32.mrb[4].mxu0  ;;  %v5593_v54 = vld [vmem:[%s7636_s3 + $0x90] ss:$8 sps:$4 sm:$0xff]  }
 0x1e4   :  { %v5220_v11 = vadd.f32 %v1099_v55, %v6470_v33  ;;  %v1101_v14 = vpop.f32.mrb[5].mxu0 }
 0x1e5   :  { %v5221_v53 = vadd.f32 %v1101_v14, %v6473_v50  ;;  %v1103_v56 = vpop.f32.mrb[6].mxu0  ;;  %v5598_v14 = vld [vmem:[%s7636_s3 + $0xa4] ss:$8 sps:$4 sm:$0xff]  }
 0x1e6   :  { %v5222_v59 = vadd.f32 %v1103_v56, %v6470_v33  ;;  %v1105_v15 = vpop.f32.mrb[7].mxu0 }
 0x1e7   :  { %v1314_v21 = vmax.f32 %v5220_v11, %v5221_v53  ;;  %v5223_v62 = vadd.f32 %v1105_v15, %v6473_v50 }
 0x1e9   :  { %1346 = vst [vmem:[#allocation2 + $0x10] sm:$0xff] %v1314_v21  ;;  %v1315_v60 = vmax.f32 %v5222_v59, %v5223_v62  ;;  %v5596_v21 = vld [vmem:[%s7636_s3 + $0xa0] ss:$8 sps:$4 sm:$0xff]  }
 0x1ea   :  { %v1376_v12 = vld [vmem:[#allocation2] ss:$2 sm:$0xff]  ;;  %v1408_v16 = vld [vmem:[#allocation2 + $0x1] ss:$2 sm:$0xff] }
 0x1eb   :  { %1347 = vst [vmem:[#allocation2 + $0x18] sm:$0xff] %v1315_v60  ;;  %v1109_v61 = vpop.f32.mrb[8].mxu0  ;;  %v1439_v24 = vmax.f32 %v1376_v12, %v1408_v16  ;;  %v5601_v12 = vld [vmem:[%s7636_s3 + $0xb4] ss:$8 sps:$4 sm:$0xff]  }
 0x1ec   :  { %v5224_v17 = vadd.f32 %v1109_v61, %v6470_v33  ;;  %v1111_v5 = vpop.f32.mrb[9].mxu0 }
 0x1ed   :  { %v5225_v6 = vadd.f32 %v1111_v5, %v6473_v50  ;;  %v1113_v9 = vpop.f32.mrb[10].mxu0  ;;  %v6487_v44 = vmax.f32 %v1439_v24, 0.0 }
 0x1ee   :  { %v5226_v18 = vadd.f32 %v1113_v9, %v6470_v33  ;;  %v1115_v23 = vpop.f32.mrb[11].mxu0 }
 0x1ef   :  { %v1316_v26 = vmax.f32 %v5224_v17, %v5225_v6  ;;  %v5227_v27 = vadd.f32 %v1115_v23, %v6473_v50  ;;  %v1479_v57 = vrot.slane %v6487_v44, 7  ;;  %v1535_v4 = vrot.slane %v6487_v44, 1 }
 0x1f1   :  { %1348 = vst [vmem:[#allocation2 + $0x20] sm:$0xff] %v1316_v26  ;;  %v1317_v29 = vmax.f32 %v5226_v18, %v5227_v27  ;;  %v5599_v27 = vld [vmem:[%s7636_s3 + $0xb0] ss:$8 sps:$4 sm:$0xff]  }
 0x1f2   :  { %v1378_v8 = vld [vmem:[#allocation2 + $0x10] ss:$2 sm:$0xff]  ;;  %v1410_v13 = vld [vmem:[#allocation2 + $0x11] ss:$2 sm:$0xff] }
 0x1f3   :  { %1349 = vst [vmem:[#allocation2 + $0x28] sm:$0xff] %v1317_v29  ;;  %v1119_v30 = vpop.f32.mrb[12].mxu0  ;;  %v1440_v31 = vmax.f32 %v1378_v8, %v1410_v13  ;;  %v5604_v13 = vld [vmem:[%s7636_s3 + $0xc4] ss:$8 sps:$4 sm:$0xff]  }
 0x1f4   :  { %v5228_v46 = vadd.f32 %v1119_v30, %v6470_v33  ;;  %v1121_v34 = vpop.f32.mrb[13].mxu0 }
 0x1f5   :  { %v5229_v35 = vadd.f32 %v1121_v34, %v6473_v50  ;;  %v1123_v36 = vpop.f32.mrb[14].mxu0  ;;  %v6491_v37 = vmax.f32 %v1440_v31, 0.0 }
 0x1f6   :  { %v5230_v38 = vadd.f32 %v1123_v36, %v6470_v33  ;;  %v1125_v41 = vpop.f32.mrb[15].mxu0 }
 0x1f7   :  { %v1318_v58 = vmax.f32 %v5228_v46, %v5229_v35  ;;  %v5231_v39 = vadd.f32 %v1125_v41, %v6473_v50  ;;  %v1480_v63 = vrot.slane %v6491_v37, 7  ;;  %v1844_v3 = vpack.c.bf16 %v6491_v37, %v6487_v44  ;;  %v5625_v44 = vld [vmem:[%s7636_s3 + $0x134] ss:$8 sps:$4 sm:$0xff]  }
 0x1f8   :  { %v1536_v40 = vrot.slane %v6491_v37, 1  ;;  %v5623_v37 = vld [vmem:[%s7636_s3 + $0x130] ss:$8 sps:$4 sm:$0xff]  }
 0x1f9   :  { %1350 = vst [vmem:[#allocation2 + $0x30] sm:$0xff] %v1318_v58  ;;  %v1319_v45 = vmax.f32 %v5230_v38, %v5231_v39  ;;  %v1481_v0 = vsel %vm88_vm0, %v1479_v57, %v1480_v63 }
 0x1fa   :  { %v4718_v48 = vpack.c.bf16 %v1481_v0, %v1479_v57  ;;  %v1380_v49 = vld [vmem:[#allocation2 + $0x20] ss:$2 sm:$0xff]  ;;  %v1412_v28 = vld [vmem:[#allocation2 + $0x21] ss:$2 sm:$0xff]  ;;  %v6517_v22 = vsel %vm201_vm2, %v1535_v4, %v1536_v40 }
 0x1fb   :  { %1351 = vst [vmem:[#allocation2 + $0x38] sm:$0xff] %v1319_v45  ;;  %v1129_v47 = vpop.f32.mrb[16].mxu0  ;;  %v1441_v1 = vmax.f32 %v1380_v49, %v1412_v28  ;;  %v5602_v57 = vld [vmem:[%s7636_s3 + $0xc0] ss:$8 sps:$4 sm:$0xff]  }
 0x1fc   :  { %v5232_v51 = vadd.f32 %v1129_v47, %v6470_v33  ;;  %v1131_v52 = vpop.f32.mrb[17].mxu0  ;;  %4719 = vmatmul.mubr.msk.bf16.vlgmr.msra.gmra.mrb[0].mxu1 %vm6506_vm5, %v4718_v48  ;;  %v5605_v47 = vld [vmem:[%s7636_s3 + $0xd0] ss:$8 sps:$4 sm:$0xff]  }
 0x1fd   :  { %v5233_v42 = vadd.f32 %v1131_v52, %v6473_v50  ;;  %v1133_v7 = vpop.f32.mrb[18].mxu0  ;;  %1730 = vmatprep.mubr.bf16.mxu1 %v5878_v2  ;;  %v6524_v10 = vmax.f32 %v1441_v1, 0.0  ;;  %1950 = vmatpush1.bf16.msra.mxu1 %v5590_v20  ;;  %v5610_v52 = vld [vmem:[%s7636_s3 + $0xe4] ss:$8 sps:$4 sm:$0xff]  }
 0x1fe   :  { %v5234_v55 = vadd.f32 %v1133_v7, %v6470_v33  ;;  %v1135_v11 = vpop.f32.mrb[19].mxu0  ;;  %1951 = vmatprep.subr.bf16.mxu1 %v5595_v43 }
 0x1ff   :  { %v1320_v53 = vmax.f32 %v5232_v51, %v5233_v42  ;;  %v5235_v56 = vadd.f32 %v1135_v11, %v6473_v50  ;;  %v1538_v59 = vrot.slane %v6524_v10, 1  ;;  %v1482_v26 = vrot.slane %v6524_v10, 7  ;;  %v5608_v11 = vld [vmem:[%s7636_s3 + $0xe0] ss:$8 sps:$4 sm:$0xff]  }
 0x201   :  { %1352 = vst [vmem:[#allocation2 + $0x40] sm:$0xff] %v1320_v53  ;;  %v1321_v15 = vmax.f32 %v5234_v55, %v5235_v56  ;;  %1952 = vmatpush1.bf16.msra.mxu1 %v5593_v54  ;;  %v6539_v62 = vsel %vm201_vm2, %v1536_v40, %v1538_v59  ;;  %v1483_v38 = vsel %vm88_vm0, %v1480_v63, %v1482_v26  ;;  %v5607_v40 = vld [vmem:[%s7636_s3 + $0xd4] ss:$8 sps:$4 sm:$0xff]  }
 0x202   :  { %v1382_v60 = vld [vmem:[#allocation2 + $0x30] ss:$2 sm:$0xff]  ;;  %v1414_v61 = vld [vmem:[#allocation2 + $0x31] ss:$2 sm:$0xff]  ;;  %1953 = vmatprep.subr.bf16.mxu1 %v5598_v14  ;;  %v2094_v16 = vpack.c.bf16 %v6539_v62, %v6517_v22 }
 0x203   :  { %1353 = vst [vmem:[#allocation2 + $0x48] sm:$0xff] %v1321_v15  ;;  %v1139_v17 = vpop.f32.mrb[20].mxu0  ;;  %v1442_v5 = vmax.f32 %v1382_v60, %v1414_v61  ;;  %v5643_v62 = vld [vmem:[%s7638_s5 + $0x14] ss:$8 sps:$4 sm:$0xff]  }
 0x204   :  { %v5236_v6 = vadd.f32 %v1139_v17, %v6470_v33  ;;  %v1141_v9 = vpop.f32.mrb[21].mxu0  ;;  %v5720_v22 = vld [vmem:[%s7640_s7 + $0x50] sm:$0xff]  }
 0x205   :  { %v5237_v18 = vadd.f32 %v1141_v9, %v6473_v50  ;;  %v1143_v23 = vpop.f32.mrb[22].mxu0  ;;  %v6548_v24 = vmax.f32 %v1442_v5, 0.0  ;;  %1954 = vmatpush1.bf16.msra.mxu1 %v5596_v21 }
 0x206   :  { %v5238_v29 = vadd.f32 %v1143_v23, %v6470_v33  ;;  %v1145_v8 = vpop.f32.mrb[23].mxu0  ;;  %1955 = vmatprep.subr.bf16.mxu1 %v5601_v12 }
 0x207   :  { %v1322_v30 = vmax.f32 %v5236_v6, %v5237_v18  ;;  %v5239_v31 = vadd.f32 %v1145_v8, %v6473_v50  ;;  %v1484_v46 = vrot.slane %v6548_v24, 7  ;;  %v1845_v34 = vpack.c.bf16 %v6548_v24, %v6524_v10  ;;  %v5611_v18 = vld [vmem:[%s7636_s3 + $0xf0] ss:$8 sps:$4 sm:$0xff]   ;;  %v5631_v10 = vld [vmem:[%s7636_s3 + $0x154] ss:$8 sps:$4 sm:$0xff]  }
 0x208   :  { %v1540_v35 = vrot.slane %v6548_v24, 1  ;;  %v5629_v24 = vld [vmem:[%s7636_s3 + $0x150] ss:$8 sps:$4 sm:$0xff]  }
 0x209   :  { %1354 = vst [vmem:[#allocation2 + $0x50] sm:$0xff] %v1322_v30  ;;  %v1323_v36 = vmax.f32 %v5238_v29, %v5239_v31  ;;  %v1485_v41 = vsel %vm88_vm0, %v1482_v26, %v1484_v46  ;;  %1956 = vmatpush1.bf16.msra.mxu1 %v5599_v27  ;;  %v5616_v27 = vld [vmem:[%s7636_s3 + $0x104] ss:$8 sps:$4 sm:$0xff]  }
 0x20a   :  { %v1585_v58 = vpack.c.bf16 %v1485_v41, %v1483_v38  ;;  %v1384_v39 = vld [vmem:[#allocation2 + $0x40] ss:$2 sm:$0xff]  ;;  %v1416_v4 = vld [vmem:[#allocation2 + $0x41] ss:$2 sm:$0xff]  ;;  %1957 = vmatprep.subr.bf16.mxu1 %v5604_v13  ;;  %v6576_v45 = vsel %vm201_vm2, %v1538_v59, %v1540_v35  ;;  %v5613_v59 = vld [vmem:[%s7636_s3 + $0xf4] ss:$8 sps:$4 sm:$0xff]  }
 0x20b   :  { %1355 = vst [vmem:[#allocation2 + $0x58] sm:$0xff] %v1323_v36  ;;  %v1149_v63 = vpop.f32.mrb[24].mxu0  ;;  %v1443_v0 = vmax.f32 %v1384_v39, %v1416_v4 }
 0x20c   :  { %v5240_v20 = vadd.f32 %v1149_v63, %v6470_v33  ;;  %v1151_v48 = vpop.f32.mrb[25].mxu0  ;;  %1731 = vmatmul.mubr.bf16.gmra.mrb[4].mxu1 %v1585_v58 }
 0x20d   :  { %v5241_v49 = vadd.f32 %v1151_v48, %v6473_v50  ;;  %v1153_v28 = vpop.f32.mrb[26].mxu0  ;;  %1740 = vmatprep.mubr.bf16.mxu1 %v5878_v2  ;;  %v6581_v43 = vmax.f32 %v1443_v0, 0.0  ;;  %1958 = vmatpush1.bf16.msra.mxu1 %v5602_v57 }
 0x20e   :  { %v5242_v1 = vadd.f32 %v1153_v28, %v6470_v33  ;;  %v1155_v51 = vpop.f32.mrb[27].mxu0  ;;  %1959 = vmatprep.subr.bf16.mxu1 %v5607_v40 }
 0x20f   :  { %v1324_v42 = vmax.f32 %v5240_v20, %v5241_v49  ;;  %v5243_v7 = vadd.f32 %v1155_v51, %v6473_v50  ;;  %v1542_v54 = vrot.slane %v6581_v43, 1  ;;  %v1486_v9 = vrot.slane %v6581_v43, 7 }
 0x211   :  { %1356 = vst [vmem:[#allocation2 + $0x60] sm:$0xff] %v1324_v42  ;;  %v1325_v55 = vmax.f32 %v5242_v1, %v5243_v7  ;;  %1960 = vmatpush1.bf16.msra.mxu1 %v5605_v47  ;;  %v6596_v14 = vsel %vm201_vm2, %v1540_v35, %v1542_v54  ;;  %v1487_v36 = vsel %vm88_vm0, %v1484_v46, %v1486_v9 }
 0x212   :  { %v1386_v53 = vld [vmem:[#allocation2 + $0x50] ss:$2 sm:$0xff]  ;;  %v1418_v56 = vld [vmem:[#allocation2 + $0x51] ss:$2 sm:$0xff]  ;;  %1961 = vmatprep.subr.bf16.mxu1 %v5610_v52  ;;  %v2095_v15 = vpack.c.bf16 %v6596_v14, %v6576_v45  ;;  %v5646_v45 = vld [vmem:[%s7638_s5 + $0x24] ss:$8 sps:$4 sm:$0xff]  }
 0x213   :  { %1357 = vst [vmem:[#allocation2 + $0x68] sm:$0xff] %v1325_v55  ;;  %v1159_v21 = vpop.f32.mrb[28].mxu0  ;;  %v1444_v60 = vmax.f32 %v1386_v53, %v1418_v56  ;;  %v5644_v14 = vld [vmem:[%s7638_s5 + $0x20] ss:$8 sps:$4 sm:$0xff]  }
 0x214   :  { %v5244_v61 = vadd.f32 %v1159_v21, %v6470_v33  ;;  %v1161_v12 = vpop.f32.mrb[29].mxu0 }
 0x215   :  { %v5245_v17 = vadd.f32 %v1161_v12, %v6473_v50  ;;  %v1163_v5 = vpop.f32.mrb[30].mxu0  ;;  %v6605_v6 = vmax.f32 %v1444_v60, 0.0  ;;  %1962 = vmatpush1.bf16.msra.mxu1 %v5608_v11 }
 0x216   :  { %v5246_v23 = vadd.f32 %v1163_v5, %v6470_v33  ;;  %v1165_v26 = vpop.f32.mrb[31].mxu0  ;;  %1963 = vmatprep.subr.bf16.mxu1 %v5613_v59 }
 0x217   :  { %v1326_v29 = vmax.f32 %v5244_v61, %v5245_v17  ;;  %v5247_v8 = vadd.f32 %v1165_v26, %v6473_v50  ;;  %v1488_v13 = vrot.slane %v6605_v6, 7  ;;  %v1846_v30 = vpack.c.bf16 %v6605_v6, %v6581_v43  ;;  %v5637_v43 = vld [vmem:[%s7636_s3 + $0x174] ss:$8 sps:$4 sm:$0xff]  }
 0x218   :  { %v1544_v31 = vrot.slane %v6605_v6, 1  ;;  %v5635_v6 = vld [vmem:[%s7636_s3 + $0x170] ss:$8 sps:$4 sm:$0xff]  }
 0x219   :  { %1358 = vst [vmem:[#allocation2 + $0x70] sm:$0xff] %v1326_v29  ;;  %v1327_v35 = vmax.f32 %v5246_v23, %v5247_v8  ;;  %v1489_v38 = vsel %vm88_vm0, %v1486_v9, %v1488_v13  ;;  %1964 = vmatpush1.bf16.msra.mxu1 %v5611_v18 }
 0x21a   :  { %v1586_v41 = vpack.c.bf16 %v1489_v38, %v1487_v36  ;;  %v1388_v57 = vld [vmem:[#allocation2 + $0x60] ss:$2 sm:$0xff]  ;;  %v1420_v58 = vld [vmem:[#allocation2 + $0x61] ss:$2 sm:$0xff]  ;;  %2199 = vmatprep.subr.bf16.mxu1 %v5616_v27  ;;  %v6625_v39 = vsel %vm201_vm2, %v1542_v54, %v1544_v31 }
 0x21b   :  { %1359 = vst [vmem:[#allocation2 + $0x78] sm:$0xff] %v1327_v35  ;;  %v1169_v4 = vpop.f32.mrb[32].mxu0  ;;  %v1445_v40 = vmax.f32 %v1388_v57, %v1420_v58 }
 0x21c   :  { %v5248_v63 = vadd.f32 %v1169_v4, %v6470_v33  ;;  %v1171_v0 = vpop.f32.mrb[33].mxu0  ;;  %1741 = vmatmul.mubr.bf16.gmra.mrb[8].mxu1 %v1586_v41 }
 0x21d   :  { %v5249_v20 = vadd.f32 %v1171_v0, %v6473_v50  ;;  %v1173_v46 = vpop.f32.mrb[34].mxu0  ;;  %1750 = vmatprep.mubr.bf16.mxu1 %v5878_v2  ;;  %v6630_v48 = vmax.f32 %v1445_v40, 0.0 }
 0x21e   :  { %v5250_v49 = vadd.f32 %v1173_v46, %v6470_v33  ;;  %v1175_v28 = vpop.f32.mrb[35].mxu0 }
 0x21f   :  { %v1328_v47 = vmax.f32 %v5248_v63, %v5249_v20  ;;  %v5251_v1 = vadd.f32 %v1175_v28, %v6473_v50  ;;  %v1546_v51 = vrot.slane %v6630_v48, 1  ;;  %v1490_v12 = vrot.slane %v6630_v48, 7 }
 0x221   :  { %1360 = vst [vmem:[#allocation2 + $0x80] sm:$0xff] %v1328_v47  ;;  %v1329_v52 = vmax.f32 %v5250_v49, %v5251_v1  ;;  %v6636_v42 = vsel %vm201_vm2, %v1544_v31, %v1546_v51  ;;  %v1491_v8 = vsel %vm88_vm0, %v1488_v13, %v1490_v12 }
 0x222   :  { %v1390_v7 = vld [vmem:[#allocation2 + $0x70] ss:$2 sm:$0xff]  ;;  %v1422_v54 = vld [vmem:[#allocation2 + $0x71] ss:$2 sm:$0xff]  ;;  %v2096_v55 = vpack.c.bf16 %v6636_v42, %v6625_v39  ;;  %v5652_v42 = vld [vmem:[%s7638_s5 + $0x44] ss:$8 sps:$4 sm:$0xff]  }
 0x223   :  { %1361 = vst [vmem:[#allocation2 + $0x88] sm:$0xff] %v1329_v52  ;;  %v1179_v11 = vpop.f32.mrb[36].mxu0  ;;  %v1446_v53 = vmax.f32 %v1390_v7, %v1422_v54  ;;  %v5647_v39 = vld [vmem:[%s7638_s5 + $0x30] ss:$8 sps:$4 sm:$0xff]  }
 0x224   :  { %v5252_v56 = vadd.f32 %v1179_v11, %v6470_v33  ;;  %v1181_v59 = vpop.f32.mrb[37].mxu0 }
 0x225   :  { %v5253_v21 = vadd.f32 %v1181_v59, %v6473_v50  ;;  %v1183_v60 = vpop.f32.mrb[38].mxu0  ;;  %v6642_v61 = vmax.f32 %v1446_v53, 0.0 }
 0x226   :  { %v5254_v17 = vadd.f32 %v1183_v60, %v6470_v33  ;;  %v1185_v5 = vpop.f32.mrb[39].mxu0 }
 0x227   :  { %v1330_v9 = vmax.f32 %v5252_v56, %v5253_v21  ;;  %v5255_v18 = vadd.f32 %v1185_v5, %v6473_v50  ;;  %v1492_v23 = vrot.slane %v6642_v61, 7  ;;  %v1847_v26 = vpack.c.bf16 %v6642_v61, %v6630_v48  ;;  %v5638_v48 = vld [vmem:[%s7638_s5] ss:$8 sps:$4 sm:$0xff]  }
 0x228   :  { %v1548_v27 = vrot.slane %v6642_v61, 1  ;;  %v5655_v61 = vld [vmem:[%s7638_s5 + $0x54] ss:$8 sps:$4 sm:$0xff]  }
 0x229   :  { %1362 = vst [vmem:[#allocation2 + $0x90] sm:$0xff] %v1330_v9  ;;  %v1331_v29 = vmax.f32 %v5254_v17, %v5255_v18  ;;  %v1493_v31 = vsel %vm88_vm0, %v1490_v12, %v1492_v23 }
 0x22a   :  { %v1587_v35 = vpack.c.bf16 %v1493_v31, %v1491_v8  ;;  %v1549_v36 = vsel %vm201_vm2, %v1546_v51, %v1548_v27  ;;  %v1392_v41 = vld [vmem:[#allocation2 + $0x80] ss:$2 sm:$0xff]  ;;  %v1424_v57 = vld [vmem:[#allocation2 + $0x81] ss:$2 sm:$0xff] }
 0x22b   :  { %1363 = vst [vmem:[#allocation2 + $0x98] sm:$0xff] %v1331_v29  ;;  %v1189_v38 = vpop.f32.mrb[40].mxu0  ;;  %v6654_v58 = vpack.c.bf16 %v1548_v27, %v1549_v36  ;;  %v1447_v46 = vmax.f32 %v1392_v41, %v1424_v57 }
 0x22c   :  { %v5256_v4 = vadd.f32 %v1189_v38, %v6470_v33  ;;  %v1191_v40 = vpop.f32.mrb[41].mxu0  ;;  %1751 = vmatmul.mubr.bf16.gmra.mrb[12].mxu1 %v1587_v35 }
 0x22d   :  { %v5257_v63 = vadd.f32 %v1191_v40, %v6473_v50  ;;  %v1193_v0 = vpop.f32.mrb[42].mxu0  ;;  %1760 = vmatprep.mubr.bf16.mxu1 %v5878_v2  ;;  %v6661_v52 = vmax.f32 %v1447_v46, 0.0 }
 0x22e   :  { %v5258_v13 = vadd.f32 %v1193_v0, %v6470_v33  ;;  %v1195_v20 = vpop.f32.mrb[43].mxu0 }
 0x22f   :  { %v1332_v49 = vmax.f32 %v5256_v4, %v5257_v63  ;;  %v5259_v28 = vadd.f32 %v1195_v20, %v6473_v50  ;;  %v1510_v17 = vrot.slane %v6661_v52, 7  ;;  %v1558_v27 = vrot.slane %v6661_v52, 1 }
 0x231   :  { %1364 = vst [vmem:[#allocation2 + $0xa0] sm:$0xff] %v1332_v49  ;;  %v1333_v47 = vmax.f32 %v5258_v13, %v5259_v28 }
 0x232   :  { %v1394_v1 = vld [vmem:[#allocation2 + $0x90] ss:$2 sm:$0xff]  ;;  %v1426_v51 = vld [vmem:[#allocation2 + $0x91] ss:$2 sm:$0xff] }
 0x233   :  { %1365 = vst [vmem:[#allocation2 + $0xa8] sm:$0xff] %v1333_v47  ;;  %v1199_v7 = vpop.f32.mrb[44].mxu0  ;;  %v1448_v54 = vmax.f32 %v1394_v1, %v1426_v51 }
 0x234   :  { %v5260_v11 = vadd.f32 %v1199_v7, %v6470_v33  ;;  %v1201_v53 = vpop.f32.mrb[45].mxu0 }
 0x235   :  { %v5261_v56 = vadd.f32 %v1201_v53, %v6473_v50  ;;  %v1203_v59 = vpop.f32.mrb[46].mxu0  ;;  %v6665_v21 = vmax.f32 %v1448_v54, 0.0 }
 0x236   :  { %v5262_v60 = vadd.f32 %v1203_v59, %v6470_v33  ;;  %v1205_v12 = vpop.f32.mrb[47].mxu0 }
 0x237   :  { %v1334_v5 = vmax.f32 %v5260_v11, %v5261_v56  ;;  %v5263_v9 = vadd.f32 %v1205_v12, %v6473_v50  ;;  %v1511_v18 = vrot.slane %v6665_v21, 7  ;;  %v1848_v23 = vpack.c.bf16 %v6665_v21, %v6661_v52  ;;  %v5656_v52 = vld [vmem:[%s7638_s5 + $0x60] ss:$8 sps:$4 sm:$0xff]  }
 0x238   :  { %v1559_v29 = vrot.slane %v6665_v21, 1  ;;  %v5661_v21 = vld [vmem:[%s7638_s5 + $0x74] ss:$8 sps:$4 sm:$0xff]  }
 0x239   :  { %1366 = vst [vmem:[#allocation2 + $0xb0] sm:$0xff] %v1334_v5  ;;  %v1335_v8 = vmax.f32 %v5262_v60, %v5263_v9  ;;  %v1512_v31 = vsel %vm88_vm0, %v1510_v17, %v1511_v18 }
 0x23a   :  { %v4722_v35 = vpack.c.bf16 %v1512_v31, %v1510_v17  ;;  %v1396_v36 = vld [vmem:[#allocation2 + $0xa0] ss:$2 sm:$0xff]  ;;  %v1428_v38 = vld [vmem:[#allocation2 + $0xa1] ss:$2 sm:$0xff]  ;;  %v6677_v41 = vsel %vm201_vm2, %v1558_v27, %v1559_v29 }
 0x23b   :  { %1367 = vst [vmem:[#allocation2 + $0xb8] sm:$0xff] %v1335_v8  ;;  %v1209_v57 = vpop.f32.mrb[48].mxu0  ;;  %v1449_v4 = vmax.f32 %v1396_v36, %v1428_v38 }
 0x23c   :  { %v5264_v40 = vadd.f32 %v1209_v57, %v6470_v33  ;;  %v1211_v63 = vpop.f32.mrb[49].mxu0  ;;  %4723 = vmatmul.mubr.msk.bf16.gmra.mrb[16].mxu1 %vm6506_vm5, %v4722_v35 }
 0x23d   :  { %v5265_v0 = vadd.f32 %v1211_v63, %v6473_v50  ;;  %v1213_v13 = vpop.f32.mrb[50].mxu0  ;;  %1770 = vmatprep.mubr.bf16.mxu1 %v5878_v2  ;;  %v6684_v20 = vmax.f32 %v1449_v4, 0.0 }
 0x23e   :  { %v5266_v46 = vadd.f32 %v1213_v13, %v6470_v33  ;;  %v1215_v49 = vpop.f32.mrb[51].mxu0 }
 0x23f   :  { %v1336_v28 = vmax.f32 %v5264_v40, %v5265_v0  ;;  %v5267_v47 = vadd.f32 %v1215_v49, %v6473_v50  ;;  %v1561_v1 = vrot.slane %v6684_v20, 1  ;;  %v1513_v27 = vrot.slane %v6684_v20, 7 }
 0x241   :  { %1368 = vst [vmem:[#allocation2 + $0xc0] sm:$0xff] %v1336_v28  ;;  %v1337_v51 = vmax.f32 %v5266_v46, %v5267_v47  ;;  %v6690_v7 = vsel %vm201_vm2, %v1559_v29, %v1561_v1  ;;  %v1514_v40 = vsel %vm88_vm0, %v1511_v18, %v1513_v27 }
 0x242   :  { %v1398_v54 = vld [vmem:[#allocation2 + $0xb0] ss:$2 sm:$0xff]  ;;  %v1430_v11 = vld [vmem:[#allocation2 + $0xb1] ss:$2 sm:$0xff]  ;;  %v2098_v53 = vpack.c.bf16 %v6690_v7, %v6677_v41  ;;  %v5664_v41 = vld [vmem:[%s7638_s5 + $0x84] ss:$8 sps:$4 sm:$0xff]  }
 0x243   :  { %1369 = vst [vmem:[#allocation2 + $0xc8] sm:$0xff] %v1337_v51  ;;  %v1219_v56 = vpop.f32.mrb[52].mxu0  ;;  %v1450_v59 = vmax.f32 %v1398_v54, %v1430_v11 }
 0x244   :  { %v5268_v60 = vadd.f32 %v1219_v56, %v6470_v33  ;;  %v1221_v12 = vpop.f32.mrb[53].mxu0 }
 0x245   :  { %v5269_v17 = vadd.f32 %v1221_v12, %v6473_v50  ;;  %v1223_v5 = vpop.f32.mrb[54].mxu0  ;;  %v6696_v9 = vmax.f32 %v1450_v59, 0.0 }
 0x246   :  { %v5270_v29 = vadd.f32 %v1223_v5, %v6470_v33  ;;  %v1225_v8 = vpop.f32.mrb[55].mxu0 }
 0x247   :  { %v1338_v31 = vmax.f32 %v5268_v60, %v5269_v17  ;;  %v5271_v35 = vadd.f32 %v1225_v8, %v6473_v50  ;;  %v1515_v36 = vrot.slane %v6696_v9, 7  ;;  %v1849_v38 = vpack.c.bf16 %v6696_v9, %v6684_v20  ;;  %v1583_v20 = vld [vmem:[%s7637_s4] sm:$0x3]  ;;  %s5854_s4 = scalar_lea.vmem %s4635_s21, 32 }
 0x248   :  { %v1563_v57 = vrot.slane %v6696_v9, 1  ;;  %v6923_v7 = vrot.slane %v1583_v20, %v6462_v25  ;;  %p5855_p0 = scmp.ne.s32.totalorder %s4635_s21, %s5854_s4  ;;  %p5860_p2 = scmp.lt.s32.totalorder %s5854_s4, %s5854_s4 }
 0x249   :  { %1370 = vst [vmem:[#allocation2 + $0xd0] sm:$0xff] %v1338_v31  ;;  %v1339_v4 = vmax.f32 %v5270_v29, %v5271_v35  ;;  %v1516_v63 = vsel %vm88_vm0, %v1513_v27, %v1515_v36 }
 0x24a   :  { %v1589_v0 = vpack.c.bf16 %v1516_v63, %v1514_v40  ;;  %v1400_v13 = vld [vmem:[#allocation2 + $0xc0] ss:$2 sm:$0xff]  ;;  %v1432_v46 = vld [vmem:[#allocation2 + $0xc1] ss:$2 sm:$0xff]  ;;  %v6708_v49 = vsel %vm201_vm2, %v1561_v1, %v1563_v57  ;;  %p5861_p3 = por %p5860_p2, %p5859_p1 }
 0x24b   :  { %1371 = vst [vmem:[#allocation2 + $0xd8] sm:$0xff] %v1339_v4  ;;  %v1229_v28 = vpop.f32.mrb[56].mxu0  ;;  %v1451_v47 = vmax.f32 %v1400_v13, %v1432_v46 }
 0x24c   :  { %v5272_v51 = vadd.f32 %v1229_v28, %v6470_v33  ;;  %v1231_v54 = vpop.f32.mrb[57].mxu0  ;;  %1771 = vmatmul.mubr.bf16.gmra.mrb[20].mxu1 %v1589_v0  ;;  %p5862_p4 = pnand %p5861_p3, %p5855_p0 }
 0x24d   :  { %v5273_v11 = vadd.f32 %v1231_v54, %v6473_v50  ;;  %v1233_v56 = vpop.f32.mrb[58].mxu0  ;;  %1780 = vmatprep.mubr.bf16.mxu1 %v5878_v2  ;;  %v6713_v18 = vmax.f32 %v1451_v47, 0.0 }
 0x24e   :  { %v5274_v59 = vadd.f32 %v1233_v56, %v6470_v33  ;;  %v1235_v60 = vpop.f32.mrb[59].mxu0 }
 0x24f   :  { %v1340_v12 = vmax.f32 %v5272_v51, %v5273_v11  ;;  %v5275_v1 = vadd.f32 %v1235_v60, %v6473_v50  ;;  %v1565_v17 = vrot.slane %v6713_v18, 1  ;;  %v1517_v28 = vrot.slane %v6713_v18, 7 }
 0x251   :  { %1372 = vst [vmem:[#allocation2 + $0xe0] sm:$0xff] %v1340_v12  ;;  %v1341_v5 = vmax.f32 %v5274_v59, %v5275_v1  ;;  %v6719_v27 = vsel %vm201_vm2, %v1563_v57, %v1565_v17  ;;  %v1518_v12 = vsel %vm88_vm0, %v1515_v36, %v1517_v28 }
 0x252   :  { %v1402_v29 = vld [vmem:[#allocation2 + $0xd0] ss:$2 sm:$0xff]  ;;  %v1434_v8 = vld [vmem:[#allocation2 + $0xd1] ss:$2 sm:$0xff]  ;;  %v2099_v31 = vpack.c.bf16 %v6719_v27, %v6708_v49 }
 0x253   :  { %1373 = vst [vmem:[#allocation2 + $0xe8] sm:$0xff] %v1341_v5  ;;  %v1239_v35 = vpop.f32.mrb[60].mxu0  ;;  %v1452_v4 = vmax.f32 %v1402_v29, %v1434_v8 }
 0x254   :  { %v5276_v40 = vadd.f32 %v1239_v35, %v6470_v33  ;;  %v1241_v63 = vpop.f32.mrb[61].mxu0 }
 0x255   :  { %v5277_v0 = vadd.f32 %v1241_v63, %v6473_v50  ;;  %v1243_v13 = vpop.f32.mrb[62].mxu0  ;;  %v6725_v46 = vmax.f32 %v1452_v4, 0.0 }
 0x256   :  { %v5278_v57 = vadd.f32 %v1243_v13, %v6470_v33  ;;  %v1245_v47 = vpop.f32.mrb[63].mxu0 }
 0x257   :  { %v1342_v51 = vmax.f32 %v5276_v40, %v5277_v0  ;;  %v5279_v54 = vadd.f32 %v1245_v47, %v6473_v50  ;;  %v1519_v11 = vrot.slane %v6725_v46, 7  ;;  %v1850_v56 = vpack.c.bf16 %v6725_v46, %v6713_v18 }
 0x258   :  { %v1567_v59 = vrot.slane %v6725_v46, 1 }
 0x259   :  { %1374 = vst [vmem:[#allocation2 + $0xf0] sm:$0xff] %v1342_v51  ;;  %v1343_v60 = vmax.f32 %v5278_v57, %v5279_v54  ;;  %v1520_v1 = vsel %vm88_vm0, %v1517_v28, %v1519_v11 }
 0x25a   :  { %v1590_v5 = vpack.c.bf16 %v1520_v1, %v1518_v12  ;;  %v1404_v29 = vld [vmem:[#allocation2 + $0xe0] ss:$2 sm:$0xff]  ;;  %v1436_v33 = vld [vmem:[#allocation2 + $0xe1] ss:$2 sm:$0xff]  ;;  %v6737_v8 = vsel %vm201_vm2, %v1565_v17, %v1567_v59 }
 0x25b   :  { %1375 = vst [vmem:[#allocation2 + $0xf8] sm:$0xff] %v1343_v60  ;;  %v1453_v50 = vmax.f32 %v1404_v29, %v1436_v33  ;;  %v5619_v29 = vld [vmem:[%s7636_s3 + $0x114] ss:$8 sps:$4 sm:$0xff]   ;;  %v5622_v33 = vld [vmem:[%s7636_s3 + $0x124] ss:$8 sps:$4 sm:$0xff]  }
 0x25c   :  { %1781 = vmatmul.mubr.bf16.gmra.mrb[24].mxu1 %v1590_v5  ;;  %v5614_v5 = vld [vmem:[%s7636_s3 + $0x100] ss:$8 sps:$4 sm:$0xff]  }
 0x25d   :  { %1790 = vmatprep.mubr.bf16.mxu1 %v5878_v2  ;;  %v6740_v35 = vmax.f32 %v1453_v50, 0.0  ;;  %v5620_v50 = vld [vmem:[%s7636_s3 + $0x120] ss:$8 sps:$4 sm:$0xff]  }
 0x25f   :  { %v1569_v4 = vrot.slane %v6740_v35, 1  ;;  %v1521_v28 = vrot.slane %v6740_v35, 7 }
 0x261   :  { %v6744_v40 = vsel %vm201_vm2, %v1567_v59, %v1569_v4  ;;  %v1522_v54 = vsel %vm88_vm0, %v1519_v11, %v1521_v28  ;;  %v5617_v11 = vld [vmem:[%s7636_s3 + $0x110] ss:$8 sps:$4 sm:$0xff]  }
 0x262   :  { %v1406_v36 = vld [vmem:[#allocation2 + $0xf0] ss:$2 sm:$0xff]  ;;  %v1438_v63 = vld [vmem:[#allocation2 + $0xf1] ss:$2 sm:$0xff]  ;;  %v2100_v0 = vpack.c.bf16 %v6744_v40, %v6737_v8 }
 0x263   :  { %v1454_v13 = vmax.f32 %v1406_v36, %v1438_v63 }
 0x265   :  { %v1470_v17 = vmax.f32 %v1454_v13, 0.0 }
 0x267   :  { %v1523_v57 = vrot.slane %v1470_v17, 7  ;;  %v1851_v47 = vpack.c.bf16 %v1470_v17, %v6740_v35  ;;  %v1571_v51 = vrot.slane %v1470_v17, 1  ;;  %v5626_v35 = vld [vmem:[%s7636_s3 + $0x140] ss:$8 sps:$4 sm:$0xff]  }
 0x269   :  { %v1524_v60 = vsel %vm88_vm0, %v1521_v28, %v1523_v57  ;;  %v1572_v59 = vsel %vm201_vm2, %v1569_v4, %v1571_v51  ;;  %v5632_v4 = vld [vmem:[%s7636_s3 + $0x160] ss:$8 sps:$4 sm:$0xff]  }
 0x26a   :  { %v1591_v12 = vpack.c.bf16 %v1524_v60, %v1522_v54  ;;  %v6753_v1 = vpack.c.bf16 %v1571_v51, %v1572_v59 }
 0x26c   :  { %1791 = vmatmul.mubr.bf16.gmra.mrb[28].mxu1 %v1591_v12 }
 0x26d   :  { %1981 = vmatprep.mubr.bf16.mxu1 %v5878_v2 }
 0x274   :  { %1982 = vmatmul.mubr.bf16.vlgmr.msra.gmra.mrb[0].mxu1 %v1844_v3  ;;  %v5628_v3 = vld [vmem:[%s7636_s3 + $0x144] ss:$8 sps:$4 sm:$0xff]  }
 0x275   :  { %2200 = vmatpush1.bf16.msra.mxu1 %v5614_v5  ;;  %1991 = vmatprep.mubr.bf16.mxu1 %v5878_v2 }
 0x276   :  { %2201 = vmatprep.subr.bf16.mxu1 %v5619_v29  ;;  %v5710_v29 = vld [vmem:[%s7640_s7 + $0x1c0] sm:$0xff]  }
 0x277   :  { %5089 = vmatprep.subr.bf16.mxu0 %v5710_v29  ;;  %v5673_v29 = vld [vmem:[%s7638_s5 + $0xb4] ss:$8 sps:$4 sm:$0xff]  }
 0x279   :  { %2202 = vmatpush1.bf16.msra.mxu1 %v5617_v11  ;;  %v5711_v11 = vld [vmem:[%s7640_s7 + $0x180] sm:$0xff]  }
 0x27a   :  { %2203 = vmatprep.subr.bf16.mxu1 %v5622_v33  ;;  %v5712_v33 = vld [vmem:[%s7640_s7 + $0x1c8] sm:$0xff]   ;;  %5090 = vmatpush3.bf16.msra.mxu0 %v5711_v11 }
 0x27b   :  { %5091 = vmatprep.subr.bf16.mxu0 %v5712_v33 }
 0x27c   :  { %1992 = vmatmul.mubr.bf16.gmra.mrb[4].mxu1 %v1845_v34  ;;  %v5634_v34 = vld [vmem:[%s7636_s3 + $0x164] ss:$8 sps:$4 sm:$0xff]  }
 0x27d   :  { %2001 = vmatprep.mubr.bf16.mxu1 %v5878_v2  ;;  %2204 = vmatpush1.bf16.msra.mxu1 %v5620_v50 }
 0x27e   :  { %2205 = vmatprep.subr.bf16.mxu1 %v5625_v44 }
 0x281   :  { %2206 = vmatpush1.bf16.msra.mxu1 %v5623_v37 }
 0x282   :  { %2207 = vmatprep.subr.bf16.mxu1 %v5628_v3 }
 0x284   :  { %2002 = vmatmul.mubr.bf16.gmra.mrb[8].mxu1 %v1846_v30  ;;  %v5640_v30 = vld [vmem:[%s7638_s5 + $0x4] ss:$8 sps:$4 sm:$0xff]  }
 0x285   :  { %2011 = vmatprep.mubr.bf16.mxu1 %v5878_v2  ;;  %2208 = vmatpush1.bf16.msra.mxu1 %v5626_v35 }
 0x286   :  { %2209 = vmatprep.subr.bf16.mxu1 %v5631_v10 }
 0x289   :  { %2210 = vmatpush1.bf16.msra.mxu1 %v5629_v24 }
 0x28a   :  { %2211 = vmatprep.subr.bf16.mxu1 %v5634_v34  ;;  %v5713_v34 = vld [vmem:[%s7640_s7 + $0x188] sm:$0xff]  }
 0x28b   :  { %5092 = vmatpush3.bf16.msra.mxu0 %v5713_v34  ;;  %v5671_v34 = vld [vmem:[%s7638_s5 + $0xb0] ss:$8 sps:$4 sm:$0xff]  }
 0x28c   :  { %2012 = vmatmul.mubr.bf16.gmra.mrb[12].mxu1 %v1847_v26  ;;  %v5653_v26 = vld [vmem:[%s7638_s5 + $0x50] ss:$8 sps:$4 sm:$0xff]  }
 0x28d   :  { %2021 = vmatprep.mubr.bf16.mxu1 %v5878_v2  ;;  %2212 = vmatpush1.bf16.msra.mxu1 %v5632_v4 }
 0x28e   :  { %2213 = vmatprep.subr.bf16.mxu1 %v5637_v43 }
 0x291   :  { %2214 = vmatpush1.bf16.msra.mxu1 %v5635_v6 }
 0x292   :  { %2580 = vmatprep.subr.bf16.mxu1 %v5640_v30 }
 0x294   :  { %2022 = vmatmul.mubr.bf16.gmra.mrb[16].mxu1 %v1848_v23  ;;  %v5659_v23 = vld [vmem:[%s7638_s5 + $0x70] ss:$8 sps:$4 sm:$0xff]  }
 0x295   :  { %2031 = vmatprep.mubr.bf16.mxu1 %v5878_v2 }
 0x29c   :  { %2032 = vmatmul.mubr.bf16.gmra.mrb[20].mxu1 %v1849_v38 }
 0x29d   :  { %2041 = vmatprep.mubr.bf16.mxu1 %v5878_v2 }
 0x2a4   :  { %2042 = vmatmul.mubr.bf16.gmra.mrb[24].mxu1 %v1850_v56 }
 0x2a5   :  { %2051 = vmatprep.mubr.bf16.mxu1 %v5878_v2 }
 0x2ac   :  { %2052 = vmatmul.mubr.bf16.gmra.mrb[28].mxu1 %v1851_v47 }
 0x2ad   :  { %2231 = vmatprep.mubr.bf16.mxu1 %v5878_v2 }
 0x2b4   :  { %2232 = vmatmul.mubr.bf16.vlgmr.msra.gmra.mrb[0].mxu1 %v2094_v16  ;;  %v5641_v16 = vld [vmem:[%s7638_s5 + $0x10] ss:$8 sps:$4 sm:$0xff]  }
 0x2b5   :  { %2241 = vmatprep.mubr.bf16.mxu1 %v5878_v2  ;;  %2581 = vmatpush1.bf16.msra.mxu1 %v5638_v48 }
 0x2b6   :  { %2582 = vmatprep.subr.bf16.mxu1 %v5643_v62 }
 0x2b9   :  { %2583 = vmatpush1.bf16.msra.mxu1 %v5641_v16 }
 0x2ba   :  { %2584 = vmatprep.subr.bf16.mxu1 %v5646_v45 }
 0x2bc   :  { %2242 = vmatmul.mubr.bf16.gmra.mrb[4].mxu1 %v2095_v15  ;;  %v5649_v15 = vld [vmem:[%s7638_s5 + $0x34] ss:$8 sps:$4 sm:$0xff]  }
 0x2bd   :  { %2251 = vmatprep.mubr.bf16.mxu1 %v5878_v2  ;;  %2585 = vmatpush1.bf16.msra.mxu1 %v5644_v14 }
 0x2be   :  { %2586 = vmatprep.subr.bf16.mxu1 %v5649_v15 }
 0x2c1   :  { %2587 = vmatpush1.bf16.msra.mxu1 %v5647_v39 }
 0x2c2   :  { %2588 = vmatprep.subr.bf16.mxu1 %v5652_v42 }
 0x2c4   :  { %2252 = vmatmul.mubr.bf16.gmra.mrb[8].mxu1 %v2096_v55  ;;  %v5650_v55 = vld [vmem:[%s7638_s5 + $0x40] ss:$8 sps:$4 sm:$0xff]  }
 0x2c5   :  { %2261 = vmatprep.mubr.bf16.mxu1 %v5878_v2  ;;  %2589 = vmatpush1.bf16.msra.mxu1 %v5650_v55 }
 0x2c6   :  { %2590 = vmatprep.subr.bf16.mxu1 %v5655_v61 }
 0x2c9   :  { %2591 = vmatpush1.bf16.msra.mxu1 %v5653_v26 }
 0x2cc   :  { %4790 = vmatmul.mubr.msk.bf16.gmra.mrb[12].mxu1 %vm6850_vm6, %v6654_v58  ;;  %v5658_v58 = vld [vmem:[%s7638_s5 + $0x64] ss:$8 sps:$4 sm:$0xff]  }
 0x2cd   :  { %2271 = vmatprep.mubr.bf16.mxu1 %v5878_v2  ;;  %2592 = vmatprep.subr.bf16.mxu1 %v5658_v58 }
 0x2ce   :  { %2593 = vmatpush1.bf16.msra.mxu1 %v5656_v52 }
 0x2cf   :  { %2594 = vmatprep.subr.bf16.mxu1 %v5661_v21 }
 0x2d2   :  { %2595 = vmatpush1.bf16.msra.mxu1 %v5659_v23 }
 0x2d3   :  { %2781 = vmatprep.subr.bf16.mxu1 %v5664_v41 }
 0x2d4   :  { %2272 = vmatmul.mubr.bf16.gmra.mrb[16].mxu1 %v2098_v53  ;;  %v6926_v53 = vrot.slane %v1583_v20, %v6467_v32 }
 0x2d5   :  { %2281 = vmatprep.mubr.bf16.mxu1 %v5878_v2 }
 0x2dc   :  { %2282 = vmatmul.mubr.bf16.gmra.mrb[20].mxu1 %v2099_v31 }
 0x2dd   :  { %2291 = vmatprep.mubr.bf16.mxu1 %v5878_v2 }
 0x2e4   :  { %2292 = vmatmul.mubr.bf16.gmra.mrb[24].mxu1 %v2100_v0 }
 0x2e5   :  { %2301 = vmatprep.mubr.bf16.mxu1 %v5878_v2 }
 0x2ec   :  { %4793 = vmatmul.mubr.msk.bf16.gmra.mrb[28].mxu1 %vm6850_vm6, %v6753_v1 }
 0x2ed   :  { %2612 = vmatprep.mubr.bf16.mxu1 %v5878_v2 }
 0x387   :  { %v2233_v9 = vpop.f32.mrb[0].mxu1 }
 0x388   :  { %v5280_v38 = vadd.f32 %v2233_v9, %v6923_v7  ;;  %v2235_v49 = vpop.f32.mrb[1].mxu1  ;;  %v5662_v9 = vld [vmem:[%s7638_s5 + $0x80] ss:$8 sps:$4 sm:$0xff]  }
 0x389   :  { %v5281_v18 = vadd.f32 %v2235_v49, %v6926_v53  ;;  %v2237_v27 = vpop.f32.mrb[2].mxu1 }
 0x38a   :  { %v5282_v31 = vadd.f32 %v2237_v27, %v6923_v7  ;;  %v2239_v46 = vpop.f32.mrb[3].mxu1  ;;  %v5667_v27 = vld [vmem:[%s7638_s5 + $0x94] ss:$8 sps:$4 sm:$0xff]  }
 0x38b   :  { %v2344_v56 = vmax.f32 %v5280_v38, %v5281_v18  ;;  %v5283_v8 = vadd.f32 %v2239_v46, %v6926_v53 }
 0x38d   :  { %2360 = vst [vmem:[#allocation3] sm:$0xff] %v2344_v56  ;;  %v2345_v40 = vmax.f32 %v5282_v31, %v5283_v8 }
 0x38f   :  { %2361 = vst [vmem:[#allocation3 + $0x8] sm:$0xff] %v2345_v40  ;;  %v2243_v36 = vpop.f32.mrb[4].mxu1 }
 0x390   :  { %v5284_v63 = vadd.f32 %v2243_v36, %v6923_v7  ;;  %v2245_v0 = vpop.f32.mrb[5].mxu1 }
 0x391   :  { %v5285_v13 = vadd.f32 %v2245_v0, %v6926_v53  ;;  %v2247_v17 = vpop.f32.mrb[6].mxu1 }
 0x392   :  { %v5286_v28 = vadd.f32 %v2247_v17, %v6923_v7  ;;  %v2249_v57 = vpop.f32.mrb[7].mxu1 }
 0x393   :  { %v2346_v47 = vmax.f32 %v5284_v63, %v5285_v13  ;;  %v5287_v51 = vadd.f32 %v2249_v57, %v6926_v53  ;;  %v5665_v13 = vld [vmem:[%s7638_s5 + $0x90] ss:$8 sps:$4 sm:$0xff]   ;;  %v5670_v57 = vld [vmem:[%s7638_s5 + $0xa4] ss:$8 sps:$4 sm:$0xff]  }
 0x395   :  { %2362 = vst [vmem:[#allocation3 + $0x10] sm:$0xff] %v2346_v47  ;;  %v2347_v54 = vmax.f32 %v5286_v28, %v5287_v51 }
 0x396   :  { %v2376_v59 = vld [vmem:[#allocation3] ss:$2 sm:$0xff]  ;;  %v2392_v12 = vld [vmem:[#allocation3 + $0x1] ss:$2 sm:$0xff] }
 0x397   :  { %2363 = vst [vmem:[#allocation3 + $0x18] sm:$0xff] %v2347_v54  ;;  %v2253_v60 = vpop.f32.mrb[8].mxu1  ;;  %v2407_v24 = vmax.f32 %v2376_v59, %v2392_v12  ;;  %v5668_v59 = vld [vmem:[%s7638_s5 + $0xa0] ss:$8 sps:$4 sm:$0xff]  }
 0x398   :  { %v5288_v1 = vadd.f32 %v2253_v60, %v6923_v7  ;;  %v2255_v5 = vpop.f32.mrb[9].mxu1 }
 0x399   :  { %v5289_v50 = vadd.f32 %v2255_v5, %v6926_v53  ;;  %v2257_v44 = vpop.f32.mrb[10].mxu1  ;;  %v6952_v62 = vmax.f32 %v2407_v24, 0.0 }
 0x39a   :  { %v5290_v37 = vadd.f32 %v2257_v44, %v6923_v7  ;;  %v2259_v3 = vpop.f32.mrb[11].mxu1 }
 0x39b   :  { %v2348_v35 = vmax.f32 %v5288_v1, %v5289_v50  ;;  %v5291_v10 = vadd.f32 %v2259_v3, %v6926_v53  ;;  %v2427_v58 = vrot.slane %v6952_v62, 7  ;;  %v2455_v21 = vrot.slane %v6952_v62, 1 }
 0x39d   :  { %2364 = vst [vmem:[#allocation3 + $0x20] sm:$0xff] %v2348_v35  ;;  %v2349_v4 = vmax.f32 %v5290_v37, %v5291_v10 }
 0x39e   :  { %v2378_v43 = vld [vmem:[#allocation3 + $0x10] ss:$2 sm:$0xff]  ;;  %v2394_v6 = vld [vmem:[#allocation3 + $0x11] ss:$2 sm:$0xff] }
 0x39f   :  { %2365 = vst [vmem:[#allocation3 + $0x28] sm:$0xff] %v2349_v4  ;;  %v2263_v30 = vpop.f32.mrb[12].mxu1  ;;  %v2408_v48 = vmax.f32 %v2378_v43, %v2394_v6  ;;  %v5676_v6 = vld [vmem:[%s7638_s5 + $0xc4] ss:$8 sps:$4 sm:$0xff]  }
 0x3a0   :  { %v5292_v16 = vadd.f32 %v2263_v30, %v6923_v7  ;;  %v2265_v45 = vpop.f32.mrb[13].mxu1 }
 0x3a1   :  { %v5293_v14 = vadd.f32 %v2265_v45, %v6926_v53  ;;  %v2267_v15 = vpop.f32.mrb[14].mxu1  ;;  %v6956_v39 = vmax.f32 %v2408_v48, 0.0 }
 0x3a2   :  { %v5294_v42 = vadd.f32 %v2267_v15, %v6923_v7  ;;  %v2269_v55 = vpop.f32.mrb[15].mxu1 }
 0x3a3   :  { %v2350_v61 = vmax.f32 %v5292_v16, %v5293_v14  ;;  %v5295_v26 = vadd.f32 %v2269_v55, %v6926_v53  ;;  %v2428_v52 = vrot.slane %v6956_v39, 7  ;;  %v2456_v23 = vrot.slane %v6956_v39, 1  ;;  %v5674_v55 = vld [vmem:[%s7638_s5 + $0xc0] ss:$8 sps:$4 sm:$0xff]  }
 0x3a5   :  { %2366 = vst [vmem:[#allocation3 + $0x30] sm:$0xff] %v2350_v61  ;;  %v2351_v41 = vmax.f32 %v5294_v42, %v5295_v26  ;;  %v2429_v20 = vsel %vm88_vm0, %v2427_v58, %v2428_v52  ;;  %v6974_v31 = vsel %vm201_vm2, %v2455_v21, %v2456_v23  ;;  %v5679_v26 = vld [vmem:[%s7638_s5 + $0xd4] ss:$8 sps:$4 sm:$0xff]  }
 0x3a6   :  { %v4812_v38 = vpack.c.bf16 %v2429_v20, %v2427_v58  ;;  %v2380_v49 = vld [vmem:[#allocation3 + $0x20] ss:$2 sm:$0xff]  ;;  %v2396_v18 = vld [vmem:[#allocation3 + $0x21] ss:$2 sm:$0xff] }
 0x3a7   :  { %2367 = vst [vmem:[#allocation3 + $0x38] sm:$0xff] %v2351_v41  ;;  %v2273_v46 = vpop.f32.mrb[16].mxu1  ;;  %v2409_v56 = vmax.f32 %v2380_v49, %v2396_v18  ;;  %v5677_v18 = vld [vmem:[%s7638_s5 + $0xd0] ss:$8 sps:$4 sm:$0xff]  }
 0x3a8   :  { %v5296_v8 = vadd.f32 %v2273_v46, %v6923_v7  ;;  %v2275_v40 = vpop.f32.mrb[17].mxu1  ;;  %4813 = vmatmul.mubr.msk.bf16.vlgmr.msra.gmra.mrb[32].mxu1 %vm6506_vm5, %v4812_v38 }
 0x3a9   :  { %v5297_v36 = vadd.f32 %v2275_v40, %v6926_v53  ;;  %v2277_v63 = vpop.f32.mrb[18].mxu1  ;;  %2622 = vmatprep.mubr.bf16.mxu1 %v5878_v2  ;;  %v6981_v0 = vmax.f32 %v2409_v56, 0.0  ;;  %2782 = vmatpush1.bf16.msra.mxu1 %v5662_v9  ;;  %v5682_v56 = vld [vmem:[%s7638_s5 + $0xe4] ss:$8 sps:$4 sm:$0xff]  }
 0x3aa   :  { %v5298_v17 = vadd.f32 %v2277_v63, %v6923_v7  ;;  %v2279_v28 = vpop.f32.mrb[19].mxu1  ;;  %2783 = vmatprep.subr.bf16.mxu1 %v5667_v27 }
 0x3ab   :  { %v2352_v47 = vmax.f32 %v5296_v8, %v5297_v36  ;;  %v5299_v51 = vadd.f32 %v2279_v28, %v6926_v53  ;;  %v2458_v54 = vrot.slane %v6981_v0, 1  ;;  %v2430_v24 = vrot.slane %v6981_v0, 7 }
 0x3ad   :  { %2368 = vst [vmem:[#allocation3 + $0x40] sm:$0xff] %v2352_v47  ;;  %v2353_v60 = vmax.f32 %v5298_v17, %v5299_v51  ;;  %2784 = vmatpush1.bf16.msra.mxu1 %v5665_v13  ;;  %v6996_v12 = vsel %vm201_vm2, %v2456_v23, %v2458_v54  ;;  %v2431_v15 = vsel %vm88_vm0, %v2428_v52, %v2430_v24  ;;  %v5680_v13 = vld [vmem:[%s7638_s5 + $0xe0] ss:$8 sps:$4 sm:$0xff]  }
 0x3ae   :  { %v2382_v1 = vld [vmem:[#allocation3 + $0x30] ss:$2 sm:$0xff]  ;;  %v2398_v5 = vld [vmem:[#allocation3 + $0x31] ss:$2 sm:$0xff]  ;;  %2785 = vmatprep.subr.bf16.mxu1 %v5670_v57  ;;  %v2870_v11 = vpack.c.bf16 %v6996_v12, %v6974_v31  ;;  %v5714_v31 = vld [vmem:[%s7640_s7 + $0x40] sm:$0xff]  }
 0x3af   :  { %2369 = vst [vmem:[#allocation3 + $0x48] sm:$0xff] %v2353_v60  ;;  %v2283_v33 = vpop.f32.mrb[20].mxu1  ;;  %v2410_v50 = vmax.f32 %v2382_v1, %v2398_v5  ;;  %v5685_v57 = vld [vmem:[%s7638_s5 + $0xf4] ss:$8 sps:$4 sm:$0xff]   ;;  %v5715_v12 = vld [vmem:[%s7640_s7] sm:$0xff]  }
 0x3b0   :  { %v5300_v44 = vadd.f32 %v2283_v33, %v6923_v7  ;;  %v2285_v37 = vpop.f32.mrb[21].mxu1  ;;  %v5683_v33 = vld [vmem:[%s7638_s5 + $0xf0] ss:$8 sps:$4 sm:$0xff]  }
 0x3b1   :  { %v5301_v3 = vadd.f32 %v2285_v37, %v6926_v53  ;;  %v2287_v35 = vpop.f32.mrb[22].mxu1  ;;  %v7005_v10 = vmax.f32 %v2410_v50, 0.0  ;;  %2786 = vmatpush1.bf16.msra.mxu1 %v5668_v59  ;;  %v5688_v37 = vld [vmem:[%s7638_s5 + $0x104] ss:$8 sps:$4 sm:$0xff]  }
 0x3b2   :  { %v5302_v4 = vadd.f32 %v2287_v35, %v6923_v7  ;;  %v2289_v43 = vpop.f32.mrb[23].mxu1  ;;  %2787 = vmatprep.subr.bf16.mxu1 %v5673_v29 }
 0x3b3   :  { %v2354_v30 = vmax.f32 %v5300_v44, %v5301_v3  ;;  %v5303_v48 = vadd.f32 %v2289_v43, %v6926_v53  ;;  %v2432_v16 = vrot.slane %v7005_v10, 7  ;;  %v2460_v45 = vrot.slane %v7005_v10, 1 }
 0x3b5   :  { %2370 = vst [vmem:[#allocation3 + $0x50] sm:$0xff] %v2354_v30  ;;  %v2355_v14 = vmax.f32 %v5302_v4, %v5303_v48  ;;  %v2433_v42 = vsel %vm88_vm0, %v2430_v24, %v2432_v16  ;;  %2788 = vmatpush1.bf16.msra.mxu1 %v5671_v34  ;;  %v2461_v58 = vsel %vm201_vm2, %v2458_v54, %v2460_v45 }
 0x3b6   :  { %v2481_v61 = vpack.c.bf16 %v2433_v42, %v2431_v15  ;;  %2789 = vmatprep.subr.bf16.mxu1 %v5676_v6  ;;  %v7029_v23 = vpack.c.bf16 %v2460_v45, %v2461_v58  ;;  %v2384_v20 = vld [vmem:[#allocation3 + $0x40] ss:$2 sm:$0xff]  ;;  %v2400_v9 = vld [vmem:[#allocation3 + $0x41] ss:$2 sm:$0xff] }
 0x3b7   :  { %2371 = vst [vmem:[#allocation3 + $0x58] sm:$0xff] %v2355_v14  ;;  %v2293_v21 = vpop.f32.mrb[24].mxu1  ;;  %v2411_v36 = vmax.f32 %v2384_v20, %v2400_v9 }
 0x3b8   :  { %v5304_v52 = vadd.f32 %v2293_v21, %v6923_v7  ;;  %v2295_v41 = vpop.f32.mrb[25].mxu1  ;;  %2623 = vmatmul.mubr.bf16.gmra.mrb[36].mxu1 %v2481_v61 }
 0x3b9   :  { %v5305_v38 = vadd.f32 %v2295_v41, %v6926_v53  ;;  %v2297_v49 = vpop.f32.mrb[26].mxu1  ;;  %2632 = vmatprep.mubr.bf16.mxu1 %v5878_v2  ;;  %2790 = vmatpush1.bf16.msra.mxu1 %v5674_v55  ;;  %v7048_v54 = vmax.f32 %v2411_v36, 0.0  ;;  %v5703_v36 = vld [vmem:[%s7638_s5 + $0x154] ss:$8 sps:$4 sm:$0xff]  }
 0x3ba   :  { %v5306_v27 = vadd.f32 %v2297_v49, %v6923_v7  ;;  %v2299_v46 = vpop.f32.mrb[27].mxu1  ;;  %2791 = vmatprep.subr.bf16.mxu1 %v5679_v26  ;;  %v2680_v49 = vpack.c.bf16 %v6956_v39, %v6952_v62  ;;  %v5692_v62 = vld [vmem:[%s7638_s5 + $0x120] ss:$8 sps:$4 sm:$0xff]   ;;  %v2681_v39 = vpack.c.bf16 %v7005_v10, %v6981_v0 }
 0x3bb   :  { %v2356_v8 = vmax.f32 %v5304_v52, %v5305_v38  ;;  %v5307_v40 = vadd.f32 %v2299_v46, %v6926_v53  ;;  %v2442_v24 = vrot.slane %v7048_v54, 7  ;;  %v2466_v4 = vrot.slane %v7048_v54, 1  ;;  %v5686_v38 = vld [vmem:[%s7638_s5 + $0x100] ss:$8 sps:$4 sm:$0xff]   ;;  %v5694_v46 = vld [vmem:[%s7638_s5 + $0x124] ss:$8 sps:$4 sm:$0xff]  }
 0x3bc   :  { %v5698_v0 = vld [vmem:[%s7638_s5 + $0x140] ss:$8 sps:$4 sm:$0xff]  }
 0x3bd   :  { %2372 = vst [vmem:[#allocation3 + $0x60] sm:$0xff] %v2356_v8  ;;  %v2357_v63 = vmax.f32 %v5306_v27, %v5307_v40  ;;  %2792 = vmatpush1.bf16.msra.mxu1 %v5677_v18  ;;  %v5691_v18 = vld [vmem:[%s7638_s5 + $0x114] ss:$8 sps:$4 sm:$0xff]   ;;  %v5689_v27 = vld [vmem:[%s7638_s5 + $0x110] ss:$8 sps:$4 sm:$0xff]  }
 0x3be   :  { %v2386_v17 = vld [vmem:[#allocation3 + $0x50] ss:$2 sm:$0xff]  ;;  %v2402_v28 = vld [vmem:[#allocation3 + $0x51] ss:$2 sm:$0xff]  ;;  %2793 = vmatprep.subr.bf16.mxu1 %v5682_v56  ;;  %v5700_v40 = vld [vmem:[%s7638_s5 + $0x144] ss:$8 sps:$4 sm:$0xff]  }
 0x3bf   :  { %2373 = vst [vmem:[#allocation3 + $0x68] sm:$0xff] %v2357_v63  ;;  %v2303_v47 = vpop.f32.mrb[28].mxu1  ;;  %v2412_v51 = vmax.f32 %v2386_v17, %v2402_v28  ;;  %v5697_v56 = vld [vmem:[%s7638_s5 + $0x134] ss:$8 sps:$4 sm:$0xff]   ;;  %v5695_v8 = vld [vmem:[%s7638_s5 + $0x130] ss:$8 sps:$4 sm:$0xff]  }
 0x3c0   :  { %v5308_v60 = vadd.f32 %v2303_v47, %v6923_v7  ;;  %v2305_v59 = vpop.f32.mrb[29].mxu1  ;;  %v5701_v63 = vld [vmem:[%s7638_s5 + $0x150] ss:$8 sps:$4 sm:$0xff]   ;;  %v5704_v17 = vld [vmem:[%s7638_s5 + $0x160] ss:$8 sps:$4 sm:$0xff]  }
 0x3c1   :  { %v5309_v1 = vadd.f32 %v2305_v59, %v6926_v53  ;;  %v2307_v5 = vpop.f32.mrb[30].mxu1  ;;  %v7052_v29 = vmax.f32 %v2412_v51, 0.0  ;;  %2794 = vmatpush1.bf16.msra.mxu1 %v5680_v13  ;;  %v5706_v13 = vld [vmem:[%s7638_s5 + $0x164] ss:$8 sps:$4 sm:$0xff]   ;;  %v5707_v47 = vld [vmem:[%s7638_s5 + $0x170] ss:$8 sps:$4 sm:$0xff]  }
 0x3c2   :  { %v5310_v50 = vadd.f32 %v2307_v5, %v6923_v7  ;;  %v2309_v44 = vpop.f32.mrb[31].mxu1  ;;  %2795 = vmatprep.subr.bf16.mxu1 %v5685_v57  ;;  %v5709_v57 = vld [vmem:[%s7638_s5 + $0x174] ss:$8 sps:$4 sm:$0xff]  }
 0x3c3   :  { %v2358_v3 = vmax.f32 %v5308_v60, %v5309_v1  ;;  %v5311_v35 = vadd.f32 %v2309_v44, %v6926_v53  ;;  %v2443_v34 = vrot.slane %v7052_v29, 7  ;;  %v2467_v43 = vrot.slane %v7052_v29, 1  ;;  %v5721_v59 = vld [vmem:[%s7640_s7 + $0x10] sm:$0xff]   ;;  %v5722_v5 = vld [vmem:[%s7640_s7 + $0x58] sm:$0xff]   ;;  %v5726_v44 = vld [vmem:[%s7640_s7 + $0x60] sm:$0xff]  }
 0x3c4   :  { %v2682_v10 = vpack.c.bf16 %v7052_v29, %v7048_v54  ;;  %v5718_v1 = vld [vmem:[%s7640_s7 + $0x190] sm:$0xff]   ;;  %v5723_v29 = vld [vmem:[%s7640_s7 + $0x18] sm:$0xff]  }
 0x3c5   :  { %2374 = vst [vmem:[#allocation3 + $0x70] sm:$0xff] %v2358_v3  ;;  %v2359_v6 = vmax.f32 %v5310_v50, %v5311_v35  ;;  %v2444_v7 = vsel %vm88_vm0, %v2442_v24, %v2443_v34  ;;  %2796 = vmatpush1.bf16.msra.mxu1 %v5683_v33  ;;  %v7068_v45 = vsel %vm201_vm2, %v2466_v4, %v2467_v43  ;;  %v5724_v33 = vld [vmem:[%s7640_s7 + $0x1d8] sm:$0xff]   ;;  %v5728_v3 = vld [vmem:[%s7640_s7 + $0x1e0] sm:$0xff]   ;;  %v5732_v4 = vld [vmem:[%s7640_s7 + $0x1e8] sm:$0xff]  }
 0x3c6   :  { %v4816_v30 = vpack.c.bf16 %v2444_v7, %v2442_v24  ;;  %v2388_v48 = vld [vmem:[#allocation3 + $0x60] ss:$2 sm:$0xff]  ;;  %v2404_v16 = vld [vmem:[#allocation3 + $0x61] ss:$2 sm:$0xff]  ;;  %2971 = vmatprep.subr.bf16.mxu1 %v5688_v37  ;;  %v5725_v50 = vld [vmem:[%s7640_s7 + $0x198] sm:$0xff]  }
 0x3c7   :  { %2375 = vst [vmem:[#allocation3 + $0x78] sm:$0xff] %v2359_v6  ;;  %v2413_v53 = vmax.f32 %v2388_v48, %v2404_v16  ;;  %v5727_v37 = vld [vmem:[%s7640_s7 + $0x20] sm:$0xff]   ;;  %v5730_v24 = vld [vmem:[%s7640_s7 + $0x68] sm:$0xff]   ;;  %v5734_v6 = vld [vmem:[%s7640_s7 + $0x70] sm:$0xff]  }
 0x3c8   :  { %4817 = vmatmul.mubr.msk.bf16.gmra.mrb[40].mxu1 %vm6506_vm5, %v4816_v30  ;;  %v5729_v35 = vld [vmem:[%s7640_s7 + $0x1a0] sm:$0xff]   ;;  %v5735_v7 = vld [vmem:[%s7640_s7 + $0x30] sm:$0xff]   ;;  %v5738_v16 = vld [vmem:[%s7640_s7 + $0x78] sm:$0xff]  }
 0x3c9   :  { %2642 = vmatprep.mubr.bf16.mxu1 %v5878_v2  ;;  %v7073_v14 = vmax.f32 %v2413_v53, 0.0  ;;  %v5736_v30 = vld [vmem:[%s7640_s7 + $0x1f0] sm:$0xff]   ;;  %v5740_v53 = vld [vmem:[%s7640_s7 + $0x1f8] sm:$0xff]  }
 0x3ca   :  { %v5737_v48 = vld [vmem:[%s7640_s7 + $0x1b0] sm:$0xff]  }
 0x3cb   :  { %v2469_v15 = vrot.slane %v7073_v14, 1  ;;  %v2445_v52 = vrot.slane %v7073_v14, 7 }
 0x3cd   :  { %v2470_v42 = vsel %vm201_vm2, %v2467_v43, %v2469_v15  ;;  %v2446_v41 = vsel %vm88_vm0, %v2443_v34, %v2445_v52  ;;  %v5731_v34 = vld [vmem:[%s7640_s7 + $0x28] sm:$0xff]  }
 0x3ce   :  { %v2390_v55 = vld [vmem:[#allocation3 + $0x70] ss:$2 sm:$0xff]  ;;  %v2406_v61 = vld [vmem:[#allocation3 + $0x71] ss:$2 sm:$0xff]  ;;  %v2872_v26 = vpack.c.bf16 %v2470_v42, %v7068_v45  ;;  %v5733_v43 = vld [vmem:[%s7640_s7 + $0x1a8] sm:$0xff]  }
 0x3cf   :  { %v2414_v58 = vmax.f32 %v2390_v55, %v2406_v61  ;;  %v5739_v45 = vld [vmem:[%s7640_s7 + $0x38] sm:$0xff]   ;;  %v5744_v42 = vld [vmem:[%s7640_s7 + $0x2c0] sm:$0xff]  }
 0x3d0   :  { %v2479_v55 = vld [vmem:[%s7639_s6] sm:$0x3] }
 0x3d1   :  { %v2422_v21 = vmax.f32 %v2414_v58, 0.0  ;;  %v2657_v61 = vrot.slane %v2479_v55, %v6462_v25 }
 0x3d3   :  { %v2447_v19 = vrot.slane %v2422_v21, 7  ;;  %v2683_v28 = vpack.c.bf16 %v2422_v21, %v7073_v14  ;;  %v2471_v51 = vrot.slane %v2422_v21, 1  ;;  %v5741_v14 = vld [vmem:[%s7640_s7 + $0x1b8] sm:$0xff]  }
 0x3d5   :  { %v2448_v20 = vsel %vm88_vm0, %v2445_v52, %v2447_v19  ;;  %v2472_v54 = vsel %vm201_vm2, %v2469_v15, %v2471_v51  ;;  %v5742_v15 = vld [vmem:[%s7640_s7 + $0xc0] sm:$0xff]  }
 0x3d6   :  { %v2483_v9 = vpack.c.bf16 %v2448_v20, %v2446_v41  ;;  %v4886_v60 = vpack.c.bf16 %v2471_v51, %v2472_v54 }
 0x3d8   :  { %2643 = vmatmul.mubr.bf16.gmra.mrb[44].mxu1 %v2483_v9 }
 0x3d9   :  { %2813 = vmatprep.mubr.bf16.mxu1 %v5878_v2 }
 0x3e0   :  { %2814 = vmatmul.mubr.bf16.vlgmr.msra.gmra.mrb[32].mxu1 %v2680_v49 }
 0x3e1   :  { %2972 = vmatpush1.bf16.msra.mxu1 %v5686_v38  ;;  %2823 = vmatprep.mubr.bf16.mxu1 %v5878_v2 }
 0x3e2   :  { %2973 = vmatprep.subr.bf16.mxu1 %v5691_v18 }
 0x3e5   :  { %2974 = vmatpush1.bf16.msra.mxu1 %v5689_v27 }
 0x3e6   :  { %2975 = vmatprep.subr.bf16.mxu1 %v5694_v46 }
 0x3e8   :  { %2824 = vmatmul.mubr.bf16.gmra.mrb[36].mxu1 %v2681_v39 }
 0x3e9   :  { %2976 = vmatpush1.bf16.msra.mxu1 %v5692_v62  ;;  %2833 = vmatprep.mubr.bf16.mxu1 %v5878_v2 }
 0x3ea   :  { %2977 = vmatprep.subr.bf16.mxu1 %v5697_v56 }
 0x3ed   :  { %2978 = vmatpush1.bf16.msra.mxu1 %v5695_v8 }
 0x3ee   :  { %2979 = vmatprep.subr.bf16.mxu1 %v5700_v40 }
 0x3f0   :  { %2834 = vmatmul.mubr.bf16.gmra.mrb[40].mxu1 %v2682_v10 }
 0x3f1   :  { %2980 = vmatpush1.bf16.msra.mxu1 %v5698_v0  ;;  %2843 = vmatprep.mubr.bf16.mxu1 %v5878_v2 }
 0x3f2   :  { %2981 = vmatprep.subr.bf16.mxu1 %v5703_v36 }
 0x3f5   :  { %2982 = vmatpush1.bf16.msra.mxu1 %v5701_v63 }
 0x3f6   :  { %2983 = vmatprep.subr.bf16.mxu1 %v5706_v13 }
 0x3f8   :  { %2844 = vmatmul.mubr.bf16.gmra.mrb[44].mxu1 %v2683_v28 }
 0x3f9   :  { %2984 = vmatpush1.bf16.msra.mxu1 %v5704_v17  ;;  %3003 = vmatprep.mubr.bf16.mxu1 %v5878_v2 }
 0x3fa   :  { %2985 = vmatprep.subr.bf16.mxu1 %v5709_v57 }
 0x3fd   :  { %2986 = vmatpush1.bf16.msra.mxu1 %v5707_v47 }
 0x3fe   :  { %5023 = vmatprep.subr.bf16.mxu1 %v5714_v31 }
 0x400   :  { %3004 = vmatmul.mubr.bf16.vlgmr.msra.gmra.mrb[32].mxu1 %v2870_v11  ;;  %v5719_v11 = vld [vmem:[%s7640_s7 + $0x8] sm:$0xff]  }
 0x401   :  { %3013 = vmatprep.mubr.bf16.mxu1 %v5878_v2  ;;  %5024 = vmatpush3.bf16.msra.mxu1 %v5715_v12 }
 0x408   :  { %4884 = vmatmul.mubr.msk.bf16.gmra.mrb[36].mxu1 %vm6850_vm6, %v7029_v23  ;;  %v5716_v23 = vld [vmem:[%s7640_s7 + $0x1d0] sm:$0xff]  }
 0x409   :  { %3023 = vmatprep.mubr.bf16.mxu1 %v5878_v2  ;;  %5093 = vmatprep.subr.bf16.mxu0 %v5716_v23 }
 0x40a   :  { %5094 = vmatpush3.bf16.msra.mxu0 %v5718_v1 }
 0x40b   :  { %5095 = vmatprep.subr.bf16.mxu0 %v5724_v33 }
 0x40e   :  { %5096 = vmatpush3.bf16.msra.mxu0 %v5725_v50 }
 0x40f   :  { %5097 = vmatprep.subr.bf16.mxu0 %v5728_v3 }
 0x410   :  { %3024 = vmatmul.mubr.bf16.gmra.mrb[40].mxu1 %v2872_v26  ;;  %v2661_v26 = vrot.slane %v2479_v55, %v6467_v32 }
 0x411   :  { %3033 = vmatprep.mubr.bf16.mxu1 %v5878_v2  ;;  %v5717_v2 = vld [vmem:[%s7640_s7 + $0x48] sm:$0xff]  }
 0x412   :  { %5025 = vmatprep.subr.bf16.mxu1 %v5717_v2  ;;  %5098 = vmatpush3.bf16.msra.mxu0 %v5729_v35 }
 0x413   :  { %5026 = vmatpush3.bf16.msra.mxu1 %v5719_v11  ;;  %5099 = vmatprep.subr.bf16.mxu0 %v5732_v4 }
 0x414   :  { %5027 = vmatprep.subr.bf16.mxu1 %v5720_v22 }
 0x416   :  { %5100 = vmatpush3.bf16.msra.mxu0 %v5733_v43 }
 0x417   :  { %5028 = vmatpush3.bf16.msra.mxu1 %v5721_v59  ;;  %5101 = vmatprep.subr.bf16.mxu0 %v5736_v30 }
 0x418   :  { %4887 = vmatmul.mubr.msk.bf16.gmra.mrb[44].mxu1 %vm6850_vm6, %v4886_v60  ;;  %5029 = vmatprep.subr.bf16.mxu1 %v5722_v5 }
 0x41a   :  { %5102 = vmatpush3.bf16.msra.mxu0 %v5737_v48 }
 0x41b   :  { %5030 = vmatpush3.bf16.msra.mxu1 %v5723_v29  ;;  %5103 = vmatprep.subr.bf16.mxu0 %v5740_v53 }
 0x41c   :  { %5031 = vmatprep.subr.bf16.mxu1 %v5726_v44 }
 0x41e   :  { %5104 = vmatpush3.bf16.msra.mxu0 %v5741_v14 }
 0x41f   :  { %5032 = vmatpush3.bf16.msra.mxu1 %v5727_v37  ;;  %5133 = vmatprep.subr.bf16.mxu0 %v5744_v42 }
 0x420   :  { %5033 = vmatprep.subr.bf16.mxu1 %v5730_v24 }
 0x423   :  { %5034 = vmatpush3.bf16.msra.mxu1 %v5731_v34 }
 0x424   :  { %5035 = vmatprep.subr.bf16.mxu1 %v5734_v6 }
 0x427   :  { %5036 = vmatpush3.bf16.msra.mxu1 %v5735_v7 }
 0x428   :  { %5037 = vmatprep.subr.bf16.mxu1 %v5738_v16 }
 0x42b   :  { %5038 = vmatpush3.bf16.msra.mxu1 %v5739_v45 }
 0x42c   :  { %5045 = vmatprep.subr.bf16.mxu1 %v5742_v15 }
 0x4d3   :  { %v3005_v58 = vpop.f32.mrb[32].mxu1 }
 0x4d4   :  { %v5312_v21 = vadd.f32 %v3005_v58, %v2657_v61  ;;  %v3007_v52 = vpop.f32.mrb[33].mxu1 }
 0x4d5   :  { %v5313_v19 = vadd.f32 %v3007_v52, %v2661_v26  ;;  %v3009_v41 = vpop.f32.mrb[34].mxu1 }
 0x4d6   :  { %v5314_v20 = vadd.f32 %v3009_v41, %v2657_v61  ;;  %v3011_v9 = vpop.f32.mrb[35].mxu1 }
 0x4d7   :  { %v3060_v38 = vmax.f32 %v5312_v21, %v5313_v19  ;;  %v5315_v49 = vadd.f32 %v3011_v9, %v2661_v26 }
 0x4d9   :  { %3068 = vst [vmem:[#allocation4] sm:$0xff] %v3060_v38  ;;  %v3061_v18 = vmax.f32 %v5314_v20, %v5315_v49 }
 0x4db   :  { %3069 = vst [vmem:[#allocation4 + $0x8] sm:$0xff] %v3061_v18  ;;  %v3015_v27 = vpop.f32.mrb[36].mxu1  ;;  %v5746_v18 = vld [vmem:[%s7640_s7 + $0xc8] sm:$0xff]  }
 0x4dc   :  { %v5316_v46 = vadd.f32 %v3015_v27, %v2657_v61  ;;  %v3017_v62 = vpop.f32.mrb[37].mxu1 }
 0x4dd   :  { %v5317_v39 = vadd.f32 %v3017_v62, %v2661_v26  ;;  %v3019_v56 = vpop.f32.mrb[38].mxu1 }
 0x4de   :  { %v5318_v25 = vadd.f32 %v3019_v56, %v2657_v61  ;;  %v3021_v8 = vpop.f32.mrb[39].mxu1  ;;  %v5748_v56 = vld [vmem:[%s7640_s7 + $0x2c8] sm:$0xff]  }
 0x4df   :  { %v3062_v32 = vmax.f32 %v5316_v46, %v5317_v39  ;;  %v5319_v40 = vadd.f32 %v3021_v8, %v2661_v26  ;;  %v5745_v39 = vld [vmem:[%s7640_s7 + $0x280] sm:$0xff]  }
 0x4e1   :  { %3070 = vst [vmem:[#allocation4 + $0x10] sm:$0xff] %v3062_v32  ;;  %v3063_v0 = vmax.f32 %v5318_v25, %v5319_v40  ;;  %v5747_v32 = vld [vmem:[%s7640_s7 + $0x88] sm:$0xff]   ;;  %v5750_v40 = vld [vmem:[%s7640_s7 + $0xd0] sm:$0xff]  }
 0x4e2   :  { %v3076_v60 = vld [vmem:[#allocation4] ss:$2 sm:$0xff]  ;;  %v3084_v31 = vld [vmem:[#allocation4 + $0x1] ss:$2 sm:$0xff] }
 0x4e3   :  { %3071 = vst [vmem:[#allocation4 + $0x18] sm:$0xff] %v3063_v0  ;;  %v3025_v10 = vpop.f32.mrb[40].mxu1  ;;  %v3091_v22 = vmax.f32 %v3076_v60, %v3084_v31  ;;  %v5749_v0 = vld [vmem:[%s7640_s7 + $0x288] sm:$0xff]   ;;  %v5754_v31 = vld [vmem:[%s7640_s7 + $0xd8] sm:$0xff]  }
 0x4e4   :  { %v5320_v36 = vadd.f32 %v3025_v10, %v2657_v61  ;;  %v3027_v63 = vpop.f32.mrb[41].mxu1 }
 0x4e5   :  { %v5321_v13 = vadd.f32 %v3027_v63, %v2661_v26  ;;  %v3029_v17 = vpop.f32.mrb[42].mxu1  ;;  %v7249_v50 = vmax.f32 %v3091_v22, 0.0  ;;  %v5752_v63 = vld [vmem:[%s7640_s7 + $0x2d0] sm:$0xff]  }
 0x4e6   :  { %v5322_v28 = vadd.f32 %v3029_v17, %v2657_v61  ;;  %v3031_v57 = vpop.f32.mrb[43].mxu1 }
 0x4e7   :  { %v3064_v47 = vmax.f32 %v5320_v36, %v5321_v13  ;;  %v5323_v51 = vadd.f32 %v3031_v57, %v2661_v26  ;;  %v3104_v43 = vrot.slane %v7249_v50, 1  ;;  %v3132_v7 = vrot.slane %v7249_v50, 7 }
 0x4e8   :  { %v3112_v30 = vrot.slane %v7249_v50, 3  ;;  %v3127_v15 = vrot.slane %v7249_v50, 6  ;;  %v3117_v55 = vrot.slane %v7249_v50, 4 }
 0x4e9   :  { %3072 = vst [vmem:[#allocation4 + $0x20] sm:$0xff] %v3064_v47  ;;  %v3065_v54 = vmax.f32 %v5322_v28, %v5323_v51  ;;  %v5751_v28 = vld [vmem:[%s7640_s7 + $0x90] sm:$0xff]  }
 0x4ea   :  { %v3078_v35 = vld [vmem:[#allocation4 + $0x10] ss:$2 sm:$0xff]  ;;  %v3086_v24 = vld [vmem:[#allocation4 + $0x11] ss:$2 sm:$0xff] }
 0x4eb   :  { %3073 = vst [vmem:[#allocation4 + $0x28] sm:$0xff] %v3065_v54  ;;  %v3035_v12 = vpop.f32.mrb[44].mxu1  ;;  %v3092_v6 = vmax.f32 %v3078_v35, %v3086_v24  ;;  %v5763_v35 = vld [vmem:[%s7640_s7 + $0xa8] sm:$0xff]   ;;  %v5766_v24 = vld [vmem:[%s7640_s7 + $0xf0] sm:$0xff]  }
 0x4ec   :  { %v5324_v2 = vadd.f32 %v3035_v12, %v2657_v61  ;;  %v3037_v11 = vpop.f32.mrb[45].mxu1  ;;  %v5753_v12 = vld [vmem:[%s7640_s7 + $0x290] sm:$0xff]  }
 0x4ed   :  { %v5325_v23 = vadd.f32 %v3037_v11, %v2661_v26  ;;  %v3039_v59 = vpop.f32.mrb[46].mxu1  ;;  %v7276_v27 = vmax.f32 %v3092_v6, 0.0  ;;  %v5767_v6 = vld [vmem:[%s7640_s7 + $0xb0] sm:$0xff]  }
 0x4ee   :  { %v5326_v1 = vadd.f32 %v3039_v59, %v2657_v61  ;;  %v3041_v5 = vpop.f32.mrb[47].mxu1  ;;  %v5755_v59 = vld [vmem:[%s7640_s7 + $0x98] sm:$0xff]  }
 0x4ef   :  { %v3066_v29 = vmax.f32 %v5324_v2, %v5325_v23  ;;  %v5327_v33 = vadd.f32 %v3041_v5, %v2661_v26  ;;  %v5743_v26 = vld [vmem:[%s7640_s7 + $0x80] sm:$0xff]   ;;  %v3150_v10 = vrot.slane %v7276_v27, 3  ;;  %v3160_v47 = vrot.slane %v7276_v27, 5  ;;  %v5756_v23 = vld [vmem:[%s7640_s7 + $0x2d8] sm:$0xff]  }
 0x4f0   :  { %v3155_v51 = vrot.slane %v7276_v27, 4  ;;  %v5757_v5 = vld [vmem:[%s7640_s7 + $0x298] sm:$0xff]  }
 0x4f1   :  { %3074 = vst [vmem:[#allocation4 + $0x30] sm:$0xff] %v3066_v29  ;;  %v3067_v44 = vmax.f32 %v5326_v1, %v5327_v33  ;;  %v5758_v1 = vld [vmem:[%s7640_s7 + $0xe0] sm:$0xff]  }
 0x4f2   :  { %v3080_v37 = vld [vmem:[#allocation4 + $0x20] ss:$2 sm:$0xff]  ;;  %v3088_v3 = vld [vmem:[#allocation4 + $0x21] ss:$2 sm:$0xff] }
 0x4f3   :  { %v3093_v34 = vmax.f32 %v3080_v37, %v3088_v3  ;;  %3075 = vst [vmem:[#allocation4 + $0x38] sm:$0xff] %v3067_v44  ;;  %v5760_v29 = vld [vmem:[%s7640_s7 + $0x2e0] sm:$0xff]   ;;  %v5762_v44 = vld [vmem:[%s7640_s7 + $0xe8] sm:$0xff]  }
 0x4f4   :  { %v5759_v33 = vld [vmem:[%s7640_s7 + $0xa0] sm:$0xff]   ;;  %v5764_v3 = vld [vmem:[%s7640_s7 + $0x2e8] sm:$0xff]  }
 0x4f5   :  { %v7251_v4 = vmax.f32 %v3093_v34, 0.0  ;;  %v5761_v37 = vld [vmem:[%s7640_s7 + $0x2a0] sm:$0xff]   ;;  %v5765_v34 = vld [vmem:[%s7640_s7 + $0x2a8] sm:$0xff]  }
 0x4f7   :  { %v3106_v48 = vsel %vm88_vm0, %v3104_v43, %v7251_v4  ;;  %v3100_v16 = vrot.slane %v7251_v4, 7  ;;  %v3134_v45 = vrot.slane %v7251_v4, 6  ;;  %v3114_v53 = vrot.slane %v7251_v4, 2  ;;  %v5768_v43 = vld [vmem:[%s7640_s7 + $0x2f0] sm:$0xff]  }
 0x4f8   :  { %v3176_v14 = vpack.c.bf16 %v3106_v48, %v3106_v48  ;;  %v3129_v42 = vrot.slane %v7251_v4, 5  ;;  %v3119_v52 = vrot.slane %v7251_v4, 3  ;;  %v3109_v48 = vrot.slane %v7251_v4, 1 }
 0x4f9   :  { %v3102_v61 = vsel %vm88_vm0, %v7249_v50, %v3100_v16  ;;  %v3136_v58 = vsel %vm88_vm0, %v3132_v7, %v3134_v45  ;;  %v3116_v21 = vsel %vm88_vm0, %v3112_v30, %v3114_v53  ;;  %v5770_v7 = vld [vmem:[%s7640_s7 + $0xf8] sm:$0xff]   ;;  %v5769_v30 = vld [vmem:[%s7640_s7 + $0x2b0] sm:$0xff]   ;;  %v3124_v45 = vrot.slane %v7251_v4, 4 }
 0x4fa   :  { %v3082_v19 = vld [vmem:[#allocation4 + $0x30] ss:$2 sm:$0xff]  ;;  %v3090_v41 = vld [vmem:[#allocation4 + $0x31] ss:$2 sm:$0xff]  ;;  %4254 = vmatprep.mubr.bf16.mxu1 %v3176_v14  ;;  %v3175_v20 = vpack.c.bf16 %v3102_v61, %v3102_v61  ;;  %v3182_v9 = vpack.c.bf16 %v3136_v58, %v3136_v58  ;;  %v3178_v38 = vpack.c.bf16 %v3116_v21, %v3116_v21  ;;  %v3131_v49 = vsel %vm88_vm0, %v3127_v15, %v3129_v42  ;;  %v5774_v42 = vld [vmem:[%s7640_s7 + $0x140] sm:$0xff]  }
 0x4fb   :  { %v3094_v46 = vmax.f32 %v3082_v19, %v3090_v41  ;;  %v3181_v62 = vpack.c.bf16 %v3131_v49, %v3131_v49  ;;  %v7285_v25 = vsel %vm88_vm0, %v3117_v55, %v3119_v52  ;;  %v5772_v16 = vld [vmem:[%s7640_s7 + $0x2f8] sm:$0xff]   ;;  %v3107_v14 = vrot.slane %v7249_v50, 2  ;;  %v5776_v52 = vld [vmem:[%s7640_s7 + $0x3c0] sm:$0xff]  }
 0x4fc   :  { %4255 = vmatmul.mubr.bf16.vlgmr.msra.gmra.mrb[48].mxu1 %v3175_v20  ;;  %4374 = vmatprep.mubr.bf16.mxu0 %v3182_v9  ;;  %v5771_v53 = vld [vmem:[%s7640_s7 + $0xb8] sm:$0xff]   ;;  %v3122_v55 = vrot.slane %v7249_v50, 5  ;;  %v3145_v58 = vrot.slane %v7276_v27, 2  ;;  %v3170_v50 = vrot.slane %v7276_v27, 7  ;;  %v5775_v19 = vld [vmem:[%s7640_s7 + $0x100] sm:$0xff]  }
 0x4fd   :  { %v7287_v8 = vmax.f32 %v3094_v46, 0.0  ;;  %5046 = vmatpush3.bf16.msra.mxu1 %v5743_v26  ;;  %4294 = vmatprep.mubr.bf16.mxu1 %v3178_v38  ;;  %v5773_v4 = vld [vmem:[%s7640_s7 + $0x2b8] sm:$0xff]   ;;  %v3111_v26 = vsel %vm88_vm0, %v3107_v14, %v3109_v48  ;;  %v5778_v38 = vld [vmem:[%s7640_s7 + $0x148] sm:$0xff]   ;;  %v3179_v48 = vpack.c.bf16 %v7285_v25, %v7285_v25  ;;  %v5810_v25 = vld [vmem:[%s7640_s7 + $0x250] sm:$0xff]  }
 0x4fe   :  { %4375 = vmatmul.mubr.bf16.vlgmr.msra.gmra.mrb[64].mxu0 %v3181_v62  ;;  %5047 = vmatprep.subr.bf16.mxu1 %v5746_v18  ;;  %v3126_v21 = vsel %vm88_vm0, %v3122_v55, %v3124_v45  ;;  %v3177_v20 = vpack.c.bf16 %v3111_v26, %v3111_v26  ;;  %v5777_v18 = vld [vmem:[%s7640_s7 + $0x380] sm:$0xff]   ;;  %v5780_v62 = vld [vmem:[%s7640_s7 + $0x3c8] sm:$0xff]   ;;  %v5812_v14 = vld [vmem:[%s7640_s7 + $0x258] sm:$0xff]  }
 0x4ff   :  { %5134 = vmatpush3.bf16.msra.mxu0 %v5745_v39  ;;  %v3152_v36 = vrot.slane %v7287_v8, 2  ;;  %v3138_v13 = vrot.slane %v7287_v8, 7  ;;  %v3162_v17 = vrot.slane %v7287_v8, 4  ;;  %v3157_v54 = vrot.slane %v7287_v8, 3  ;;  %v5815_v55 = vld [vmem:[%s7640_s7 + $0x220] sm:$0xff]   ;;  %v5818_v26 = vld [vmem:[%s7640_s7 + $0x270] sm:$0xff]  }
 0x500   :  { %5135 = vmatprep.subr.bf16.mxu0 %v5748_v56  ;;  %v3147_v15 = vrot.slane %v7287_v8, 1  ;;  %v3172_v61 = vrot.slane %v7287_v8, 6  ;;  %v3180_v49 = vpack.c.bf16 %v3126_v21, %v3126_v21  ;;  %v5779_v56 = vld [vmem:[%s7640_s7 + $0x108] sm:$0xff]   ;;  %v5820_v21 = vld [vmem:[%s7640_s7 + $0x278] sm:$0xff]  }
 0x501   :  { %5048 = vmatpush3.bf16.msra.mxu1 %v5747_v32  ;;  %v3154_v57 = vsel %vm88_vm0, %v3150_v10, %v3152_v36  ;;  %v7320_v2 = vsel %vm88_vm0, %v7276_v27, %v3138_v13  ;;  %v7323_v11 = vsel %vm88_vm0, %v3160_v47, %v3162_v17  ;;  %v7326_v22 = vsel %vm88_vm0, %v3155_v51, %v3157_v54  ;;  %v5782_v32 = vld [vmem:[%s7640_s7 + $0x150] sm:$0xff]   ;;  %v5786_v36 = vld [vmem:[%s7640_s7 + $0x158] sm:$0xff]   ;;  %v5792_v47 = vld [vmem:[%s7640_s7 + $0x3e0] sm:$0xff]  }
 0x502   :  { %5049 = vmatprep.subr.bf16.mxu1 %v5750_v40  ;;  %v3186_v60 = vpack.c.bf16 %v3154_v57, %v3154_v57  ;;  %v3149_v41 = vsel %vm88_vm0, %v3145_v58, %v3147_v15  ;;  %v3174_v9 = vsel %vm88_vm0, %v3170_v50, %v3172_v61  ;;  %v5781_v40 = vld [vmem:[%s7640_s7 + $0x388] sm:$0xff]   ;;  %v5783_v10 = vld [vmem:[%s7640_s7 + $0x110] sm:$0xff]   ;;  %v5788_v13 = vld [vmem:[%s7640_s7 + $0x3d8] sm:$0xff]  }
 0x503   :  { %5136 = vmatpush3.bf16.msra.mxu0 %v5749_v0  ;;  %v3185_v46 = vpack.c.bf16 %v3149_v41, %v3149_v41  ;;  %v3190_v39 = vpack.c.bf16 %v3174_v9, %v3174_v9  ;;  %v5784_v0 = vld [vmem:[%s7640_s7 + $0x3d0] sm:$0xff]   ;;  %v5787_v17 = vld [vmem:[%s7640_s7 + $0x118] sm:$0xff]   ;;  %v5791_v51 = vld [vmem:[%s7640_s7 + $0x120] sm:$0xff]   ;;  %v3183_v41 = vpack.c.bf16 %v7320_v2, %v7320_v2  ;;  %v3188_v9 = vpack.c.bf16 %v7323_v11, %v7323_v11 }
 0x504   :  { %5137 = vmatprep.subr.bf16.mxu0 %v5752_v63  ;;  %4454 = vmatprep.mubr.bf16.mxu0 %v3186_v60  ;;  %v5785_v63 = vld [vmem:[%s7640_s7 + $0x390] sm:$0xff]   ;;  %v5789_v57 = vld [vmem:[%s7640_s7 + $0x398] sm:$0xff]   ;;  %v5794_v54 = vld [vmem:[%s7640_s7 + $0x168] sm:$0xff]  }
 0x505   :  { %5050 = vmatpush3.bf16.msra.mxu1 %v5751_v28  ;;  %v5790_v28 = vld [vmem:[%s7640_s7 + $0x160] sm:$0xff]   ;;  %v5813_v15 = vld [vmem:[%s7640_s7 + $0x218] sm:$0xff]   ;;  %v5816_v61 = vld [vmem:[%s7640_s7 + $0x268] sm:$0xff]  }
 0x506   :  { %5051 = vmatprep.subr.bf16.mxu1 %v5754_v31  ;;  %v5793_v60 = vld [vmem:[%s7640_s7 + $0x3a0] sm:$0xff]   ;;  %v5796_v31 = vld [vmem:[%s7640_s7 + $0x3e8] sm:$0xff]   ;;  %v5819_v58 = vld [vmem:[%s7640_s7 + $0x230] sm:$0xff]  }
 0x507   :  { %5138 = vmatpush3.bf16.msra.mxu0 %v5753_v12  ;;  %v5795_v12 = vld [vmem:[%s7640_s7 + $0x128] sm:$0xff]   ;;  %v5822_v50 = vld [vmem:[%s7640_s7 + $0x340] sm:$0xff]   ;;  %v5826_v2 = vld [vmem:[%s7640_s7 + $0x350] sm:$0xff]  }
 0x508   :  { %5139 = vmatprep.subr.bf16.mxu0 %v5756_v23  ;;  %v5798_v23 = vld [vmem:[%s7640_s7 + $0x170] sm:$0xff]   ;;  %v5828_v11 = vld [vmem:[%s7640_s7 + $0x358] sm:$0xff]  }
 0x509   :  { %5052 = vmatpush3.bf16.msra.mxu1 %v5755_v59  ;;  %v5797_v59 = vld [vmem:[%s7640_s7 + $0x3a8] sm:$0xff]  }
 0x50a   :  { %5053 = vmatprep.subr.bf16.mxu1 %v5758_v1  ;;  %v5800_v1 = vld [vmem:[%s7640_s7 + $0x3f0] sm:$0xff]  }
 0x50b   :  { %5140 = vmatpush3.bf16.msra.mxu0 %v5757_v5  ;;  %v5799_v5 = vld [vmem:[%s7640_s7 + $0x130] sm:$0xff]  }
 0x50c   :  { %5141 = vmatprep.subr.bf16.mxu0 %v5760_v29  ;;  %v5802_v29 = vld [vmem:[%s7640_s7 + $0x178] sm:$0xff]  }
 0x50d   :  { %5054 = vmatpush3.bf16.msra.mxu1 %v5759_v33  ;;  %v5801_v33 = vld [vmem:[%s7640_s7 + $0x3b0] sm:$0xff]  }
 0x50e   :  { %5055 = vmatprep.subr.bf16.mxu1 %v5762_v44  ;;  %v5804_v44 = vld [vmem:[%s7640_s7 + $0x3f8] sm:$0xff]  }
 0x50f   :  { %5142 = vmatpush3.bf16.msra.mxu0 %v5761_v37  ;;  %v5803_v37 = vld [vmem:[%s7640_s7 + $0x138] sm:$0xff]  }
 0x510   :  { %5143 = vmatprep.subr.bf16.mxu0 %v5764_v3  ;;  %v3167_v3 = vrot.slane %v7287_v8, 5 }
 0x511   :  { %5056 = vmatpush3.bf16.msra.mxu1 %v5763_v35  ;;  %v5806_v35 = vld [vmem:[%s7640_s7 + $0x240] sm:$0xff]  }
 0x512   :  { %5057 = vmatprep.subr.bf16.mxu1 %v5766_v24  ;;  %v3142_v24 = vrot.slane %v7276_v27, 1 }
 0x513   :  { %5144 = vmatpush3.bf16.msra.mxu0 %v5765_v34  ;;  %v5805_v34 = vld [vmem:[%s7640_s7 + $0x3b8] sm:$0xff]  }
 0x514   :  { %5145 = vmatprep.subr.bf16.mxu0 %v5768_v43  ;;  %v3165_v43 = vrot.slane %v7276_v27, 6 }
 0x515   :  { %5058 = vmatpush3.bf16.msra.mxu1 %v5767_v6  ;;  %v3144_v6 = vsel %vm88_vm0, %v3142_v24, %v7287_v8  ;;  %v5809_v8 = vld [vmem:[%s7640_s7 + $0x208] sm:$0xff]  }
 0x516   :  { %5059 = vmatprep.subr.bf16.mxu1 %v5770_v7  ;;  %v5807_v7 = vld [vmem:[%s7640_s7 + $0x200] sm:$0xff]   ;;  %v3184_v27 = vpack.c.bf16 %v3144_v6, %v3144_v6 }
 0x517   :  { %5146 = vmatpush3.bf16.msra.mxu0 %v5769_v30  ;;  %v3169_v30 = vsel %vm88_vm0, %v3165_v43, %v3167_v3 }
 0x518   :  { %5147 = vmatprep.subr.bf16.mxu0 %v5772_v16  ;;  %v5808_v16 = vld [vmem:[%s7640_s7 + $0x248] sm:$0xff]   ;;  %v3189_v45 = vpack.c.bf16 %v3169_v30, %v3169_v30 }
 0x519   :  { %5060 = vmatpush3.bf16.msra.mxu1 %v5771_v53  ;;  %v5811_v53 = vld [vmem:[%s7640_s7 + $0x210] sm:$0xff]  }
 0x51a   :  { %5067 = vmatprep.subr.bf16.mxu1 %v5774_v42  ;;  %v5814_v42 = vld [vmem:[%s7640_s7 + $0x260] sm:$0xff]  }
 0x51b   :  { %5148 = vmatpush3.bf16.msra.mxu0 %v5773_v4  ;;  %v5817_v4 = vld [vmem:[%s7640_s7 + $0x228] sm:$0xff]  }
 0x51c   :  { %4295 = vmatmul.mubr.bf16.vlgmr.msra.gmra.mrb[52].mxu1 %v3177_v20  ;;  %5177 = vmatprep.subr.bf16.mxu0 %v5776_v52  ;;  %v5821_v52 = vld [vmem:[%s7640_s7 + $0x238] sm:$0xff]   ;;  %v5824_v20 = vld [vmem:[%s7640_s7 + $0x348] sm:$0xff]  }
 0x51d   :  { %5068 = vmatpush3.bf16.msra.mxu1 %v5775_v19  ;;  %4334 = vmatprep.mubr.bf16.mxu1 %v3180_v49  ;;  %v5823_v19 = vld [vmem:[%s7640_s7 + $0x300] sm:$0xff]   ;;  %v5827_v49 = vld [vmem:[%s7640_s7 + $0x310] sm:$0xff]  }
 0x51e   :  { %4455 = vmatmul.mubr.bf16.vlgmr.msra.gmra.mrb[68].mxu0 %v3185_v46  ;;  %5069 = vmatprep.subr.bf16.mxu1 %v5778_v38  ;;  %v5825_v38 = vld [vmem:[%s7640_s7 + $0x308] sm:$0xff]   ;;  %v5830_v46 = vld [vmem:[%s7640_s7 + $0x360] sm:$0xff]  }
 0x51f   :  { %5178 = vmatpush3.bf16.msra.mxu0 %v5777_v18  ;;  %4534 = vmatprep.mubr.bf16.mxu0 %v3190_v39  ;;  %v5829_v18 = vld [vmem:[%s7640_s7 + $0x318] sm:$0xff]   ;;  %v5832_v39 = vld [vmem:[%s7640_s7 + $0x368] sm:$0xff]  }
 0x520   :  { %5179 = vmatprep.subr.bf16.mxu0 %v5780_v62  ;;  %v5831_v62 = vld [vmem:[%s7640_s7 + $0x320] sm:$0xff]  }
 0x521   :  { %5070 = vmatpush3.bf16.msra.mxu1 %v5779_v56  ;;  %v5833_v56 = vld [vmem:[%s7640_s7 + $0x328] sm:$0xff]  }
 0x522   :  { %5071 = vmatprep.subr.bf16.mxu1 %v5782_v32  ;;  %v5834_v32 = vld [vmem:[%s7640_s7 + $0x370] sm:$0xff]  }
 0x523   :  { %5180 = vmatpush3.bf16.msra.mxu0 %v5781_v40  ;;  %v5835_v40 = vld [vmem:[%s7640_s7 + $0x330] sm:$0xff]  }
 0x524   :  { %5181 = vmatprep.subr.bf16.mxu0 %v5784_v0  ;;  %v5836_v0 = vld [vmem:[%s7640_s7 + $0x378] sm:$0xff]  }
 0x525   :  { %5072 = vmatpush3.bf16.msra.mxu1 %v5783_v10  ;;  %v5837_v10 = vld [vmem:[%s7640_s7 + $0x338] sm:$0xff]  }
 0x526   :  { %5073 = vmatprep.subr.bf16.mxu1 %v5786_v36  ;;  %v3187_v36 = vpack.c.bf16 %v7326_v22, %v7326_v22 }
 0x527   :  { %5182 = vmatpush3.bf16.msra.mxu0 %v5785_v63  ;;  %v5838_v63 = vld [vmem:[%s7642_s9] sm:$0xff]  }
 0x528   :  { %5183 = vmatprep.subr.bf16.mxu0 %v5788_v13  ;;  %v5880_v13 = vmov 0.0  }
 0x529   :  { %5074 = vmatpush3.bf16.msra.mxu1 %v5787_v17 }
 0x52a   :  { %5075 = vmatprep.subr.bf16.mxu1 %v5790_v28 }
 0x52b   :  { %5184 = vmatpush3.bf16.msra.mxu0 %v5789_v57  ;;  %v5839_v57 = vld [vmem:[%s7642_s9 + $0x8] sm:$0xff]  }
 0x52c   :  { %5185 = vmatprep.subr.bf16.mxu0 %v5792_v47 }
 0x52d   :  { %5076 = vmatpush3.bf16.msra.mxu1 %v5791_v51 }
 0x52e   :  { %5077 = vmatprep.subr.bf16.mxu1 %v5794_v54 }
 0x52f   :  { %5186 = vmatpush3.bf16.msra.mxu0 %v5793_v60 }
 0x530   :  { %5187 = vmatprep.subr.bf16.mxu0 %v5796_v31 }
 0x531   :  { %5078 = vmatpush3.bf16.msra.mxu1 %v5795_v12 }
 0x532   :  { %5079 = vmatprep.subr.bf16.mxu1 %v5798_v23 }
 0x533   :  { %5188 = vmatpush3.bf16.msra.mxu0 %v5797_v59  ;;  %v5840_v59 = vld [vmem:[%s7642_s9 + $0x10] sm:$0xff]  }
 0x534   :  { %5189 = vmatprep.subr.bf16.mxu0 %v5800_v1  ;;  %v5841_v1 = vld [vmem:[%s7642_s9 + $0x18] sm:$0xff]  }
 0x535   :  { %5080 = vmatpush3.bf16.msra.mxu1 %v5799_v5  ;;  %v4888_v5 = vld [vmem:[%s7641_s8] ss:$0 sm:$0xff] }
 0x536   :  { %5081 = vmatprep.subr.bf16.mxu1 %v5802_v29 }
 0x537   :  { %5190 = vmatpush3.bf16.msra.mxu0 %v5801_v33 }
 0x538   :  { %5191 = vmatprep.subr.bf16.mxu0 %v5804_v44 }
 0x539   :  { %5082 = vmatpush3.bf16.msra.mxu1 %v5803_v37 }
 0x53a   :  { %5111 = vmatprep.subr.bf16.mxu1 %v5806_v35 }
 0x53b   :  { %5192 = vmatpush3.bf16.msra.mxu0 %v5805_v34 }
 0x53c   :  { %4335 = vmatmul.mubr.bf16.vlgmr.msra.gmra.mrb[56].mxu1 %v3179_v48 }
 0x53d   :  { %5112 = vmatpush3.bf16.msra.mxu1 %v5807_v7  ;;  %4414 = vmatprep.mubr.bf16.mxu1 %v3184_v27 }
 0x53e   :  { %4535 = vmatmul.mubr.bf16.vlgmr.msra.gmra.mrb[72].mxu0 %v3189_v45  ;;  %5113 = vmatprep.subr.bf16.mxu1 %v5808_v16 }
 0x541   :  { %5114 = vmatpush3.bf16.msra.mxu1 %v5809_v8 }
 0x542   :  { %5115 = vmatprep.subr.bf16.mxu1 %v5810_v25 }
 0x545   :  { %5116 = vmatpush3.bf16.msra.mxu1 %v5811_v53 }
 0x546   :  { %5117 = vmatprep.subr.bf16.mxu1 %v5812_v14 }
 0x549   :  { %5118 = vmatpush3.bf16.msra.mxu1 %v5813_v15 }
 0x54a   :  { %5119 = vmatprep.subr.bf16.mxu1 %v5814_v42 }
 0x54d   :  { %5120 = vmatpush3.bf16.msra.mxu1 %v5815_v55 }
 0x54e   :  { %5121 = vmatprep.subr.bf16.mxu1 %v5816_v61 }
 0x551   :  { %5122 = vmatpush3.bf16.msra.mxu1 %v5817_v4 }
 0x552   :  { %5123 = vmatprep.subr.bf16.mxu1 %v5818_v26 }
 0x555   :  { %5124 = vmatpush3.bf16.msra.mxu1 %v5819_v58 }
 0x556   :  { %5125 = vmatprep.subr.bf16.mxu1 %v5820_v21 }
 0x559   :  { %5126 = vmatpush3.bf16.msra.mxu1 %v5821_v52 }
 0x55a   :  { %5155 = vmatprep.subr.bf16.mxu1 %v5822_v50 }
 0x55c   :  { %4415 = vmatmul.mubr.bf16.vlgmr.msra.gmra.mrb[60].mxu1 %v3183_v41 }
 0x55d   :  { %5156 = vmatpush3.bf16.msra.mxu1 %v5823_v19  ;;  %4494 = vmatprep.mubr.bf16.mxu1 %v3188_v9 }
 0x55e   :  { %5157 = vmatprep.subr.bf16.mxu1 %v5824_v20 }
 0x561   :  { %5158 = vmatpush3.bf16.msra.mxu1 %v5825_v38 }
 0x562   :  { %5159 = vmatprep.subr.bf16.mxu1 %v5826_v2 }
 0x565   :  { %5160 = vmatpush3.bf16.msra.mxu1 %v5827_v49 }
 0x566   :  { %5161 = vmatprep.subr.bf16.mxu1 %v5828_v11 }
 0x569   :  { %5162 = vmatpush3.bf16.msra.mxu1 %v5829_v18 }
 0x56a   :  { %5163 = vmatprep.subr.bf16.mxu1 %v5830_v46 }
 0x56d   :  { %5164 = vmatpush3.bf16.msra.mxu1 %v5831_v62  ;;  %v5017_v62 = vld [vmem:[%s7643_s10] ss:$0 sm:$0xff] }
 0x56e   :  { %5165 = vmatprep.subr.bf16.mxu1 %v5832_v39 }
 0x571   :  { %5166 = vmatpush3.bf16.msra.mxu1 %v5833_v56 }
 0x572   :  { %5167 = vmatprep.subr.bf16.mxu1 %v5834_v32 }
 0x575   :  { %5168 = vmatpush3.bf16.msra.mxu1 %v5835_v40 }
 0x576   :  { %5169 = vmatprep.subr.bf16.mxu1 %v5836_v0 }
 0x579   :  { %5170 = vmatpush3.bf16.msra.mxu1 %v5837_v10 }
 0x57a   :  { %5204 = vmatprep.subr.bf16.mxu1 %v5880_v13 }
 0x57c   :  { %4495 = vmatmul.mubr.bf16.vlgmr.msra.gmra.mrb[64].mxu1 %v3187_v36 }
 0x57d   :  { %5205 = vmatpush3.bf16.msra.mxu1 %v5838_v63  ;;  %5212 = vmatprep.mubr.msk.bf16.mxu1 %vm5881_vm7, %v5880_v13 }
 0x57e   :  { %5206 = vmatprep.subr.bf16.mxu1 %v5880_v13 }
 0x581   :  { %5207 = vmatpush3.bf16.msra.mxu1 %v5839_v57 }
 0x582   :  { %5208 = vmatprep.subr.bf16.mxu1 %v5880_v13 }
 0x585   :  { %5209 = vmatpush3.bf16.msra.mxu1 %v5840_v59 }
 0x586   :  { %5210 = vmatprep.subr.bf16.mxu1 %v5880_v13 }
 0x589   :  { %5211 = vmatpush3.bf16.msra.mxu1 %v5841_v1 }
 0x5cf   :  { %v5039_v17 = vpop.f32.mrb[48].mxu1 }
 0x5d0   :  { %v5040_v28 = vpop.f32.mrb[49].mxu1 }
 0x5d1   :  { %v5041_v47 = vadd.f32 %v5040_v28, %v5039_v17  ;;  %v5105_v51 = vpop.f32.mrb[64].mxu0  ;;  %v5042_v54 = vpop.f32.mrb[50].mxu1 }
 0x5d2   :  { %v5106_v60 = vpop.f32.mrb[65].mxu0  ;;  %v5043_v22 = vpop.f32.mrb[51].mxu1 }
 0x5d3   :  { %v5107_v31 = vadd.f32 %v5106_v60, %v5105_v51  ;;  %v5108_v12 = vpop.f32.mrb[66].mxu0  ;;  %v4257_v44 = vadd.f32 %v5041_v47, %v4888_v5 }
 0x5d4   :  { %v5109_v23 = vpop.f32.mrb[67].mxu0 }
 0x5ef   :  { %v5061_v29 = vpop.f32.mrb[52].mxu1 }
 0x5f0   :  { %v5062_v33 = vpop.f32.mrb[53].mxu1 }
 0x5f1   :  { %v5063_v37 = vadd.f32 %v5062_v33, %v5061_v29  ;;  %v5149_v3 = vpop.f32.mrb[68].mxu0  ;;  %v5064_v35 = vpop.f32.mrb[54].mxu1 }
 0x5f2   :  { %v5150_v24 = vpop.f32.mrb[69].mxu0  ;;  %v5065_v34 = vpop.f32.mrb[55].mxu1 }
 0x5f3   :  { %v4297_v43 = vadd.f32 %v5063_v37, %v4257_v44  ;;  %v5151_v6 = vadd.f32 %v5150_v24, %v5149_v3  ;;  %v5152_v7 = vpop.f32.mrb[70].mxu0 }
 0x5f4   :  { %v5153_v30 = vpop.f32.mrb[71].mxu0 }
 0x60f   :  { %v5083_v48 = vpop.f32.mrb[56].mxu1 }
 0x610   :  { %v5084_v16 = vpop.f32.mrb[57].mxu1 }
 0x611   :  { %v5085_v27 = vadd.f32 %v5084_v16, %v5083_v48  ;;  %v5193_v45 = vpop.f32.mrb[72].mxu0  ;;  %v5086_v8 = vpop.f32.mrb[58].mxu1 }
 0x612   :  { %v5194_v25 = vpop.f32.mrb[73].mxu0  ;;  %v5087_v53 = vpop.f32.mrb[59].mxu1 }
 0x613   :  { %v4337_v14 = vadd.f32 %v5085_v27, %v4297_v43  ;;  %v5195_v15 = vadd.f32 %v5194_v25, %v5193_v45  ;;  %v5196_v42 = vpop.f32.mrb[74].mxu0 }
 0x614   :  { %v5197_v55 = vpop.f32.mrb[75].mxu0 }
 0x615   :  { %v4377_v61 = vadd.f32 %v5107_v31, %v4337_v14 }
 0x62f   :  { %v5127_v4 = vpop.f32.mrb[60].mxu1 }
 0x630   :  { %v5128_v26 = vpop.f32.mrb[61].mxu1 }
 0x631   :  { %v5129_v58 = vadd.f32 %v5128_v26, %v5127_v4  ;;  %v5130_v21 = vpop.f32.mrb[62].mxu1 }
 0x632   :  { %v5131_v52 = vpop.f32.mrb[63].mxu1 }
 0x633   :  { %v4417_v50 = vadd.f32 %v5129_v58, %v4377_v61 }
 0x635   :  { %v4457_v19 = vadd.f32 %v5151_v6, %v4417_v50 }
 0x64f   :  { %v5171_v41 = vpop.f32.mrb[64].mxu1 }
 0x650   :  { %v5172_v20 = vpop.f32.mrb[65].mxu1 }
 0x651   :  { %v5173_v9 = vadd.f32 %v5172_v20, %v5171_v41  ;;  %v5174_v38 = vpop.f32.mrb[66].mxu1 }
 0x652   :  { %v5175_v2 = vpop.f32.mrb[67].mxu1 }
 0x653   :  { %v4497_v49 = vadd.f32 %v5173_v9, %v4457_v19 }
 0x655   :  { %v4537_v11 = vadd.f32 %v5195_v15, %v4497_v49 }
 0x657   :  { %v4542_v18 = vmax.f32 %v4537_v11, 0.0 }
 0x659   :  { %v4543_v46 = vpack.c.bf16 %v4542_v18, %v4542_v18 }
 0x65b   :  { %5213 = vmatmul.mubr.msk.bf16.vlgmr.msra.gmra.mrb[68].mxu1 %vm4583_vm8, %v4543_v46 }
 0x72e   :  { %v4621_v39 = vpop.f32.mrb[68].mxu1 }
 0x72f   :  { %v4622_v56 = vadd.f32 %v5017_v62, %v4621_v39  ;;  %v5214_v32 = vpop.f32.mrb[69].mxu1 }
 0x730   :  { %v4624_v40 = vpop.f32.mrb[70].mxu1 }
 0x731   :  { %4627 = vst [vmem:[#allocation5] sm:$0x3] %v4622_v56  ;;  %v5215_v0 = vpop.f32.mrb[71].mxu1 }
 0x732   :  { %5865 = shalt.err (!%p5862_p4)
}
 0x733   :  { %s5866_s10 = scalar_lea.hbm %s7644_s11, 32 }
 0x734   :  { %p5867_p5 = scmp.ne.s32.totalorder %s7644_s11, %s5866_s10  ;;  %p5870_p6 = scmp.lt.u32.totalorder %s5866_s10, %s7644_s11 }
 0x736   :  { %p5872_p7 = pnand %p5870_p6, %p5867_p5 }
 0x738   :  { %5875 = shalt.err (!%p5872_p7)
}
 0x739   :  { %4637 = dma.vmem_to_hbm [thread:$0]  %s4635_s21, 32, %s7644_s11, [#allocation6]  }
 0x73a   :  { %5876 = dma.done.wait [#allocation6], 32  }
 0x73b   :  { %5877 = vsyncadd [#allocation6], 4294967264 }
 0x73c   :  { %4641 = vsyncpa [#allocation6], 1 }

</bundles_post_ra>
